<compile_context>
chip_gen: v7x
topology: tpu7x:2x2x1
jax: 0.10.0
libtpu: 0.0.40
codegen_flags: <defaults>
</compile_context>

<pallas_src>
import numpy as np
import jax
import jax.numpy as jnp
from jax import lax
from jax.experimental import pallas as pl
from jax.experimental.pallas import tpu as pltpu

EPS = 1e-5


# --------------------------------------------------------------------------
# Fused encoder kernel (single pallas_call, no grid — everything in VMEM)
# --------------------------------------------------------------------------

def _bn_affine(y, g_ref, b_ref, relu):
    """Training-mode BatchNorm over rows (axis 0) + affine (+ optional ReLU)."""
    m = y.shape[0]                              # all rows are valid (exact sizes)
    mean = jnp.sum(y, axis=0, keepdims=True) * (1.0 / m)
    d = y - mean
    var = jnp.sum(d * d, axis=0, keepdims=True) * (1.0 / m)   # biased, like PyTorch
    y = d * (g_ref[...] * lax.rsqrt(var + EPS)) + b_ref[...]
    return jnp.maximum(y, 0.0) if relu else y


def _sel_conv(s_ref, w_ref, h):
    """Conv as sum_k (S_k @ H) @ W_k with S_k a 0/1 row-selection matrix.

    This is an in-kernel im2col: H is the VMEM-resident (rows, Cin) activation
    slab, S_k gathers the input rows contributing at kernel offset k (zero rows
    encode spatial padding), W_k is the (Cin, Cout) weight slice for offset k.
    """
    rows_out = s_ref.shape[1]
    cout = w_ref.shape[2]
    y = jnp.zeros((rows_out, cout), jnp.float32)
    for k in range(s_ref.shape[0]):            # static unroll (<= 16 positions)
        p = jnp.dot(s_ref[k], h, preferred_element_type=jnp.float32)
        y = y + jnp.dot(p, w_ref[k], preferred_element_type=jnp.float32)
    return y


def _encoder_kernel(a1_ref, w1_ref, s2_ref, w2_ref, s3_ref, w3_ref, w4_ref,
                    g1_ref, b1_ref, g2_ref, b2_ref, g3_ref, b3_ref,
                    g4_ref, b4_ref, g5_ref, b5_ref, out_ref):
    # conv1 (4x4 s2 p1; im2col'd in the wrapper) + BN1 + ReLU
    y1 = jnp.dot(a1_ref[...], w1_ref[...], preferred_element_type=jnp.float32)
    h1 = _bn_affine(y1, g1_ref, b1_ref, relu=True)

    # conv2 (4x4 s2 p1) + BN2 + ReLU — in-kernel im2col via selection matrices
    h2 = _bn_affine(_sel_conv(s2_ref, w2_ref, h1), g2_ref, b2_ref, relu=True)

    # res_block: conv3 (3x3 s1 p1) + BN3 + ReLU
    r = _bn_affine(_sel_conv(s3_ref, w3_ref, h2), g3_ref, b3_ref, relu=True)

    # conv4 (1x1) + BN4 + ReLU.  conv4's bias is intentionally omitted: a
    # per-channel constant feeding training-mode BatchNorm is cancelled exactly
    # by the batch mean, so it has no effect on the output.
    y4 = jnp.dot(r, w4_ref[...], preferred_element_type=jnp.float32)
    r = _bn_affine(y4, g4_ref, b4_ref, relu=True)

    # residual add + final BN (no ReLU)
    out_ref[...] = _bn_affine(h2 + r, g5_ref, b5_ref, relu=False)


# --------------------------------------------------------------------------
# Wrapper glue (trace-time constants + a little XLA on the tiny input)
# --------------------------------------------------------------------------

def _im2col(x_nhwc, kh, kw, stride, pad):
    xp = jnp.pad(x_nhwc, ((0, 0), (pad, pad), (pad, pad), (0, 0)))
    n, hp, wp, c = xp.shape
    ho = (hp - kh) // stride + 1
    wo = (wp - kw) // stride + 1
    cols = []
    for i in range(kh):
        for j in range(kw):
            cols.append(xp[:, i:i + (ho - 1) * stride + 1:stride,
                           j:j + (wo - 1) * stride + 1:stride, :])
    a = jnp.concatenate(cols, axis=-1)          # (n, ho, wo, kh*kw*c)
    return a.reshape(n * ho * wo, kh * kw * c), (ho, wo)


def _selection_matrices(n, h_in, w_in, kh, kw, stride, pad):
    """0/1 matrices S[k, out_row, in_row] implementing the im2col row-gather."""
    h_out = (h_in + 2 * pad - kh) // stride + 1
    w_out = (w_in + 2 * pad - kw) // stride + 1
    s = np.zeros((kh * kw, n * h_out * w_out, n * h_in * w_in), np.float32)
    for ni in range(n):
        for oh in range(h_out):
            for ow in range(w_out):
                ro = (ni * h_out + oh) * w_out + ow
                for ki in range(kh):
                    ih = oh * stride - pad + ki
                    if not (0 <= ih < h_in):
                        continue
                    for kj in range(kw):
                        iw = ow * stride - pad + kj
                        if 0 <= iw < w_in:
                            s[ki * kw + kj, ro, (ni * h_in + ih) * w_in + iw] = 1.0
    return s, (h_out, w_out)


def _w_per_pos(w):
    """(Cout, Cin, kh, kw) -> (kh*kw, Cin, Cout), same k ordering as im2col/S."""
    cout, cin, kh, kw = w.shape
    return jnp.transpose(w, (2, 3, 1, 0)).reshape(kh * kw, cin, cout)


@jax.jit
def encoder_forward(x_nchw, p):
    n, c, _, _ = x_nchw.shape
    hidden = p["w1"].shape[0]

    x = jnp.transpose(x_nchw, (0, 2, 3, 1)).astype(jnp.float32)      # NHWC
    a1, (h1o, w1o) = _im2col(x, 4, 4, 2, 1)                          # (n*h1o*w1o, 16*c)
    w1m = jnp.transpose(p["w1"], (2, 3, 1, 0)).reshape(16 * c, hidden)

    s2, (h2o, w2o) = _selection_matrices(n, h1o, w1o, 4, 4, 2, 1)    # trace-time consts
    s3, _ = _selection_matrices(n, h2o, w2o, 3, 3, 1, 1)
    w2s = _w_per_pos(p["w2"])
    w3s = _w_per_pos(p["w3"])
    w4m = p["w4"][:, :, 0, 0].T

    def vec(v):
        return v.reshape(1, hidden).astype(jnp.float32)

    args = (a1, w1m, jnp.asarray(s2), w2s, jnp.asarray(s3), w3s, w4m,
            vec(p["g1"]), vec(p["b1"]), vec(p["g2"]), vec(p["b2"]),
            vec(p["g3"]), vec(p["b3"]), vec(p["g4"]), vec(p["b4"]),
            vec(p["g5"]), vec(p["b5"]))

    rows_out = n * h2o * w2o
    out_slab = pl.pallas_call(
        _encoder_kernel,
        out_shape=jax.ShapeDtypeStruct((rows_out, hidden), jnp.float32),
        in_specs=[pl.BlockSpec(memory_space=pltpu.MemorySpace.VMEM)] * len(args),
        out_specs=pl.BlockSpec(memory_space=pltpu.MemorySpace.VMEM),
    )(*args)

    out = out_slab.reshape(n, h2o, w2o, hidden)
    return jnp.transpose(out, (0, 3, 1, 2))                           # back to NCHW


# --------------------------------------------------------------------------
# Pure-JAX reference (matches PyTorch forward, including conv4 bias)
# --------------------------------------------------------------------------

def encoder_reference(x, p):
    def conv(x, w, stride, pad, bias=None):
        y = lax.conv_general_dilated(
            x, w, (stride, stride), ((pad, pad), (pad, pad)),
            dimension_numbers=("NCHW", "OIHW", "NCHW"))
        if bias is not None:
            y = y + bias[None, :, None, None]
        return y

    def bn(x, g, b):
        mean = jnp.mean(x, axis=(0, 2, 3), keepdims=True)
        var = jnp.var(x, axis=(0, 2, 3), keepdims=True)   # biased, like PyTorch
        return (x - mean) * lax.rsqrt(var + EPS) * g[None, :, None, None] \
            + b[None, :, None, None]

    h = jax.nn.relu(bn(conv(x, p["w1"], 2, 1), p["g1"], p["b1"]))
    h = jax.nn.relu(bn(conv(h, p["w2"], 2, 1), p["g2"], p["b2"]))
    r = jax.nn.relu(bn(conv(h, p["w3"], 1, 1), p["g3"], p["b3"]))
    r = jax.nn.relu(bn(conv(r, p["w4"], 1, 0, p["bias4"]), p["g4"], p["b4"]))
    return bn(h + r, p["g5"], p["b5"])


# --------------------------------------------------------------------------
# Main
# --------------------------------------------------------------------------

if __name__ == "__main__":
    channels, hidden = 4, 32
    N, H, W = 2, 16, 16

    key = jax.random.PRNGKey(0)
    ks = jax.random.split(key, 16)

    params = {
        "w1": 0.2 * jax.random.normal(ks[0], (hidden, channels, 4, 4), jnp.float32),
        "w2": 0.1 * jax.random.normal(ks[1], (hidden, hidden, 4, 4), jnp.float32),
        "w3": 0.1 * jax.random.normal(ks[2], (hidden, hidden, 3, 3), jnp.float32),
        "w4": 0.2 * jax.random.normal(ks[3], (hidden, hidden, 1, 1), jnp.float32),
        "bias4": 0.1 * jax.random.normal(ks[4], (hidden,), jnp.float32),
        "g1": 1.0 + 0.1 * jax.random.normal(ks[5], (hidden,), jnp.float32),
        "b1": 0.1 * jax.random.normal(ks[6], (hidden,), jnp.float32),
        "g2": 1.0 + 0.1 * jax.random.normal(ks[7], (hidden,), jnp.float32),
        "b2": 0.1 * jax.random.normal(ks[8], (hidden,), jnp.float32),
        "g3": 1.0 + 0.1 * jax.random.normal(ks[9], (hidden,), jnp.float32),
        "b3": 0.1 * jax.random.normal(ks[10], (hidden,), jnp.float32),
        "g4": 1.0 + 0.1 * jax.random.normal(ks[11], (hidden,), jnp.float32),
        "b4": 0.1 * jax.random.normal(ks[12], (hidden,), jnp.float32),
        "g5": 1.0 + 0.1 * jax.random.normal(ks[13], (hidden,), jnp.float32),
        "b5": 0.1 * jax.random.normal(ks[14], (hidden,), jnp.float32),
    }

    x = jax.random.normal(ks[15], (N, channels, H, W), jnp.float32)

    out = jax.block_until_ready(encoder_forward(x, params))
    ref = jax.block_until_ready(encoder_reference(x, params))

    assert out.shape == (N, hidden, H // 4, W // 4), out.shape
    max_err = float(jnp.max(jnp.abs(out - ref)))
    assert max_err < 1e-2, f"mismatch vs reference, max abs err = {max_err}"

    print("KERNEL_OK")
</pallas_src>

<mosaic_0001>
module attributes {stable_mosaic.version = 11 : i64} {
  func.func @_encoder_kernel(%arg0: memref<128x64xf32, #tpu.memory_space<vmem>>, %arg1: memref<64x32xf32, #tpu.memory_space<vmem>>, %arg2: memref<16x32x128xf32, #tpu.memory_space<vmem>>, %arg3: memref<16x32x32xf32, #tpu.memory_space<vmem>>, %arg4: memref<9x32x32xf32, #tpu.memory_space<vmem>>, %arg5: memref<9x32x32xf32, #tpu.memory_space<vmem>>, %arg6: memref<32x32xf32, #tpu.memory_space<vmem>>, %arg7: memref<1x32xf32, #tpu.memory_space<vmem>>, %arg8: memref<1x32xf32, #tpu.memory_space<vmem>>, %arg9: memref<1x32xf32, #tpu.memory_space<vmem>>, %arg10: memref<1x32xf32, #tpu.memory_space<vmem>>, %arg11: memref<1x32xf32, #tpu.memory_space<vmem>>, %arg12: memref<1x32xf32, #tpu.memory_space<vmem>>, %arg13: memref<1x32xf32, #tpu.memory_space<vmem>>, %arg14: memref<1x32xf32, #tpu.memory_space<vmem>>, %arg15: memref<1x32xf32, #tpu.memory_space<vmem>>, %arg16: memref<1x32xf32, #tpu.memory_space<vmem>>, %arg17: memref<32x32xf32, #tpu.memory_space<vmem>>) attributes {dimension_semantics = [], scalar_prefetch = 0 : i64, scratch_operands = 0 : i64, tpu.core_type = #tpu.core_type<tc>} {
    %c0 = arith.constant 0 : index
    %c0_0 = arith.constant 0 : index
    %0 = vector.load %arg0[%c0, %c0_0] : memref<128x64xf32, #tpu.memory_space<vmem>>, vector<128x64xf32>
    %c0_1 = arith.constant 0 : index
    %c0_2 = arith.constant 0 : index
    %1 = vector.load %arg1[%c0_1, %c0_2] : memref<64x32xf32, #tpu.memory_space<vmem>>, vector<64x32xf32>
    %cst = arith.constant dense<0.000000e+00> : vector<128x32xf32>
    %2 = tpu.matmul %0, %1, %cst {dimension_numbers = #tpu.dot_dimension_numbers<[1], [0], [0], [1], [0, 0, 1, 1], [], []>} : vector<128x64xf32>, vector<64x32xf32>, vector<128x32xf32> -> vector<128x32xf32>
    %cst_3 = arith.constant dense<0.000000e+00> : vector<32xf32>
    %3 = vector.multi_reduction <add>, %2, %cst_3 [0] : vector<128x32xf32> to vector<32xf32>
    %4 = vector.shape_cast %3 : vector<32xf32> to vector<1x32xf32>
    %cst_4 = arith.constant 7.812500e-03 : f32
    %5 = vector.broadcast %cst_4 : f32 to vector<1x32xf32>
    %6 = arith.mulf %4, %5 : vector<1x32xf32>
    %7 = vector.broadcast %6 : vector<1x32xf32> to vector<128x32xf32>
    %8 = arith.subf %2, %7 : vector<128x32xf32>
    %9 = arith.mulf %8, %8 : vector<128x32xf32>
    %cst_5 = arith.constant dense<0.000000e+00> : vector<32xf32>
    %10 = vector.multi_reduction <add>, %9, %cst_5 [0] : vector<128x32xf32> to vector<32xf32>
    %11 = vector.shape_cast %10 : vector<32xf32> to vector<1x32xf32>
    %cst_6 = arith.constant 7.812500e-03 : f32
    %12 = vector.broadcast %cst_6 : f32 to vector<1x32xf32>
    %13 = arith.mulf %11, %12 : vector<1x32xf32>
    %c0_7 = arith.constant 0 : index
    %c0_8 = arith.constant 0 : index
    %14 = vector.load %arg7[%c0_7, %c0_8] : memref<1x32xf32, #tpu.memory_space<vmem>>, vector<1x32xf32>
    %cst_9 = arith.constant 9.99999974E-6 : f32
    %15 = vector.broadcast %cst_9 : f32 to vector<1x32xf32>
    %16 = arith.addf %13, %15 : vector<1x32xf32>
    %17 = math.rsqrt %16 : vector<1x32xf32>
    %18 = arith.mulf %14, %17 : vector<1x32xf32>
    %19 = vector.broadcast %18 : vector<1x32xf32> to vector<128x32xf32>
    %20 = arith.mulf %8, %19 : vector<128x32xf32>
    %c0_10 = arith.constant 0 : index
    %c0_11 = arith.constant 0 : index
    %21 = vector.load %arg8[%c0_10, %c0_11] : memref<1x32xf32, #tpu.memory_space<vmem>>, vector<1x32xf32>
    %22 = vector.broadcast %21 : vector<1x32xf32> to vector<128x32xf32>
    %23 = arith.addf %20, %22 : vector<128x32xf32>
    %cst_12 = arith.constant 0.000000e+00 : f32
    %24 = vector.broadcast %cst_12 : f32 to vector<128x32xf32>
    %25 = arith.maximumf %23, %24 : vector<128x32xf32>
    %cst_13 = arith.constant 0.000000e+00 : f32
    %26 = vector.broadcast %cst_13 : f32 to vector<32x32xf32>
    %c0_14 = arith.constant 0 : index
    %c0_15 = arith.constant 0 : index
    %c0_16 = arith.constant 0 : index
    %27 = vector.load %arg2[%c0_14, %c0_15, %c0_16] : memref<16x32x128xf32, #tpu.memory_space<vmem>>, vector<1x32x128xf32>
    %28 = vector.shape_cast %27 : vector<1x32x128xf32> to vector<32x128xf32>
    %cst_17 = arith.constant dense<0.000000e+00> : vector<32x32xf32>
    %29 = tpu.matmul %28, %25, %cst_17 {dimension_numbers = #tpu.dot_dimension_numbers<[1], [0], [0], [1], [0, 0, 1, 1], [], []>} : vector<32x128xf32>, vector<128x32xf32>, vector<32x32xf32> -> vector<32x32xf32>
    %c0_18 = arith.constant 0 : index
    %c0_19 = arith.constant 0 : index
    %c0_20 = arith.constant 0 : index
    %30 = vector.load %arg3[%c0_18, %c0_19, %c0_20] : memref<16x32x32xf32, #tpu.memory_space<vmem>>, vector<1x32x32xf32>
    %31 = vector.shape_cast %30 : vector<1x32x32xf32> to vector<32x32xf32>
    %cst_21 = arith.constant dense<0.000000e+00> : vector<32x32xf32>
    %32 = tpu.matmul %29, %31, %cst_21 {dimension_numbers = #tpu.dot_dimension_numbers<[1], [0], [0], [1], [0, 0, 1, 1], [], []>} : vector<32x32xf32>, vector<32x32xf32>, vector<32x32xf32> -> vector<32x32xf32>
    %33 = arith.addf %26, %32 : vector<32x32xf32>
    %c1 = arith.constant 1 : index
    %c0_22 = arith.constant 0 : index
    %c0_23 = arith.constant 0 : index
    %34 = vector.load %arg2[%c1, %c0_22, %c0_23] : memref<16x32x128xf32, #tpu.memory_space<vmem>>, vector<1x32x128xf32>
    %35 = vector.shape_cast %34 : vector<1x32x128xf32> to vector<32x128xf32>
    %cst_24 = arith.constant dense<0.000000e+00> : vector<32x32xf32>
    %36 = tpu.matmul %35, %25, %cst_24 {dimension_numbers = #tpu.dot_dimension_numbers<[1], [0], [0], [1], [0, 0, 1, 1], [], []>} : vector<32x128xf32>, vector<128x32xf32>, vector<32x32xf32> -> vector<32x32xf32>
    %c1_25 = arith.constant 1 : index
    %c0_26 = arith.constant 0 : index
    %c0_27 = arith.constant 0 : index
    %37 = vector.load %arg3[%c1_25, %c0_26, %c0_27] : memref<16x32x32xf32, #tpu.memory_space<vmem>>, vector<1x32x32xf32>
    %38 = vector.shape_cast %37 : vector<1x32x32xf32> to vector<32x32xf32>
    %cst_28 = arith.constant dense<0.000000e+00> : vector<32x32xf32>
    %39 = tpu.matmul %36, %38, %cst_28 {dimension_numbers = #tpu.dot_dimension_numbers<[1], [0], [0], [1], [0, 0, 1, 1], [], []>} : vector<32x32xf32>, vector<32x32xf32>, vector<32x32xf32> -> vector<32x32xf32>
    %40 = arith.addf %33, %39 : vector<32x32xf32>
    %c2 = arith.constant 2 : index
    %c0_29 = arith.constant 0 : index
    %c0_30 = arith.constant 0 : index
    %41 = vector.load %arg2[%c2, %c0_29, %c0_30] : memref<16x32x128xf32, #tpu.memory_space<vmem>>, vector<1x32x128xf32>
    %42 = vector.shape_cast %41 : vector<1x32x128xf32> to vector<32x128xf32>
    %cst_31 = arith.constant dense<0.000000e+00> : vector<32x32xf32>
    %43 = tpu.matmul %42, %25, %cst_31 {dimension_numbers = #tpu.dot_dimension_numbers<[1], [0], [0], [1], [0, 0, 1, 1], [], []>} : vector<32x128xf32>, vector<128x32xf32>, vector<32x32xf32> -> vector<32x32xf32>
    %c2_32 = arith.constant 2 : index
    %c0_33 = arith.constant 0 : index
    %c0_34 = arith.constant 0 : index
    %44 = vector.load %arg3[%c2_32, %c0_33, %c0_34] : memref<16x32x32xf32, #tpu.memory_space<vmem>>, vector<1x32x32xf32>
    %45 = vector.shape_cast %44 : vector<1x32x32xf32> to vector<32x32xf32>
    %cst_35 = arith.constant dense<0.000000e+00> : vector<32x32xf32>
    %46 = tpu.matmul %43, %45, %cst_35 {dimension_numbers = #tpu.dot_dimension_numbers<[1], [0], [0], [1], [0, 0, 1, 1], [], []>} : vector<32x32xf32>, vector<32x32xf32>, vector<32x32xf32> -> vector<32x32xf32>
    %47 = arith.addf %40, %46 : vector<32x32xf32>
    %c3 = arith.constant 3 : index
    %c0_36 = arith.constant 0 : index
    %c0_37 = arith.constant 0 : index
    %48 = vector.load %arg2[%c3, %c0_36, %c0_37] : memref<16x32x128xf32, #tpu.memory_space<vmem>>, vector<1x32x128xf32>
    %49 = vector.shape_cast %48 : vector<1x32x128xf32> to vector<32x128xf32>
    %cst_38 = arith.constant dense<0.000000e+00> : vector<32x32xf32>
    %50 = tpu.matmul %49, %25, %cst_38 {dimension_numbers = #tpu.dot_dimension_numbers<[1], [0], [0], [1], [0, 0, 1, 1], [], []>} : vector<32x128xf32>, vector<128x32xf32>, vector<32x32xf32> -> vector<32x32xf32>
    %c3_39 = arith.constant 3 : index
    %c0_40 = arith.constant 0 : index
    %c0_41 = arith.constant 0 : index
    %51 = vector.load %arg3[%c3_39, %c0_40, %c0_41] : memref<16x32x32xf32, #tpu.memory_space<vmem>>, vector<1x32x32xf32>
    %52 = vector.shape_cast %51 : vector<1x32x32xf32> to vector<32x32xf32>
    %cst_42 = arith.constant dense<0.000000e+00> : vector<32x32xf32>
    %53 = tpu.matmul %50, %52, %cst_42 {dimension_numbers = #tpu.dot_dimension_numbers<[1], [0], [0], [1], [0, 0, 1, 1], [], []>} : vector<32x32xf32>, vector<32x32xf32>, vector<32x32xf32> -> vector<32x32xf32>
    %54 = arith.addf %47, %53 : vector<32x32xf32>
    %c4 = arith.constant 4 : index
    %c0_43 = arith.constant 0 : index
    %c0_44 = arith.constant 0 : index
    %55 = vector.load %arg2[%c4, %c0_43, %c0_44] : memref<16x32x128xf32, #tpu.memory_space<vmem>>, vector<1x32x128xf32>
    %56 = vector.shape_cast %55 : vector<1x32x128xf32> to vector<32x128xf32>
    %cst_45 = arith.constant dense<0.000000e+00> : vector<32x32xf32>
    %57 = tpu.matmul %56, %25, %cst_45 {dimension_numbers = #tpu.dot_dimension_numbers<[1], [0], [0], [1], [0, 0, 1, 1], [], []>} : vector<32x128xf32>, vector<128x32xf32>, vector<32x32xf32> -> vector<32x32xf32>
    %c4_46 = arith.constant 4 : index
    %c0_47 = arith.constant 0 : index
    %c0_48 = arith.constant 0 : index
    %58 = vector.load %arg3[%c4_46, %c0_47, %c0_48] : memref<16x32x32xf32, #tpu.memory_space<vmem>>, vector<1x32x32xf32>
    %59 = vector.shape_cast %58 : vector<1x32x32xf32> to vector<32x32xf32>
    %cst_49 = arith.constant dense<0.000000e+00> : vector<32x32xf32>
    %60 = tpu.matmul %57, %59, %cst_49 {dimension_numbers = #tpu.dot_dimension_numbers<[1], [0], [0], [1], [0, 0, 1, 1], [], []>} : vector<32x32xf32>, vector<32x32xf32>, vector<32x32xf32> -> vector<32x32xf32>
    %61 = arith.addf %54, %60 : vector<32x32xf32>
    %c5 = arith.constant 5 : index
    %c0_50 = arith.constant 0 : index
    %c0_51 = arith.constant 0 : index
    %62 = vector.load %arg2[%c5, %c0_50, %c0_51] : memref<16x32x128xf32, #tpu.memory_space<vmem>>, vector<1x32x128xf32>
    %63 = vector.shape_cast %62 : vector<1x32x128xf32> to vector<32x128xf32>
    %cst_52 = arith.constant dense<0.000000e+00> : vector<32x32xf32>
    %64 = tpu.matmul %63, %25, %cst_52 {dimension_numbers = #tpu.dot_dimension_numbers<[1], [0], [0], [1], [0, 0, 1, 1], [], []>} : vector<32x128xf32>, vector<128x32xf32>, vector<32x32xf32> -> vector<32x32xf32>
    %c5_53 = arith.constant 5 : index
    %c0_54 = arith.constant 0 : index
    %c0_55 = arith.constant 0 : index
    %65 = vector.load %arg3[%c5_53, %c0_54, %c0_55] : memref<16x32x32xf32, #tpu.memory_space<vmem>>, vector<1x32x32xf32>
    %66 = vector.shape_cast %65 : vector<1x32x32xf32> to vector<32x32xf32>
    %cst_56 = arith.constant dense<0.000000e+00> : vector<32x32xf32>
    %67 = tpu.matmul %64, %66, %cst_56 {dimension_numbers = #tpu.dot_dimension_numbers<[1], [0], [0], [1], [0, 0, 1, 1], [], []>} : vector<32x32xf32>, vector<32x32xf32>, vector<32x32xf32> -> vector<32x32xf32>
    %68 = arith.addf %61, %67 : vector<32x32xf32>
    %c6 = arith.constant 6 : index
    %c0_57 = arith.constant 0 : index
    %c0_58 = arith.constant 0 : index
    %69 = vector.load %arg2[%c6, %c0_57, %c0_58] : memref<16x32x128xf32, #tpu.memory_space<vmem>>, vector<1x32x128xf32>
    %70 = vector.shape_cast %69 : vector<1x32x128xf32> to vector<32x128xf32>
    %cst_59 = arith.constant dense<0.000000e+00> : vector<32x32xf32>
    %71 = tpu.matmul %70, %25, %cst_59 {dimension_numbers = #tpu.dot_dimension_numbers<[1], [0], [0], [1], [0, 0, 1, 1], [], []>} : vector<32x128xf32>, vector<128x32xf32>, vector<32x32xf32> -> vector<32x32xf32>
    %c6_60 = arith.constant 6 : index
    %c0_61 = arith.constant 0 : index
    %c0_62 = arith.constant 0 : index
    %72 = vector.load %arg3[%c6_60, %c0_61, %c0_62] : memref<16x32x32xf32, #tpu.memory_space<vmem>>, vector<1x32x32xf32>
    %73 = vector.shape_cast %72 : vector<1x32x32xf32> to vector<32x32xf32>
    %cst_63 = arith.constant dense<0.000000e+00> : vector<32x32xf32>
    %74 = tpu.matmul %71, %73, %cst_63 {dimension_numbers = #tpu.dot_dimension_numbers<[1], [0], [0], [1], [0, 0, 1, 1], [], []>} : vector<32x32xf32>, vector<32x32xf32>, vector<32x32xf32> -> vector<32x32xf32>
    %75 = arith.addf %68, %74 : vector<32x32xf32>
    %c7 = arith.constant 7 : index
    %c0_64 = arith.constant 0 : index
    %c0_65 = arith.constant 0 : index
    %76 = vector.load %arg2[%c7, %c0_64, %c0_65] : memref<16x32x128xf32, #tpu.memory_space<vmem>>, vector<1x32x128xf32>
    %77 = vector.shape_cast %76 : vector<1x32x128xf32> to vector<32x128xf32>
    %cst_66 = arith.constant dense<0.000000e+00> : vector<32x32xf32>
    %78 = tpu.matmul %77, %25, %cst_66 {dimension_numbers = #tpu.dot_dimension_numbers<[1], [0], [0], [1], [0, 0, 1, 1], [], []>} : vector<32x128xf32>, vector<128x32xf32>, vector<32x32xf32> -> vector<32x32xf32>
    %c7_67 = arith.constant 7 : index
    %c0_68 = arith.constant 0 : index
    %c0_69 = arith.constant 0 : index
    %79 = vector.load %arg3[%c7_67, %c0_68, %c0_69] : memref<16x32x32xf32, #tpu.memory_space<vmem>>, vector<1x32x32xf32>
    %80 = vector.shape_cast %79 : vector<1x32x32xf32> to vector<32x32xf32>
    %cst_70 = arith.constant dense<0.000000e+00> : vector<32x32xf32>
    %81 = tpu.matmul %78, %80, %cst_70 {dimension_numbers = #tpu.dot_dimension_numbers<[1], [0], [0], [1], [0, 0, 1, 1], [], []>} : vector<32x32xf32>, vector<32x32xf32>, vector<32x32xf32> -> vector<32x32xf32>
    %82 = arith.addf %75, %81 : vector<32x32xf32>
    %c8 = arith.constant 8 : index
    %c0_71 = arith.constant 0 : index
    %c0_72 = arith.constant 0 : index
    %83 = vector.load %arg2[%c8, %c0_71, %c0_72] : memref<16x32x128xf32, #tpu.memory_space<vmem>>, vector<1x32x128xf32>
    %84 = vector.shape_cast %83 : vector<1x32x128xf32> to vector<32x128xf32>
    %cst_73 = arith.constant dense<0.000000e+00> : vector<32x32xf32>
    %85 = tpu.matmul %84, %25, %cst_73 {dimension_numbers = #tpu.dot_dimension_numbers<[1], [0], [0], [1], [0, 0, 1, 1], [], []>} : vector<32x128xf32>, vector<128x32xf32>, vector<32x32xf32> -> vector<32x32xf32>
    %c8_74 = arith.constant 8 : index
    %c0_75 = arith.constant 0 : index
    %c0_76 = arith.constant 0 : index
    %86 = vector.load %arg3[%c8_74, %c0_75, %c0_76] : memref<16x32x32xf32, #tpu.memory_space<vmem>>, vector<1x32x32xf32>
    %87 = vector.shape_cast %86 : vector<1x32x32xf32> to vector<32x32xf32>
    %cst_77 = arith.constant dense<0.000000e+00> : vector<32x32xf32>
    %88 = tpu.matmul %85, %87, %cst_77 {dimension_numbers = #tpu.dot_dimension_numbers<[1], [0], [0], [1], [0, 0, 1, 1], [], []>} : vector<32x32xf32>, vector<32x32xf32>, vector<32x32xf32> -> vector<32x32xf32>
    %89 = arith.addf %82, %88 : vector<32x32xf32>
    %c9 = arith.constant 9 : index
    %c0_78 = arith.constant 0 : index
    %c0_79 = arith.constant 0 : index
    %90 = vector.load %arg2[%c9, %c0_78, %c0_79] : memref<16x32x128xf32, #tpu.memory_space<vmem>>, vector<1x32x128xf32>
    %91 = vector.shape_cast %90 : vector<1x32x128xf32> to vector<32x128xf32>
    %cst_80 = arith.constant dense<0.000000e+00> : vector<32x32xf32>
    %92 = tpu.matmul %91, %25, %cst_80 {dimension_numbers = #tpu.dot_dimension_numbers<[1], [0], [0], [1], [0, 0, 1, 1], [], []>} : vector<32x128xf32>, vector<128x32xf32>, vector<32x32xf32> -> vector<32x32xf32>
    %c9_81 = arith.constant 9 : index
    %c0_82 = arith.constant 0 : index
    %c0_83 = arith.constant 0 : index
    %93 = vector.load %arg3[%c9_81, %c0_82, %c0_83] : memref<16x32x32xf32, #tpu.memory_space<vmem>>, vector<1x32x32xf32>
    %94 = vector.shape_cast %93 : vector<1x32x32xf32> to vector<32x32xf32>
    %cst_84 = arith.constant dense<0.000000e+00> : vector<32x32xf32>
    %95 = tpu.matmul %92, %94, %cst_84 {dimension_numbers = #tpu.dot_dimension_numbers<[1], [0], [0], [1], [0, 0, 1, 1], [], []>} : vector<32x32xf32>, vector<32x32xf32>, vector<32x32xf32> -> vector<32x32xf32>
    %96 = arith.addf %89, %95 : vector<32x32xf32>
    %c10 = arith.constant 10 : index
    %c0_85 = arith.constant 0 : index
    %c0_86 = arith.constant 0 : index
    %97 = vector.load %arg2[%c10, %c0_85, %c0_86] : memref<16x32x128xf32, #tpu.memory_space<vmem>>, vector<1x32x128xf32>
    %98 = vector.shape_cast %97 : vector<1x32x128xf32> to vector<32x128xf32>
    %cst_87 = arith.constant dense<0.000000e+00> : vector<32x32xf32>
    %99 = tpu.matmul %98, %25, %cst_87 {dimension_numbers = #tpu.dot_dimension_numbers<[1], [0], [0], [1], [0, 0, 1, 1], [], []>} : vector<32x128xf32>, vector<128x32xf32>, vector<32x32xf32> -> vector<32x32xf32>
    %c10_88 = arith.constant 10 : index
    %c0_89 = arith.constant 0 : index
    %c0_90 = arith.constant 0 : index
    %100 = vector.load %arg3[%c10_88, %c0_89, %c0_90] : memref<16x32x32xf32, #tpu.memory_space<vmem>>, vector<1x32x32xf32>
    %101 = vector.shape_cast %100 : vector<1x32x32xf32> to vector<32x32xf32>
    %cst_91 = arith.constant dense<0.000000e+00> : vector<32x32xf32>
    %102 = tpu.matmul %99, %101, %cst_91 {dimension_numbers = #tpu.dot_dimension_numbers<[1], [0], [0], [1], [0, 0, 1, 1], [], []>} : vector<32x32xf32>, vector<32x32xf32>, vector<32x32xf32> -> vector<32x32xf32>
    %103 = arith.addf %96, %102 : vector<32x32xf32>
    %c11 = arith.constant 11 : index
    %c0_92 = arith.constant 0 : index
    %c0_93 = arith.constant 0 : index
    %104 = vector.load %arg2[%c11, %c0_92, %c0_93] : memref<16x32x128xf32, #tpu.memory_space<vmem>>, vector<1x32x128xf32>
    %105 = vector.shape_cast %104 : vector<1x32x128xf32> to vector<32x128xf32>
    %cst_94 = arith.constant dense<0.000000e+00> : vector<32x32xf32>
    %106 = tpu.matmul %105, %25, %cst_94 {dimension_numbers = #tpu.dot_dimension_numbers<[1], [0], [0], [1], [0, 0, 1, 1], [], []>} : vector<32x128xf32>, vector<128x32xf32>, vector<32x32xf32> -> vector<32x32xf32>
    %c11_95 = arith.constant 11 : index
    %c0_96 = arith.constant 0 : index
    %c0_97 = arith.constant 0 : index
    %107 = vector.load %arg3[%c11_95, %c0_96, %c0_97] : memref<16x32x32xf32, #tpu.memory_space<vmem>>, vector<1x32x32xf32>
    %108 = vector.shape_cast %107 : vector<1x32x32xf32> to vector<32x32xf32>
    %cst_98 = arith.constant dense<0.000000e+00> : vector<32x32xf32>
    %109 = tpu.matmul %106, %108, %cst_98 {dimension_numbers = #tpu.dot_dimension_numbers<[1], [0], [0], [1], [0, 0, 1, 1], [], []>} : vector<32x32xf32>, vector<32x32xf32>, vector<32x32xf32> -> vector<32x32xf32>
    %110 = arith.addf %103, %109 : vector<32x32xf32>
    %c12 = arith.constant 12 : index
    %c0_99 = arith.constant 0 : index
    %c0_100 = arith.constant 0 : index
    %111 = vector.load %arg2[%c12, %c0_99, %c0_100] : memref<16x32x128xf32, #tpu.memory_space<vmem>>, vector<1x32x128xf32>
    %112 = vector.shape_cast %111 : vector<1x32x128xf32> to vector<32x128xf32>
    %cst_101 = arith.constant dense<0.000000e+00> : vector<32x32xf32>
    %113 = tpu.matmul %112, %25, %cst_101 {dimension_numbers = #tpu.dot_dimension_numbers<[1], [0], [0], [1], [0, 0, 1, 1], [], []>} : vector<32x128xf32>, vector<128x32xf32>, vector<32x32xf32> -> vector<32x32xf32>
    %c12_102 = arith.constant 12 : index
    %c0_103 = arith.constant 0 : index
    %c0_104 = arith.constant 0 : index
    %114 = vector.load %arg3[%c12_102, %c0_103, %c0_104] : memref<16x32x32xf32, #tpu.memory_space<vmem>>, vector<1x32x32xf32>
    %115 = vector.shape_cast %114 : vector<1x32x32xf32> to vector<32x32xf32>
    %cst_105 = arith.constant dense<0.000000e+00> : vector<32x32xf32>
    %116 = tpu.matmul %113, %115, %cst_105 {dimension_numbers = #tpu.dot_dimension_numbers<[1], [0], [0], [1], [0, 0, 1, 1], [], []>} : vector<32x32xf32>, vector<32x32xf32>, vector<32x32xf32> -> vector<32x32xf32>
    %117 = arith.addf %110, %116 : vector<32x32xf32>
    %c13 = arith.constant 13 : index
    %c0_106 = arith.constant 0 : index
    %c0_107 = arith.constant 0 : index
    %118 = vector.load %arg2[%c13, %c0_106, %c0_107] : memref<16x32x128xf32, #tpu.memory_space<vmem>>, vector<1x32x128xf32>
    %119 = vector.shape_cast %118 : vector<1x32x128xf32> to vector<32x128xf32>
    %cst_108 = arith.constant dense<0.000000e+00> : vector<32x32xf32>
    %120 = tpu.matmul %119, %25, %cst_108 {dimension_numbers = #tpu.dot_dimension_numbers<[1], [0], [0], [1], [0, 0, 1, 1], [], []>} : vector<32x128xf32>, vector<128x32xf32>, vector<32x32xf32> -> vector<32x32xf32>
    %c13_109 = arith.constant 13 : index
    %c0_110 = arith.constant 0 : index
    %c0_111 = arith.constant 0 : index
    %121 = vector.load %arg3[%c13_109, %c0_110, %c0_111] : memref<16x32x32xf32, #tpu.memory_space<vmem>>, vector<1x32x32xf32>
    %122 = vector.shape_cast %121 : vector<1x32x32xf32> to vector<32x32xf32>
    %cst_112 = arith.constant dense<0.000000e+00> : vector<32x32xf32>
    %123 = tpu.matmul %120, %122, %cst_112 {dimension_numbers = #tpu.dot_dimension_numbers<[1], [0], [0], [1], [0, 0, 1, 1], [], []>} : vector<32x32xf32>, vector<32x32xf32>, vector<32x32xf32> -> vector<32x32xf32>
    %124 = arith.addf %117, %123 : vector<32x32xf32>
    %c14 = arith.constant 14 : index
    %c0_113 = arith.constant 0 : index
    %c0_114 = arith.constant 0 : index
    %125 = vector.load %arg2[%c14, %c0_113, %c0_114] : memref<16x32x128xf32, #tpu.memory_space<vmem>>, vector<1x32x128xf32>
    %126 = vector.shape_cast %125 : vector<1x32x128xf32> to vector<32x128xf32>
    %cst_115 = arith.constant dense<0.000000e+00> : vector<32x32xf32>
    %127 = tpu.matmul %126, %25, %cst_115 {dimension_numbers = #tpu.dot_dimension_numbers<[1], [0], [0], [1], [0, 0, 1, 1], [], []>} : vector<32x128xf32>, vector<128x32xf32>, vector<32x32xf32> -> vector<32x32xf32>
    %c14_116 = arith.constant 14 : index
    %c0_117 = arith.constant 0 : index
    %c0_118 = arith.constant 0 : index
    %128 = vector.load %arg3[%c14_116, %c0_117, %c0_118] : memref<16x32x32xf32, #tpu.memory_space<vmem>>, vector<1x32x32xf32>
    %129 = vector.shape_cast %128 : vector<1x32x32xf32> to vector<32x32xf32>
    %cst_119 = arith.constant dense<0.000000e+00> : vector<32x32xf32>
    %130 = tpu.matmul %127, %129, %cst_119 {dimension_numbers = #tpu.dot_dimension_numbers<[1], [0], [0], [1], [0, 0, 1, 1], [], []>} : vector<32x32xf32>, vector<32x32xf32>, vector<32x32xf32> -> vector<32x32xf32>
    %131 = arith.addf %124, %130 : vector<32x32xf32>
    %c15 = arith.constant 15 : index
    %c0_120 = arith.constant 0 : index
    %c0_121 = arith.constant 0 : index
    %132 = vector.load %arg2[%c15, %c0_120, %c0_121] : memref<16x32x128xf32, #tpu.memory_space<vmem>>, vector<1x32x128xf32>
    %133 = vector.shape_cast %132 : vector<1x32x128xf32> to vector<32x128xf32>
    %cst_122 = arith.constant dense<0.000000e+00> : vector<32x32xf32>
    %134 = tpu.matmul %133, %25, %cst_122 {dimension_numbers = #tpu.dot_dimension_numbers<[1], [0], [0], [1], [0, 0, 1, 1], [], []>} : vector<32x128xf32>, vector<128x32xf32>, vector<32x32xf32> -> vector<32x32xf32>
    %c15_123 = arith.constant 15 : index
    %c0_124 = arith.constant 0 : index
    %c0_125 = arith.constant 0 : index
    %135 = vector.load %arg3[%c15_123, %c0_124, %c0_125] : memref<16x32x32xf32, #tpu.memory_space<vmem>>, vector<1x32x32xf32>
    %136 = vector.shape_cast %135 : vector<1x32x32xf32> to vector<32x32xf32>
    %cst_126 = arith.constant dense<0.000000e+00> : vector<32x32xf32>
    %137 = tpu.matmul %134, %136, %cst_126 {dimension_numbers = #tpu.dot_dimension_numbers<[1], [0], [0], [1], [0, 0, 1, 1], [], []>} : vector<32x32xf32>, vector<32x32xf32>, vector<32x32xf32> -> vector<32x32xf32>
    %138 = arith.addf %131, %137 : vector<32x32xf32>
    %cst_127 = arith.constant dense<0.000000e+00> : vector<32xf32>
    %139 = vector.multi_reduction <add>, %138, %cst_127 [0] : vector<32x32xf32> to vector<32xf32>
    %140 = vector.shape_cast %139 : vector<32xf32> to vector<1x32xf32>
    %cst_128 = arith.constant 3.125000e-02 : f32
    %141 = vector.broadcast %cst_128 : f32 to vector<1x32xf32>
    %142 = arith.mulf %140, %141 : vector<1x32xf32>
    %143 = vector.broadcast %142 : vector<1x32xf32> to vector<32x32xf32>
    %144 = arith.subf %138, %143 : vector<32x32xf32>
    %145 = arith.mulf %144, %144 : vector<32x32xf32>
    %cst_129 = arith.constant dense<0.000000e+00> : vector<32xf32>
    %146 = vector.multi_reduction <add>, %145, %cst_129 [0] : vector<32x32xf32> to vector<32xf32>
    %147 = vector.shape_cast %146 : vector<32xf32> to vector<1x32xf32>
    %cst_130 = arith.constant 3.125000e-02 : f32
    %148 = vector.broadcast %cst_130 : f32 to vector<1x32xf32>
    %149 = arith.mulf %147, %148 : vector<1x32xf32>
    %c0_131 = arith.constant 0 : index
    %c0_132 = arith.constant 0 : index
    %150 = vector.load %arg9[%c0_131, %c0_132] : memref<1x32xf32, #tpu.memory_space<vmem>>, vector<1x32xf32>
    %cst_133 = arith.constant 9.99999974E-6 : f32
    %151 = vector.broadcast %cst_133 : f32 to vector<1x32xf32>
    %152 = arith.addf %149, %151 : vector<1x32xf32>
    %153 = math.rsqrt %152 : vector<1x32xf32>
    %154 = arith.mulf %150, %153 : vector<1x32xf32>
    %155 = vector.broadcast %154 : vector<1x32xf32> to vector<32x32xf32>
    %156 = arith.mulf %144, %155 : vector<32x32xf32>
    %c0_134 = arith.constant 0 : index
    %c0_135 = arith.constant 0 : index
    %157 = vector.load %arg10[%c0_134, %c0_135] : memref<1x32xf32, #tpu.memory_space<vmem>>, vector<1x32xf32>
    %158 = vector.broadcast %157 : vector<1x32xf32> to vector<32x32xf32>
    %159 = arith.addf %156, %158 : vector<32x32xf32>
    %cst_136 = arith.constant 0.000000e+00 : f32
    %160 = vector.broadcast %cst_136 : f32 to vector<32x32xf32>
    %161 = arith.maximumf %159, %160 : vector<32x32xf32>
    %cst_137 = arith.constant 0.000000e+00 : f32
    %162 = vector.broadcast %cst_137 : f32 to vector<32x32xf32>
    %c0_138 = arith.constant 0 : index
    %c0_139 = arith.constant 0 : index
    %c0_140 = arith.constant 0 : index
    %163 = vector.load %arg4[%c0_138, %c0_139, %c0_140] : memref<9x32x32xf32, #tpu.memory_space<vmem>>, vector<1x32x32xf32>
    %164 = vector.shape_cast %163 : vector<1x32x32xf32> to vector<32x32xf32>
    %cst_141 = arith.constant dense<0.000000e+00> : vector<32x32xf32>
    %165 = tpu.matmul %164, %161, %cst_141 {dimension_numbers = #tpu.dot_dimension_numbers<[1], [0], [0], [1], [0, 0, 1, 1], [], []>} : vector<32x32xf32>, vector<32x32xf32>, vector<32x32xf32> -> vector<32x32xf32>
    %c0_142 = arith.constant 0 : index
    %c0_143 = arith.constant 0 : index
    %c0_144 = arith.constant 0 : index
    %166 = vector.load %arg5[%c0_142, %c0_143, %c0_144] : memref<9x32x32xf32, #tpu.memory_space<vmem>>, vector<1x32x32xf32>
    %167 = vector.shape_cast %166 : vector<1x32x32xf32> to vector<32x32xf32>
    %cst_145 = arith.constant dense<0.000000e+00> : vector<32x32xf32>
    %168 = tpu.matmul %165, %167, %cst_145 {dimension_numbers = #tpu.dot_dimension_numbers<[1], [0], [0], [1], [0, 0, 1, 1], [], []>} : vector<32x32xf32>, vector<32x32xf32>, vector<32x32xf32> -> vector<32x32xf32>
    %169 = arith.addf %162, %168 : vector<32x32xf32>
    %c1_146 = arith.constant 1 : index
    %c0_147 = arith.constant 0 : index
    %c0_148 = arith.constant 0 : index
    %170 = vector.load %arg4[%c1_146, %c0_147, %c0_148] : memref<9x32x32xf32, #tpu.memory_space<vmem>>, vector<1x32x32xf32>
    %171 = vector.shape_cast %170 : vector<1x32x32xf32> to vector<32x32xf32>
    %cst_149 = arith.constant dense<0.000000e+00> : vector<32x32xf32>
    %172 = tpu.matmul %171, %161, %cst_149 {dimension_numbers = #tpu.dot_dimension_numbers<[1], [0], [0], [1], [0, 0, 1, 1], [], []>} : vector<32x32xf32>, vector<32x32xf32>, vector<32x32xf32> -> vector<32x32xf32>
    %c1_150 = arith.constant 1 : index
    %c0_151 = arith.constant 0 : index
    %c0_152 = arith.constant 0 : index
    %173 = vector.load %arg5[%c1_150, %c0_151, %c0_152] : memref<9x32x32xf32, #tpu.memory_space<vmem>>, vector<1x32x32xf32>
    %174 = vector.shape_cast %173 : vector<1x32x32xf32> to vector<32x32xf32>
    %cst_153 = arith.constant dense<0.000000e+00> : vector<32x32xf32>
    %175 = tpu.matmul %172, %174, %cst_153 {dimension_numbers = #tpu.dot_dimension_numbers<[1], [0], [0], [1], [0, 0, 1, 1], [], []>} : vector<32x32xf32>, vector<32x32xf32>, vector<32x32xf32> -> vector<32x32xf32>
    %176 = arith.addf %169, %175 : vector<32x32xf32>
    %c2_154 = arith.constant 2 : index
    %c0_155 = arith.constant 0 : index
    %c0_156 = arith.constant 0 : index
    %177 = vector.load %arg4[%c2_154, %c0_155, %c0_156] : memref<9x32x32xf32, #tpu.memory_space<vmem>>, vector<1x32x32xf32>
    %178 = vector.shape_cast %177 : vector<1x32x32xf32> to vector<32x32xf32>
    %cst_157 = arith.constant dense<0.000000e+00> : vector<32x32xf32>
    %179 = tpu.matmul %178, %161, %cst_157 {dimension_numbers = #tpu.dot_dimension_numbers<[1], [0], [0], [1], [0, 0, 1, 1], [], []>} : vector<32x32xf32>, vector<32x32xf32>, vector<32x32xf32> -> vector<32x32xf32>
    %c2_158 = arith.constant 2 : index
    %c0_159 = arith.constant 0 : index
    %c0_160 = arith.constant 0 : index
    %180 = vector.load %arg5[%c2_158, %c0_159, %c0_160] : memref<9x32x32xf32, #tpu.memory_space<vmem>>, vector<1x32x32xf32>
    %181 = vector.shape_cast %180 : vector<1x32x32xf32> to vector<32x32xf32>
    %cst_161 = arith.constant dense<0.000000e+00> : vector<32x32xf32>
    %182 = tpu.matmul %179, %181, %cst_161 {dimension_numbers = #tpu.dot_dimension_numbers<[1], [0], [0], [1], [0, 0, 1, 1], [], []>} : vector<32x32xf32>, vector<32x32xf32>, vector<32x32xf32> -> vector<32x32xf32>
    %183 = arith.addf %176, %182 : vector<32x32xf32>
    %c3_162 = arith.constant 3 : index
    %c0_163 = arith.constant 0 : index
    %c0_164 = arith.constant 0 : index
    %184 = vector.load %arg4[%c3_162, %c0_163, %c0_164] : memref<9x32x32xf32, #tpu.memory_space<vmem>>, vector<1x32x32xf32>
    %185 = vector.shape_cast %184 : vector<1x32x32xf32> to vector<32x32xf32>
    %cst_165 = arith.constant dense<0.000000e+00> : vector<32x32xf32>
    %186 = tpu.matmul %185, %161, %cst_165 {dimension_numbers = #tpu.dot_dimension_numbers<[1], [0], [0], [1], [0, 0, 1, 1], [], []>} : vector<32x32xf32>, vector<32x32xf32>, vector<32x32xf32> -> vector<32x32xf32>
    %c3_166 = arith.constant 3 : index
    %c0_167 = arith.constant 0 : index
    %c0_168 = arith.constant 0 : index
    %187 = vector.load %arg5[%c3_166, %c0_167, %c0_168] : memref<9x32x32xf32, #tpu.memory_space<vmem>>, vector<1x32x32xf32>
    %188 = vector.shape_cast %187 : vector<1x32x32xf32> to vector<32x32xf32>
    %cst_169 = arith.constant dense<0.000000e+00> : vector<32x32xf32>
    %189 = tpu.matmul %186, %188, %cst_169 {dimension_numbers = #tpu.dot_dimension_numbers<[1], [0], [0], [1], [0, 0, 1, 1], [], []>} : vector<32x32xf32>, vector<32x32xf32>, vector<32x32xf32> -> vector<32x32xf32>
    %190 = arith.addf %183, %189 : vector<32x32xf32>
    %c4_170 = arith.constant 4 : index
    %c0_171 = arith.constant 0 : index
    %c0_172 = arith.constant 0 : index
    %191 = vector.load %arg4[%c4_170, %c0_171, %c0_172] : memref<9x32x32xf32, #tpu.memory_space<vmem>>, vector<1x32x32xf32>
    %192 = vector.shape_cast %191 : vector<1x32x32xf32> to vector<32x32xf32>
    %cst_173 = arith.constant dense<0.000000e+00> : vector<32x32xf32>
    %193 = tpu.matmul %192, %161, %cst_173 {dimension_numbers = #tpu.dot_dimension_numbers<[1], [0], [0], [1], [0, 0, 1, 1], [], []>} : vector<32x32xf32>, vector<32x32xf32>, vector<32x32xf32> -> vector<32x32xf32>
    %c4_174 = arith.constant 4 : index
    %c0_175 = arith.constant 0 : index
    %c0_176 = arith.constant 0 : index
    %194 = vector.load %arg5[%c4_174, %c0_175, %c0_176] : memref<9x32x32xf32, #tpu.memory_space<vmem>>, vector<1x32x32xf32>
    %195 = vector.shape_cast %194 : vector<1x32x32xf32> to vector<32x32xf32>
    %cst_177 = arith.constant dense<0.000000e+00> : vector<32x32xf32>
    %196 = tpu.matmul %193, %195, %cst_177 {dimension_numbers = #tpu.dot_dimension_numbers<[1], [0], [0], [1], [0, 0, 1, 1], [], []>} : vector<32x32xf32>, vector<32x32xf32>, vector<32x32xf32> -> vector<32x32xf32>
    %197 = arith.addf %190, %196 : vector<32x32xf32>
    %c5_178 = arith.constant 5 : index
    %c0_179 = arith.constant 0 : index
    %c0_180 = arith.constant 0 : index
    %198 = vector.load %arg4[%c5_178, %c0_179, %c0_180] : memref<9x32x32xf32, #tpu.memory_space<vmem>>, vector<1x32x32xf32>
    %199 = vector.shape_cast %198 : vector<1x32x32xf32> to vector<32x32xf32>
    %cst_181 = arith.constant dense<0.000000e+00> : vector<32x32xf32>
    %200 = tpu.matmul %199, %161, %cst_181 {dimension_numbers = #tpu.dot_dimension_numbers<[1], [0], [0], [1], [0, 0, 1, 1], [], []>} : vector<32x32xf32>, vector<32x32xf32>, vector<32x32xf32> -> vector<32x32xf32>
    %c5_182 = arith.constant 5 : index
    %c0_183 = arith.constant 0 : index
    %c0_184 = arith.constant 0 : index
    %201 = vector.load %arg5[%c5_182, %c0_183, %c0_184] : memref<9x32x32xf32, #tpu.memory_space<vmem>>, vector<1x32x32xf32>
    %202 = vector.shape_cast %201 : vector<1x32x32xf32> to vector<32x32xf32>
    %cst_185 = arith.constant dense<0.000000e+00> : vector<32x32xf32>
    %203 = tpu.matmul %200, %202, %cst_185 {dimension_numbers = #tpu.dot_dimension_numbers<[1], [0], [0], [1], [0, 0, 1, 1], [], []>} : vector<32x32xf32>, vector<32x32xf32>, vector<32x32xf32> -> vector<32x32xf32>
    %204 = arith.addf %197, %203 : vector<32x32xf32>
    %c6_186 = arith.constant 6 : index
    %c0_187 = arith.constant 0 : index
    %c0_188 = arith.constant 0 : index
    %205 = vector.load %arg4[%c6_186, %c0_187, %c0_188] : memref<9x32x32xf32, #tpu.memory_space<vmem>>, vector<1x32x32xf32>
    %206 = vector.shape_cast %205 : vector<1x32x32xf32> to vector<32x32xf32>
    %cst_189 = arith.constant dense<0.000000e+00> : vector<32x32xf32>
    %207 = tpu.matmul %206, %161, %cst_189 {dimension_numbers = #tpu.dot_dimension_numbers<[1], [0], [0], [1], [0, 0, 1, 1], [], []>} : vector<32x32xf32>, vector<32x32xf32>, vector<32x32xf32> -> vector<32x32xf32>
    %c6_190 = arith.constant 6 : index
    %c0_191 = arith.constant 0 : index
    %c0_192 = arith.constant 0 : index
    %208 = vector.load %arg5[%c6_190, %c0_191, %c0_192] : memref<9x32x32xf32, #tpu.memory_space<vmem>>, vector<1x32x32xf32>
    %209 = vector.shape_cast %208 : vector<1x32x32xf32> to vector<32x32xf32>
    %cst_193 = arith.constant dense<0.000000e+00> : vector<32x32xf32>
    %210 = tpu.matmul %207, %209, %cst_193 {dimension_numbers = #tpu.dot_dimension_numbers<[1], [0], [0], [1], [0, 0, 1, 1], [], []>} : vector<32x32xf32>, vector<32x32xf32>, vector<32x32xf32> -> vector<32x32xf32>
    %211 = arith.addf %204, %210 : vector<32x32xf32>
    %c7_194 = arith.constant 7 : index
    %c0_195 = arith.constant 0 : index
    %c0_196 = arith.constant 0 : index
    %212 = vector.load %arg4[%c7_194, %c0_195, %c0_196] : memref<9x32x32xf32, #tpu.memory_space<vmem>>, vector<1x32x32xf32>
    %213 = vector.shape_cast %212 : vector<1x32x32xf32> to vector<32x32xf32>
    %cst_197 = arith.constant dense<0.000000e+00> : vector<32x32xf32>
    %214 = tpu.matmul %213, %161, %cst_197 {dimension_numbers = #tpu.dot_dimension_numbers<[1], [0], [0], [1], [0, 0, 1, 1], [], []>} : vector<32x32xf32>, vector<32x32xf32>, vector<32x32xf32> -> vector<32x32xf32>
    %c7_198 = arith.constant 7 : index
    %c0_199 = arith.constant 0 : index
    %c0_200 = arith.constant 0 : index
    %215 = vector.load %arg5[%c7_198, %c0_199, %c0_200] : memref<9x32x32xf32, #tpu.memory_space<vmem>>, vector<1x32x32xf32>
    %216 = vector.shape_cast %215 : vector<1x32x32xf32> to vector<32x32xf32>
    %cst_201 = arith.constant dense<0.000000e+00> : vector<32x32xf32>
    %217 = tpu.matmul %214, %216, %cst_201 {dimension_numbers = #tpu.dot_dimension_numbers<[1], [0], [0], [1], [0, 0, 1, 1], [], []>} : vector<32x32xf32>, vector<32x32xf32>, vector<32x32xf32> -> vector<32x32xf32>
    %218 = arith.addf %211, %217 : vector<32x32xf32>
    %c8_202 = arith.constant 8 : index
    %c0_203 = arith.constant 0 : index
    %c0_204 = arith.constant 0 : index
    %219 = vector.load %arg4[%c8_202, %c0_203, %c0_204] : memref<9x32x32xf32, #tpu.memory_space<vmem>>, vector<1x32x32xf32>
    %220 = vector.shape_cast %219 : vector<1x32x32xf32> to vector<32x32xf32>
    %cst_205 = arith.constant dense<0.000000e+00> : vector<32x32xf32>
    %221 = tpu.matmul %220, %161, %cst_205 {dimension_numbers = #tpu.dot_dimension_numbers<[1], [0], [0], [1], [0, 0, 1, 1], [], []>} : vector<32x32xf32>, vector<32x32xf32>, vector<32x32xf32> -> vector<32x32xf32>
    %c8_206 = arith.constant 8 : index
    %c0_207 = arith.constant 0 : index
    %c0_208 = arith.constant 0 : index
    %222 = vector.load %arg5[%c8_206, %c0_207, %c0_208] : memref<9x32x32xf32, #tpu.memory_space<vmem>>, vector<1x32x32xf32>
    %223 = vector.shape_cast %222 : vector<1x32x32xf32> to vector<32x32xf32>
    %cst_209 = arith.constant dense<0.000000e+00> : vector<32x32xf32>
    %224 = tpu.matmul %221, %223, %cst_209 {dimension_numbers = #tpu.dot_dimension_numbers<[1], [0], [0], [1], [0, 0, 1, 1], [], []>} : vector<32x32xf32>, vector<32x32xf32>, vector<32x32xf32> -> vector<32x32xf32>
    %225 = arith.addf %218, %224 : vector<32x32xf32>
    %cst_210 = arith.constant dense<0.000000e+00> : vector<32xf32>
    %226 = vector.multi_reduction <add>, %225, %cst_210 [0] : vector<32x32xf32> to vector<32xf32>
    %227 = vector.shape_cast %226 : vector<32xf32> to vector<1x32xf32>
    %cst_211 = arith.constant 3.125000e-02 : f32
    %228 = vector.broadcast %cst_211 : f32 to vector<1x32xf32>
    %229 = arith.mulf %227, %228 : vector<1x32xf32>
    %230 = vector.broadcast %229 : vector<1x32xf32> to vector<32x32xf32>
    %231 = arith.subf %225, %230 : vector<32x32xf32>
    %232 = arith.mulf %231, %231 : vector<32x32xf32>
    %cst_212 = arith.constant dense<0.000000e+00> : vector<32xf32>
    %233 = vector.multi_reduction <add>, %232, %cst_212 [0] : vector<32x32xf32> to vector<32xf32>
    %234 = vector.shape_cast %233 : vector<32xf32> to vector<1x32xf32>
    %cst_213 = arith.constant 3.125000e-02 : f32
    %235 = vector.broadcast %cst_213 : f32 to vector<1x32xf32>
    %236 = arith.mulf %234, %235 : vector<1x32xf32>
    %c0_214 = arith.constant 0 : index
    %c0_215 = arith.constant 0 : index
    %237 = vector.load %arg11[%c0_214, %c0_215] : memref<1x32xf32, #tpu.memory_space<vmem>>, vector<1x32xf32>
    %cst_216 = arith.constant 9.99999974E-6 : f32
    %238 = vector.broadcast %cst_216 : f32 to vector<1x32xf32>
    %239 = arith.addf %236, %238 : vector<1x32xf32>
    %240 = math.rsqrt %239 : vector<1x32xf32>
    %241 = arith.mulf %237, %240 : vector<1x32xf32>
    %242 = vector.broadcast %241 : vector<1x32xf32> to vector<32x32xf32>
    %243 = arith.mulf %231, %242 : vector<32x32xf32>
    %c0_217 = arith.constant 0 : index
    %c0_218 = arith.constant 0 : index
    %244 = vector.load %arg12[%c0_217, %c0_218] : memref<1x32xf32, #tpu.memory_space<vmem>>, vector<1x32xf32>
    %245 = vector.broadcast %244 : vector<1x32xf32> to vector<32x32xf32>
    %246 = arith.addf %243, %245 : vector<32x32xf32>
    %cst_219 = arith.constant 0.000000e+00 : f32
    %247 = vector.broadcast %cst_219 : f32 to vector<32x32xf32>
    %248 = arith.maximumf %246, %247 : vector<32x32xf32>
    %c0_220 = arith.constant 0 : index
    %c0_221 = arith.constant 0 : index
    %249 = vector.load %arg6[%c0_220, %c0_221] : memref<32x32xf32, #tpu.memory_space<vmem>>, vector<32x32xf32>
    %cst_222 = arith.constant dense<0.000000e+00> : vector<32x32xf32>
    %250 = tpu.matmul %248, %249, %cst_222 {dimension_numbers = #tpu.dot_dimension_numbers<[1], [0], [0], [1], [0, 0, 1, 1], [], []>} : vector<32x32xf32>, vector<32x32xf32>, vector<32x32xf32> -> vector<32x32xf32>
    %cst_223 = arith.constant dense<0.000000e+00> : vector<32xf32>
    %251 = vector.multi_reduction <add>, %250, %cst_223 [0] : vector<32x32xf32> to vector<32xf32>
    %252 = vector.shape_cast %251 : vector<32xf32> to vector<1x32xf32>
    %cst_224 = arith.constant 3.125000e-02 : f32
    %253 = vector.broadcast %cst_224 : f32 to vector<1x32xf32>
    %254 = arith.mulf %252, %253 : vector<1x32xf32>
    %255 = vector.broadcast %254 : vector<1x32xf32> to vector<32x32xf32>
    %256 = arith.subf %250, %255 : vector<32x32xf32>
    %257 = arith.mulf %256, %256 : vector<32x32xf32>
    %cst_225 = arith.constant dense<0.000000e+00> : vector<32xf32>
    %258 = vector.multi_reduction <add>, %257, %cst_225 [0] : vector<32x32xf32> to vector<32xf32>
    %259 = vector.shape_cast %258 : vector<32xf32> to vector<1x32xf32>
    %cst_226 = arith.constant 3.125000e-02 : f32
    %260 = vector.broadcast %cst_226 : f32 to vector<1x32xf32>
    %261 = arith.mulf %259, %260 : vector<1x32xf32>
    %c0_227 = arith.constant 0 : index
    %c0_228 = arith.constant 0 : index
    %262 = vector.load %arg13[%c0_227, %c0_228] : memref<1x32xf32, #tpu.memory_space<vmem>>, vector<1x32xf32>
    %cst_229 = arith.constant 9.99999974E-6 : f32
    %263 = vector.broadcast %cst_229 : f32 to vector<1x32xf32>
    %264 = arith.addf %261, %263 : vector<1x32xf32>
    %265 = math.rsqrt %264 : vector<1x32xf32>
    %266 = arith.mulf %262, %265 : vector<1x32xf32>
    %267 = vector.broadcast %266 : vector<1x32xf32> to vector<32x32xf32>
    %268 = arith.mulf %256, %267 : vector<32x32xf32>
    %c0_230 = arith.constant 0 : index
    %c0_231 = arith.constant 0 : index
    %269 = vector.load %arg14[%c0_230, %c0_231] : memref<1x32xf32, #tpu.memory_space<vmem>>, vector<1x32xf32>
    %270 = vector.broadcast %269 : vector<1x32xf32> to vector<32x32xf32>
    %271 = arith.addf %268, %270 : vector<32x32xf32>
    %cst_232 = arith.constant 0.000000e+00 : f32
    %272 = vector.broadcast %cst_232 : f32 to vector<32x32xf32>
    %273 = arith.maximumf %271, %272 : vector<32x32xf32>
    %274 = arith.addf %161, %273 : vector<32x32xf32>
    %cst_233 = arith.constant dense<0.000000e+00> : vector<32xf32>
    %275 = vector.multi_reduction <add>, %274, %cst_233 [0] : vector<32x32xf32> to vector<32xf32>
    %276 = vector.shape_cast %275 : vector<32xf32> to vector<1x32xf32>
    %cst_234 = arith.constant 3.125000e-02 : f32
    %277 = vector.broadcast %cst_234 : f32 to vector<1x32xf32>
    %278 = arith.mulf %276, %277 : vector<1x32xf32>
    %279 = vector.broadcast %278 : vector<1x32xf32> to vector<32x32xf32>
    %280 = arith.subf %274, %279 : vector<32x32xf32>
    %281 = arith.mulf %280, %280 : vector<32x32xf32>
    %cst_235 = arith.constant dense<0.000000e+00> : vector<32xf32>
    %282 = vector.multi_reduction <add>, %281, %cst_235 [0] : vector<32x32xf32> to vector<32xf32>
    %283 = vector.shape_cast %282 : vector<32xf32> to vector<1x32xf32>
    %cst_236 = arith.constant 3.125000e-02 : f32
    %284 = vector.broadcast %cst_236 : f32 to vector<1x32xf32>
    %285 = arith.mulf %283, %284 : vector<1x32xf32>
    %c0_237 = arith.constant 0 : index
    %c0_238 = arith.constant 0 : index
    %286 = vector.load %arg15[%c0_237, %c0_238] : memref<1x32xf32, #tpu.memory_space<vmem>>, vector<1x32xf32>
    %cst_239 = arith.constant 9.99999974E-6 : f32
    %287 = vector.broadcast %cst_239 : f32 to vector<1x32xf32>
    %288 = arith.addf %285, %287 : vector<1x32xf32>
    %289 = math.rsqrt %288 : vector<1x32xf32>
    %290 = arith.mulf %286, %289 : vector<1x32xf32>
    %291 = vector.broadcast %290 : vector<1x32xf32> to vector<32x32xf32>
    %292 = arith.mulf %280, %291 : vector<32x32xf32>
    %c0_240 = arith.constant 0 : index
    %c0_241 = arith.constant 0 : index
    %293 = vector.load %arg16[%c0_240, %c0_241] : memref<1x32xf32, #tpu.memory_space<vmem>>, vector<1x32xf32>
    %294 = vector.broadcast %293 : vector<1x32xf32> to vector<32x32xf32>
    %295 = arith.addf %292, %294 : vector<32x32xf32>
    %c0_242 = arith.constant 0 : index
    %c0_243 = arith.constant 0 : index
    %296 = vector.load %arg17[%c0_242, %c0_243] : memref<32x32xf32, #tpu.memory_space<vmem>>, vector<32x32xf32>
    tpu.vector_store %arg17[%c0_242, %c0_243], %295 {strides = array<i32>} : memref<32x32xf32, #tpu.memory_space<vmem>>, vector<32x32xf32>,
    return
  }
}

</mosaic_0001>

<bundles_post_ra>
// kernel: encoder_forward.1
= control target key start
LH: loop header
LB: loop body
LE: loop exit
PB: predicated region body
PF: predicated region fallthrough
CT: control target
= control target key end

     0   :  { %s10354_s0 = inlined_call_operand.vmem [shape: f32[128,64], index: 0, kind: input, shape index: {}]   ;;  %s10355_s1 = inlined_call_operand.vmem [shape: f32[64,32], index: 1, kind: input, shape index: {}]   ;;  %s10356_s2 = inlined_call_operand.vmem [shape: f32[16,32,128], index: 2, kind: input, shape index: {}]   ;;  %s10357_s3 = inlined_call_operand.vmem [shape: f32[16,32,32], index: 3, kind: input, shape index: {}]   ;;  %s10358_s4 = inlined_call_operand.vmem [shape: f32[9,32,32], index: 4, kind: input, shape index: {}]   ;;  %s10359_s5 = inlined_call_operand.vmem [shape: f32[9,32,32], index: 5, kind: input, shape index: {}]   ;;  %s10360_s6 = inlined_call_operand.vmem [shape: f32[32,32], index: 6, kind: input, shape index: {}]   ;;  %s10361_s7 = inlined_call_operand.vmem [shape: f32[1,32], index: 7, kind: input, shape index: {}]   ;;  %s10362_s8 = inlined_call_operand.vmem [shape: f32[1,32], index: 8, kind: input, shape index: {}]   ;;  %s10363_s9 = inlined_call_operand.vmem [shape: f32[1,32], index: 9, kind: input, shape index: {}]   ;;  %s10364_s10 = inlined_call_operand.vmem [shape: f32[1,32], index: 10, kind: input, shape index: {}]   ;;  %s10365_s11 = inlined_call_operand.vmem [shape: f32[1,32], index: 11, kind: input, shape index: {}]   ;;  %s10366_s12 = inlined_call_operand.vmem [shape: f32[1,32], index: 12, kind: input, shape index: {}]   ;;  %s10367_s13 = inlined_call_operand.vmem [shape: f32[1,32], index: 13, kind: input, shape index: {}]   ;;  %s10368_s14 = inlined_call_operand.vmem [shape: f32[1,32], index: 14, kind: input, shape index: {}]   ;;  %s10369_s15 = inlined_call_operand.vmem [shape: f32[1,32], index: 15, kind: input, shape index: {}]   ;;  %s10370_s16 = inlined_call_operand.vmem [shape: f32[1,32], index: 16, kind: input, shape index: {}]   ;;  %s10371_s17 = inlined_call_operand.hbm [shape: f32[32,32], index: 17, kind: output, shape index: {}]  }
   0x1   :  { %10374 = sst [smem:[#allocation5_spill]] %s10354_s0 }
   0x2   :  { %10375 = sst [smem:[#allocation6_spill]] %s10355_s1 }
   0x3   :  { %s10376_s26 = sld [smem:[#allocation6_spill]]  ;;  %vm81_vm0 = vcmask 523264   ;;  %s10377_s24 = sld [smem:[#allocation5_spill]] }
   0x9   :  { %v73_v0 = vld [vmem:[%s10376_s26] sm:$0xff]  ;;  %v74_v1 = vld [vmem:[%s10376_s26 + $0x8] sm:$0xff]  ;;  %v75_v2 = vld [vmem:[%s10376_s26 + $0x10] sm:$0xff] }
   0xa   :  { %v7925_v3 = vpack.c.bf16 %v74_v1, %v73_v0  ;;  %v76_v4 = vld [vmem:[%s10376_s26 + $0x18] sm:$0xff]  ;;  %v77_v6 = vld [vmem:[%s10376_s26 + $0x20] sm:$0xff]  ;;  %v78_v7 = vld [vmem:[%s10376_s26 + $0x28] sm:$0xff] }
   0xb   :  { %v7929_v5 = vpack.c.bf16 %v76_v4, %v75_v2  ;;  %v57_v8 = vld [vmem:[%s10377_s24] sm:$0xff]  ;;  %v7933_v9 = vpack.c.bf16 %v78_v7, %v77_v6  ;;  %v79_v10 = vld [vmem:[%s10376_s26 + $0x30] sm:$0xff]  ;;  %v80_v11 = vld [vmem:[%s10376_s26 + $0x38] sm:$0xff] }
   0xc   :  { %7926 = vmatprep.subr.bf16.mxu0 %v7925_v3  ;;  %6803 = vmatprep.mubr.msk.f32.mxu0 %vm81_vm0, %v57_v8 }
   0xd   :  { %7928 = vmatpush3.bf16.msra.mxu0 %v7925_v3 }
   0xe   :  { %7930 = vmatprep.subr.bf16.mxu0 %v7929_v5 }
  0x11   :  { %7932 = vmatpush3.bf16.msra.mxu0 %v7929_v5 }
  0x12   :  { %22 = vsyncpa [#allocation3], 0  ;;  %7934 = vmatprep.subr.bf16.mxu0 %v7933_v9  ;;  %v7937_v12 = vpack.c.bf16 %v80_v11, %v79_v10  ;;  %v58_v13 = vld [vmem:[%s10377_s24 + $0x8] sm:$0xff]  ;;  %v59_v14 = vld [vmem:[%s10377_s24 + $0x10] sm:$0xff]  ;;  %vm275_vm1 = vcmask 261120  }
  0x13   :  { %v60_v15 = vld [vmem:[%s10377_s24 + $0x18] sm:$0xff]  ;;  %v61_v16 = vld [vmem:[%s10377_s24 + $0x20] sm:$0xff]  ;;  %v62_v17 = vld [vmem:[%s10377_s24 + $0x28] sm:$0xff] }
  0x14   :  { %v63_v18 = vld [vmem:[%s10377_s24 + $0x30] sm:$0xff]  ;;  %v64_v19 = vld [vmem:[%s10377_s24 + $0x38] sm:$0xff]  ;;  %v65_v20 = vld [vmem:[%s10377_s24 + $0x40] sm:$0xff] }
  0x15   :  { %7936 = vmatpush3.bf16.msra.mxu0 %v7933_v9  ;;  %v66_v21 = vld [vmem:[%s10377_s24 + $0x48] sm:$0xff]  ;;  %v67_v22 = vld [vmem:[%s10377_s24 + $0x50] sm:$0xff]  ;;  %v68_v23 = vld [vmem:[%s10377_s24 + $0x58] sm:$0xff] }
  0x16   :  { %7938 = vmatprep.subr.bf16.mxu0 %v7937_v12  ;;  %v69_v24 = vld [vmem:[%s10377_s24 + $0x60] sm:$0xff]  ;;  %v70_v25 = vld [vmem:[%s10377_s24 + $0x68] sm:$0xff]  ;;  %v71_v26 = vld [vmem:[%s10377_s24 + $0x70] sm:$0xff] }
  0x17   :  { %v72_v27 = vld [vmem:[%s10377_s24 + $0x78] sm:$0xff] }
  0x19   :  { %7940 = vmatpush3.bf16.msra.mxu0 %v7937_v12  ;;  %v5835_v12 = vld [vmem:[%s10356_s2 + $0x20] sm:$0xff] }
  0x1c   :  { %6804 = vmatmul.mubr.msk.f32.vlgmr.msra.gmra.mrb[0].mxu0 %vm81_vm0, %v58_v13 }
  0x1d   :  { %6806 = vmatprep.mubr.msk.f32.mxu0 %vm81_vm0, %v59_v14 }
  0x20   :  { %6807 = vmatmul.mubr.msk.f32.gmra.mrb[2].mxu0 %vm81_vm0, %v60_v15 }
  0x21   :  { %6809 = vmatprep.mubr.msk.f32.mxu0 %vm81_vm0, %v61_v16 }
  0x24   :  { %6810 = vmatmul.mubr.msk.f32.gmra.mrb[4].mxu0 %vm81_vm0, %v62_v17  ;;  %v449_v17 = vld [vmem:[%s10356_s2] sm:$0xff] }
  0x25   :  { %6812 = vmatprep.mubr.msk.f32.mxu0 %vm81_vm0, %v63_v18  ;;  %6859 = vmatprep.mubr.f32.mxu1 %v449_v17 }
  0x28   :  { %6813 = vmatmul.mubr.msk.f32.gmra.mrb[6].mxu0 %vm81_vm0, %v64_v19 }
  0x29   :  { %6815 = vmatprep.mubr.msk.f32.mxu0 %vm81_vm0, %v65_v20 }
  0x2c   :  { %6816 = vmatmul.mubr.msk.f32.gmra.mrb[8].mxu0 %vm81_vm0, %v66_v21 }
  0x2d   :  { %6818 = vmatprep.mubr.msk.f32.mxu0 %vm81_vm0, %v67_v22 }
  0x30   :  { %6819 = vmatmul.mubr.msk.f32.gmra.mrb[10].mxu0 %vm81_vm0, %v68_v23 }
  0x31   :  { %6821 = vmatprep.mubr.msk.f32.mxu0 %vm81_vm0, %v69_v24 }
  0x34   :  { %6822 = vmatmul.mubr.msk.f32.gmra.mrb[12].mxu0 %vm81_vm0, %v70_v25 }
  0x35   :  { %6824 = vmatprep.mubr.msk.f32.mxu0 %vm81_vm0, %v71_v26 }
  0x38   :  { %6825 = vmatmul.mubr.msk.f32.gmra.mrb[14].mxu0 %vm81_vm0, %v72_v27 }
  0x39   :  { %6897 = vmatprep.mubr.f32.mxu0 %v5835_v12 }
  0xef   :  { %v6805_v28 = vpop.f32.mrb[0].mxu0 }
  0xf0   :  { %v277_v29 = vsel %vm275_vm1, %v6805_v28, 0.0  ;;  %v196_v30 = vpop.f32.mrb[1].mxu0 }
  0xf1   :  { %v276_v31 = vsel %vm275_vm1, %v196_v30, 0.0 }
  0xf2   :  { %v278_v32 = vadd.f32 %v277_v29, %v276_v31 }
  0xf3   :  { %v6808_v33 = vpop.f32.mrb[2].mxu0 }
  0xf4   :  { %v206_v34 = vpop.f32.mrb[3].mxu0  ;;  %v281_v37 = vsel %vm275_vm1, %v6808_v33, 0.0 }
  0xf5   :  { %v279_v35 = vsel %vm275_vm1, %v206_v34, 0.0 }
  0xf6   :  { %v280_v36 = vadd.f32 %v279_v35, %v278_v32 }
  0xf7   :  { %v6811_v38 = vpop.f32.mrb[4].mxu0 }
  0xf8   :  { %v216_v39 = vpop.f32.mrb[5].mxu0  ;;  %v282_v40 = vadd.f32 %v281_v37, %v280_v36  ;;  %v285_v43 = vsel %vm275_vm1, %v6811_v38, 0.0 }
  0xf9   :  { %v283_v41 = vsel %vm275_vm1, %v216_v39, 0.0 }
  0xfa   :  { %v284_v42 = vadd.f32 %v283_v41, %v282_v40 }
  0xfb   :  { %v6814_v44 = vpop.f32.mrb[6].mxu0 }
  0xfc   :  { %v226_v45 = vpop.f32.mrb[7].mxu0  ;;  %v286_v46 = vadd.f32 %v285_v43, %v284_v42  ;;  %v289_v49 = vsel %vm275_vm1, %v6814_v44, 0.0 }
  0xfd   :  { %v287_v47 = vsel %vm275_vm1, %v226_v45, 0.0 }
  0xfe   :  { %v288_v48 = vadd.f32 %v287_v47, %v286_v46 }
  0xff   :  { %v6817_v50 = vpop.f32.mrb[8].mxu0 }
 0x100   :  { %v236_v51 = vpop.f32.mrb[9].mxu0  ;;  %v290_v52 = vadd.f32 %v289_v49, %v288_v48  ;;  %v293_v55 = vsel %vm275_vm1, %v6817_v50, 0.0 }
 0x101   :  { %v291_v53 = vsel %vm275_vm1, %v236_v51, 0.0 }
 0x102   :  { %v292_v54 = vadd.f32 %v291_v53, %v290_v52 }
 0x103   :  { %v6820_v56 = vpop.f32.mrb[10].mxu0 }
 0x104   :  { %v246_v57 = vpop.f32.mrb[11].mxu0  ;;  %v294_v58 = vadd.f32 %v293_v55, %v292_v54  ;;  %v297_v61 = vsel %vm275_vm1, %v6820_v56, 0.0 }
 0x105   :  { %v295_v59 = vsel %vm275_vm1, %v246_v57, 0.0 }
 0x106   :  { %v296_v60 = vadd.f32 %v295_v59, %v294_v58 }
 0x107   :  { %v6823_v62 = vpop.f32.mrb[12].mxu0 }
 0x108   :  { %v256_v63 = vpop.f32.mrb[13].mxu0  ;;  %v298_v0 = vadd.f32 %v297_v61, %v296_v60  ;;  %v301_v3 = vsel %vm275_vm1, %v6823_v62, 0.0 }
 0x109   :  { %v299_v1 = vsel %vm275_vm1, %v256_v63, 0.0 }
 0x10a   :  { %v300_v2 = vadd.f32 %v299_v1, %v298_v0 }
 0x10b   :  { %v6826_v4 = vpop.f32.mrb[14].mxu0 }
 0x10c   :  { %v266_v5 = vpop.f32.mrb[15].mxu0  ;;  %v302_v6 = vadd.f32 %v301_v3, %v300_v2  ;;  %v305_v9 = vsel %vm275_vm1, %v6826_v4, 0.0 }
 0x10d   :  { %v303_v7 = vsel %vm275_vm1, %v266_v5, 0.0 }
 0x10e   :  { %v304_v8 = vadd.f32 %v303_v7, %v302_v6 }
 0x110   :  { %v306_v10 = vadd.f32 %v305_v9, %v304_v8 }
 0x112   :  { %v307_v11 = vrot.slane %v306_v10, 4 }
 0x114   :  { %v308_v13 = vadd.f32 %v307_v11, %v306_v10 }
 0x116   :  { %v309_v14 = vrot.slane %v308_v13, 2 }
 0x118   :  { %v310_v15 = vadd.f32 %v309_v14, %v308_v13 }
 0x11a   :  { %v311_v16 = vrot.slane %v310_v15, 1 }
 0x11c   :  { %v312_v18 = vadd.f32 %v311_v16, %v310_v15 }
 0x11e   :  { %v313_v19 = vmul.f32 0.0078125, %v312_v18 }
 0x120   :  { %v9065_v20 = vsub.f32 %v196_v30, %v313_v19  ;;  %v9067_v21 = vsub.f32 %v6805_v28, %v313_v19  ;;  %v9069_v22 = vsub.f32 %v206_v34, %v313_v19  ;;  %v9071_v23 = vsub.f32 %v6808_v33, %v313_v19 }
 0x121   :  { %v9073_v24 = vsub.f32 %v216_v39, %v313_v19  ;;  %v9075_v25 = vsub.f32 %v6811_v38, %v313_v19  ;;  %v9077_v26 = vsub.f32 %v226_v45, %v313_v19  ;;  %v9079_v27 = vsub.f32 %v6814_v44, %v313_v19 }
 0x122   :  { %v9081_v29 = vsub.f32 %v236_v51, %v313_v19  ;;  %v9083_v31 = vsub.f32 %v6817_v50, %v313_v19  ;;  %v9085_v30 = vsub.f32 %v246_v57, %v313_v19  ;;  %v9087_v28 = vsub.f32 %v6820_v56, %v313_v19 }
 0x123   :  { %v9089_v32 = vsub.f32 %v256_v63, %v313_v19  ;;  %v9091_v33 = vsub.f32 %v6823_v62, %v313_v19  ;;  %v9093_v34 = vsub.f32 %v266_v5, %v313_v19  ;;  %v9095_v35 = vsub.f32 %v6826_v4, %v313_v19 }
 0x124   :  { %v330_v36 = vmul.f32 %v9065_v20, %v9065_v20  ;;  %v331_v37 = vmul.f32 %v9067_v21, %v9067_v21  ;;  %v332_v38 = vmul.f32 %v9069_v22, %v9069_v22  ;;  %v333_v39 = vmul.f32 %v9071_v23, %v9071_v23 }
 0x125   :  { %v334_v43 = vmul.f32 %v9073_v24, %v9073_v24  ;;  %v335_v46 = vmul.f32 %v9075_v25, %v9075_v25  ;;  %v336_v49 = vmul.f32 %v9077_v26, %v9077_v26  ;;  %v337_v52 = vmul.f32 %v9079_v27, %v9079_v27 }
 0x126   :  { %v346_v40 = vsel %vm275_vm1, %v330_v36, 0.0  ;;  %v347_v41 = vsel %vm275_vm1, %v331_v37, 0.0  ;;  %v349_v44 = vsel %vm275_vm1, %v332_v38, 0.0  ;;  %v351_v47 = vsel %vm275_vm1, %v333_v39, 0.0 }
 0x127   :  { %v348_v42 = vadd.f32 %v347_v41, %v346_v40  ;;  %v353_v50 = vsel %vm275_vm1, %v334_v43, 0.0  ;;  %v355_v53 = vsel %vm275_vm1, %v335_v46, 0.0  ;;  %v338_v55 = vmul.f32 %v9081_v29, %v9081_v29 }
 0x128   :  { %v357_v56 = vsel %vm275_vm1, %v336_v49, 0.0  ;;  %v339_v58 = vmul.f32 %v9083_v31, %v9083_v31  ;;  %v359_v59 = vsel %vm275_vm1, %v337_v52, 0.0  ;;  %v340_v61 = vmul.f32 %v9085_v30, %v9085_v30 }
 0x129   :  { %v350_v45 = vadd.f32 %v349_v44, %v348_v42  ;;  %v361_v62 = vsel %vm275_vm1, %v338_v55, 0.0  ;;  %v341_v0 = vmul.f32 %v9087_v28, %v9087_v28  ;;  %v342_v3 = vmul.f32 %v9089_v32, %v9089_v32 }
 0x12a   :  { %v363_v1 = vsel %vm275_vm1, %v339_v58, 0.0  ;;  %v365_v4 = vsel %vm275_vm1, %v340_v61, 0.0  ;;  %v343_v6 = vmul.f32 %v9091_v33, %v9091_v33  ;;  %v344_v9 = vmul.f32 %v9093_v34, %v9093_v34  ;;  %v5834_v58 = vld [vmem:[%s10362_s8] ss:$0 sm:$0xff] }
 0x12b   :  { %v352_v48 = vadd.f32 %v351_v47, %v350_v45  ;;  %v367_v7 = vsel %vm275_vm1, %v341_v0, 0.0  ;;  %v369_v10 = vsel %vm275_vm1, %v342_v3, 0.0  ;;  %v345_v12 = vmul.f32 %v9095_v35, %v9095_v35  ;;  %v384_v45 = vld [vmem:[%s10361_s7] sm:$0x1] }
 0x12c   :  { %v371_v13 = vsel %vm275_vm1, %v343_v6, 0.0  ;;  %v373_v15 = vsel %vm275_vm1, %v344_v9, 0.0  ;;  %v389_v43 = vlaneseq }
 0x12d   :  { %v354_v51 = vadd.f32 %v353_v50, %v352_v48  ;;  %v375_v17 = vsel %vm275_vm1, %v345_v12, 0.0 }
 0x12e   :  { %v390_v44 = vshrl.u32 %v389_v43, 7  ;;  %v5836_v43 = vld [vmem:[%s10356_s2 + $0x28] sm:$0xff] }
 0x12f   :  { %v356_v54 = vadd.f32 %v355_v53, %v354_v51 }
 0x130   :  { %v9148_v46 = vsub.s32 0, %v390_v44  ;;  %v450_v44 = vld [vmem:[%s10356_s2 + $0x8] sm:$0xff] }
 0x131   :  { %v358_v57 = vadd.f32 %v357_v56, %v356_v54 }
 0x133   :  { %v360_v60 = vadd.f32 %v359_v59, %v358_v57 }
 0x135   :  { %v362_v63 = vadd.f32 %v361_v62, %v360_v60 }
 0x137   :  { %v364_v2 = vadd.f32 %v363_v1, %v362_v63 }
 0x139   :  { %v366_v5 = vadd.f32 %v365_v4, %v364_v2 }
 0x13b   :  { %v368_v8 = vadd.f32 %v367_v7, %v366_v5 }
 0x13d   :  { %v370_v11 = vadd.f32 %v369_v10, %v368_v8 }
 0x13f   :  { %v372_v14 = vadd.f32 %v371_v13, %v370_v11 }
 0x141   :  { %v374_v16 = vadd.f32 %v373_v15, %v372_v14 }
 0x143   :  { %v376_v18 = vadd.f32 %v375_v17, %v374_v16 }
 0x145   :  { %v377_v19 = vrot.slane %v376_v18, 4 }
 0x147   :  { %v378_v36 = vadd.f32 %v377_v19, %v376_v18 }
 0x149   :  { %v379_v37 = vrot.slane %v378_v36, 2 }
 0x14b   :  { %v380_v38 = vadd.f32 %v379_v37, %v378_v36 }
 0x14d   :  { %v381_v39 = vrot.slane %v380_v38, 1 }
 0x14f   :  { %v382_v40 = vadd.f32 %v381_v39, %v380_v38 }
 0x151   :  { %v383_v41 = vmul.f32 0.0078125, %v382_v40 }
 0x153   :  { %v385_v42 = vadd.f32 1e-05, %v383_v41 }
 0x155   :  { %8828 = vrsqrt.f32 %v385_v42 }
 0x15f   :  { %v8829_v47 = vpop.eup %8828 }
 0x160   :  { %v387_v48 = vmul.f32 %v8829_v47, %v384_v45  ;;  %v5837_v45 = vld [vmem:[%s10356_s2 + $0x30] sm:$0xff] }
 0x161   :  { %v451_v47 = vld [vmem:[%s10356_s2 + $0x10] sm:$0xff] }
 0x162   :  { %v392_v49 = vrot.slane %v387_v48, %v9148_v46  ;;  %v5838_v48 = vld [vmem:[%s10356_s2 + $0x38] sm:$0xff] }
 0x164   :  { %v394_v50 = vmul.f32 %v392_v49, %v9065_v20  ;;  %v395_v51 = vmul.f32 %v392_v49, %v9067_v21  ;;  %v396_v52 = vmul.f32 %v392_v49, %v9069_v22  ;;  %v397_v53 = vmul.f32 %v392_v49, %v9071_v23 }
 0x165   :  { %v398_v54 = vmul.f32 %v392_v49, %v9073_v24  ;;  %v399_v55 = vmul.f32 %v392_v49, %v9075_v25  ;;  %v400_v56 = vmul.f32 %v392_v49, %v9077_v26  ;;  %v401_v57 = vmul.f32 %v392_v49, %v9079_v27 }
 0x166   :  { %v402_v20 = vmul.f32 %v392_v49, %v9081_v29  ;;  %v403_v21 = vmul.f32 %v392_v49, %v9083_v31  ;;  %v404_v22 = vmul.f32 %v392_v49, %v9085_v30  ;;  %v405_v23 = vmul.f32 %v392_v49, %v9087_v28 }
 0x167   :  { %v406_v24 = vmul.f32 %v392_v49, %v9089_v32  ;;  %v407_v25 = vmul.f32 %v392_v49, %v9091_v33  ;;  %v408_v26 = vmul.f32 %v392_v49, %v9093_v34  ;;  %v409_v27 = vmul.f32 %v392_v49, %v9095_v35  ;;  %v452_v49 = vld [vmem:[%s10356_s2 + $0x18] sm:$0xff] }
 0x168   :  { %v417_v59 = vadd.f32 %v5834_v58, %v394_v50  ;;  %v418_v60 = vadd.f32 %v5834_v58, %v395_v51  ;;  %v419_v61 = vadd.f32 %v5834_v58, %v396_v52  ;;  %v420_v62 = vadd.f32 %v5834_v58, %v397_v53  ;;  %v5851_v50 = vld [vmem:[%s10356_s2 + $0x40] sm:$0xff]  ;;  %v5852_v51 = vld [vmem:[%s10356_s2 + $0x48] sm:$0xff]  ;;  %v5853_v52 = vld [vmem:[%s10356_s2 + $0x50] sm:$0xff] }
 0x169   :  { %v421_v63 = vadd.f32 %v5834_v58, %v398_v54  ;;  %v422_v29 = vadd.f32 %v5834_v58, %v399_v55  ;;  %v423_v0 = vadd.f32 %v5834_v58, %v400_v56  ;;  %v424_v31 = vadd.f32 %v5834_v58, %v401_v57  ;;  %v5854_v53 = vld [vmem:[%s10356_s2 + $0x58] sm:$0xff]  ;;  %v5875_v54 = vld [vmem:[%s10356_s2 + $0x80] sm:$0xff]  ;;  %v5876_v55 = vld [vmem:[%s10356_s2 + $0x88] sm:$0xff] }
 0x16a   :  { %v425_v1 = vadd.f32 %v5834_v58, %v402_v20  ;;  %v426_v30 = vadd.f32 %v5834_v58, %v403_v21  ;;  %v427_v2 = vadd.f32 %v5834_v58, %v404_v22  ;;  %v428_v28 = vadd.f32 %v5834_v58, %v405_v23  ;;  %v5877_v56 = vld [vmem:[%s10356_s2 + $0x90] sm:$0xff]  ;;  %v5878_v57 = vld [vmem:[%s10356_s2 + $0x98] sm:$0xff]  ;;  %v5839_v20 = vld [vmem:[%s10357_s3 + $0x20] sm:$0xff] }
 0x16b   :  { %v429_v3 = vadd.f32 %v5834_v58, %v406_v24  ;;  %v430_v32 = vadd.f32 %v5834_v58, %v407_v25  ;;  %v431_v4 = vadd.f32 %v5834_v58, %v408_v26  ;;  %v432_v33 = vadd.f32 %v5834_v58, %v409_v27  ;;  %v5899_v58 = vld [vmem:[%s10356_s2 + $0xc0] sm:$0xff]  ;;  %v5840_v21 = vld [vmem:[%s10357_s3 + $0x28] sm:$0xff]  ;;  %v5841_v23 = vld [vmem:[%s10357_s3 + $0x30] sm:$0xff] }
 0x16c   :  { %v433_v5 = vmax.f32 %v417_v59, 0.0  ;;  %v434_v34 = vmax.f32 %v418_v60, 0.0  ;;  %v435_v6 = vmax.f32 %v419_v61, 0.0  ;;  %v436_v35 = vmax.f32 %v420_v62, 0.0  ;;  %v5842_v24 = vld [vmem:[%s10357_s3 + $0x38] sm:$0xff]  ;;  %v538_v26 = vld [vmem:[%s10357_s3] sm:$0xff] }
 0x16d   :  { %v437_v7 = vmax.f32 %v421_v63, 0.0  ;;  %v438_v8 = vmax.f32 %v422_v29, 0.0  ;;  %v439_v9 = vmax.f32 %v423_v0, 0.0  ;;  %v440_v10 = vmax.f32 %v424_v31, 0.0  ;;  %v539_v27 = vld [vmem:[%s10357_s3 + $0x8] sm:$0xff]  ;;  %v5901_v61 = vld [vmem:[%s10356_s2 + $0xd0] sm:$0xff] }
 0x16e   :  { %v441_v11 = vmax.f32 %v425_v1, 0.0  ;;  %v442_v12 = vmax.f32 %v426_v30, 0.0  ;;  %v443_v13 = vmax.f32 %v427_v2, 0.0  ;;  %v444_v14 = vmax.f32 %v428_v28, 0.0  ;;  %v5900_v60 = vld [vmem:[%s10356_s2 + $0xc8] sm:$0xff]  ;;  %v5902_v62 = vld [vmem:[%s10356_s2 + $0xd8] sm:$0xff] }
 0x16f   :  { %v445_v15 = vmax.f32 %v429_v3, 0.0  ;;  %v446_v16 = vmax.f32 %v430_v32, 0.0  ;;  %v447_v17 = vmax.f32 %v431_v4, 0.0  ;;  %v448_v18 = vmax.f32 %v432_v33, 0.0  ;;  %v5911_v63 = vld [vmem:[%s10356_s2 + $0xe0] sm:$0xff]  ;;  %v5912_v29 = vld [vmem:[%s10356_s2 + $0xe8] sm:$0xff] }
 0x170   :  { %v9170_v19 = vpack.c.bf16 %v434_v34, %v433_v5  ;;  %v9172_v36 = vpack.c.bf16 %v436_v35, %v435_v6  ;;  %v9174_v37 = vpack.c.bf16 %v438_v8, %v437_v7  ;;  %v9176_v38 = vpack.c.bf16 %v440_v10, %v439_v9  ;;  %v5913_v0 = vld [vmem:[%s10356_s2 + $0xf0] sm:$0xff]  ;;  %v5914_v31 = vld [vmem:[%s10356_s2 + $0xf8] sm:$0xff]  ;;  %v5935_v1 = vld [vmem:[%s10356_s2 + $0x120] sm:$0xff] }
 0x171   :  { %v9178_v39 = vpack.c.bf16 %v442_v12, %v441_v11  ;;  %v9180_v40 = vpack.c.bf16 %v444_v14, %v443_v13  ;;  %v9182_v41 = vpack.c.bf16 %v446_v16, %v445_v15  ;;  %v9184_v42 = vpack.c.bf16 %v448_v18, %v447_v17  ;;  %v5936_v30 = vld [vmem:[%s10356_s2 + $0x128] sm:$0xff]  ;;  %v5937_v2 = vld [vmem:[%s10356_s2 + $0x130] sm:$0xff]  ;;  %v5938_v28 = vld [vmem:[%s10356_s2 + $0x138] sm:$0xff] }
 0x172   :  { %7942 = vmatprep.subr.bf16.mxu1 %v9170_v19  ;;  %7974 = vmatprep.subr.bf16.mxu0 %v9170_v19  ;;  %v8005_v22 = vpack.c.bf16 %v5840_v21, %v5839_v20  ;;  %v8009_v25 = vpack.c.bf16 %v5842_v24, %v5841_v23  ;;  %v9324_v59 = vpack.c.bf16 %v539_v27, %v538_v26  ;;  %v5947_v3 = vld [vmem:[%s10356_s2 + $0x140] sm:$0xff]  ;;  %v5948_v32 = vld [vmem:[%s10356_s2 + $0x148] sm:$0xff]  ;;  %v5949_v4 = vld [vmem:[%s10356_s2 + $0x150] sm:$0xff] }
 0x173   :  { %7944 = vmatpush3.bf16.msra.mxu1 %v9170_v19  ;;  %7976 = vmatpush3.bf16.msra.mxu0 %v9170_v19  ;;  %v5950_v33 = vld [vmem:[%s10356_s2 + $0x158] sm:$0xff]  ;;  %v5971_v5 = vld [vmem:[%s10356_s2 + $0x180] sm:$0xff]  ;;  %v540_v34 = vld [vmem:[%s10357_s3 + $0x10] sm:$0xff] }
 0x174   :  { %7946 = vmatprep.subr.bf16.mxu1 %v9172_v36  ;;  %7978 = vmatprep.subr.bf16.mxu0 %v9172_v36  ;;  %v541_v6 = vld [vmem:[%s10357_s3 + $0x18] sm:$0xff]  ;;  %v5855_v11 = vld [vmem:[%s10357_s3 + $0x40] sm:$0xff]  ;;  %v5856_v12 = vld [vmem:[%s10357_s3 + $0x48] sm:$0xff] }
 0x175   :  { %v8017_v9 = vpack.c.bf16 %v541_v6, %v540_v34  ;;  %v8053_v16 = vpack.c.bf16 %v5856_v12, %v5855_v11  ;;  %v5857_v18 = vld [vmem:[%s10357_s3 + $0x50] sm:$0xff]  ;;  %v5870_v21 = vld [vmem:[%s10357_s3 + $0x78] sm:$0xff]  ;;  %v5879_v26 = vld [vmem:[%s10357_s3 + $0x80] sm:$0xff] }
 0x176   :  { %v5869_v20 = vld [vmem:[%s10357_s3 + $0x70] sm:$0xff]  ;;  %v5880_v27 = vld [vmem:[%s10357_s3 + $0x88] sm:$0xff]  ;;  %v5903_v11 = vld [vmem:[%s10357_s3 + $0xc0] sm:$0xff] }
 0x177   :  { %7948 = vmatpush3.bf16.msra.mxu1 %v9172_v36  ;;  %7980 = vmatpush3.bf16.msra.mxu0 %v9172_v36  ;;  %v5865_v23 = vld [vmem:[%s10356_s2 + $0x70] sm:$0xff]  ;;  %v8097_v24 = vpack.c.bf16 %v5870_v21, %v5869_v20  ;;  %v5904_v12 = vld [vmem:[%s10357_s3 + $0xc8] sm:$0xff]  ;;  %v5923_v21 = vld [vmem:[%s10356_s2 + $0x100] sm:$0xff] }
 0x178   :  { %7950 = vmatprep.subr.bf16.mxu1 %v9174_v37  ;;  %7982 = vmatprep.subr.bf16.mxu0 %v9174_v37  ;;  %v5893_v6 = vld [vmem:[%s10357_s3 + $0xb0] sm:$0xff] }
 0x17b   :  { %7952 = vmatpush3.bf16.msra.mxu1 %v9174_v37  ;;  %7984 = vmatpush3.bf16.msra.mxu0 %v9174_v37 }
 0x17c   :  { %7954 = vmatprep.subr.bf16.mxu1 %v9176_v38  ;;  %7986 = vmatprep.subr.bf16.mxu0 %v9176_v38 }
 0x17f   :  { %7956 = vmatpush3.bf16.msra.mxu1 %v9176_v38  ;;  %7988 = vmatpush3.bf16.msra.mxu0 %v9176_v38 }
 0x180   :  { %7958 = vmatprep.subr.bf16.mxu1 %v9178_v39  ;;  %7990 = vmatprep.subr.bf16.mxu0 %v9178_v39 }
 0x183   :  { %7960 = vmatpush3.bf16.msra.mxu1 %v9178_v39  ;;  %7992 = vmatpush3.bf16.msra.mxu0 %v9178_v39 }
 0x184   :  { %7962 = vmatprep.subr.bf16.mxu1 %v9180_v40  ;;  %7994 = vmatprep.subr.bf16.mxu0 %v9180_v40 }
 0x187   :  { %7964 = vmatpush3.bf16.msra.mxu1 %v9180_v40  ;;  %7996 = vmatpush3.bf16.msra.mxu0 %v9180_v40 }
 0x188   :  { %7966 = vmatprep.subr.bf16.mxu1 %v9182_v41  ;;  %7998 = vmatprep.subr.bf16.mxu0 %v9182_v41 }
 0x18b   :  { %7968 = vmatpush3.bf16.msra.mxu1 %v9182_v41  ;;  %8000 = vmatpush3.bf16.msra.mxu0 %v9182_v41 }
 0x18c   :  { %7970 = vmatprep.subr.bf16.mxu1 %v9184_v42  ;;  %8002 = vmatprep.subr.bf16.mxu0 %v9184_v42 }
 0x18f   :  { %7972 = vmatpush3.bf16.msra.mxu1 %v9184_v42  ;;  %8004 = vmatpush3.bf16.msra.mxu0 %v9184_v42 }
 0x190   :  { %8022 = vmatprep.subr.bf16.mxu0 %v9170_v19  ;;  %8006 = vmatprep.subr.bf16.mxu1 %v8005_v22 }
 0x192   :  { %6898 = vmatmul.mubr.f32.vlgmr.msra.gmra.mrb[16].mxu0 %v5836_v43  ;;  %6860 = vmatmul.mubr.f32.vlgmr.msra.gmra.mrb[0].mxu1 %v450_v44  ;;  %v5858_v43 = vld [vmem:[%s10357_s3 + $0x58] sm:$0xff] }
 0x193   :  { %8024 = vmatpush3.bf16.msra.mxu0 %v9170_v19  ;;  %6900 = vmatprep.mubr.f32.mxu0 %v5837_v45  ;;  %v8057_v44 = vpack.c.bf16 %v5858_v43, %v5857_v18  ;;  %v5972_v45 = vld [vmem:[%s10356_s2 + $0x188] sm:$0xff] }
 0x194   :  { %8026 = vmatprep.subr.bf16.mxu0 %v9172_v36  ;;  %6862 = vmatprep.mubr.f32.mxu1 %v451_v47  ;;  %v5973_v47 = vld [vmem:[%s10356_s2 + $0x190] sm:$0xff] }
 0x195   :  { %8008 = vmatpush3.bf16.msra.mxu1 %v8005_v22  ;;  %v5864_v22 = vld [vmem:[%s10356_s2 + $0x68] sm:$0xff] }
 0x196   :  { %6901 = vmatmul.mubr.f32.gmra.mrb[18].mxu0 %v5838_v48  ;;  %6863 = vmatmul.mubr.f32.gmra.mrb[2].mxu1 %v452_v49  ;;  %v5974_v48 = vld [vmem:[%s10356_s2 + $0x198] sm:$0xff]  ;;  %v5995_v49 = vld [vmem:[%s10356_s2 + $0x1c0] sm:$0xff] }
 0x197   :  { %8028 = vmatpush3.bf16.msra.mxu0 %v9172_v36  ;;  %6963 = vmatprep.mubr.f32.mxu0 %v5851_v50 }
 0x198   :  { %8030 = vmatprep.subr.bf16.mxu0 %v9174_v37  ;;  %8010 = vmatprep.subr.bf16.mxu1 %v8009_v25 }
 0x199   :  { %8012 = vmatpush3.bf16.msra.mxu1 %v8009_v25  ;;  %v5866_v25 = vld [vmem:[%s10356_s2 + $0x78] sm:$0xff] }
 0x19a   :  { %8014 = vmatprep.subr.bf16.mxu1 %v9324_v59 }
 0x19b   :  { %8032 = vmatpush3.bf16.msra.mxu0 %v9174_v37 }
 0x19c   :  { %8034 = vmatprep.subr.bf16.mxu0 %v9176_v38 }
 0x19f   :  { %8036 = vmatpush3.bf16.msra.mxu0 %v9176_v38 }
 0x1a0   :  { %8038 = vmatprep.subr.bf16.mxu0 %v9178_v39 }
 0x1a3   :  { %8040 = vmatpush3.bf16.msra.mxu0 %v9178_v39 }
 0x1a4   :  { %8042 = vmatprep.subr.bf16.mxu0 %v9180_v40 }
 0x1a7   :  { %8044 = vmatpush3.bf16.msra.mxu0 %v9180_v40 }
 0x1a8   :  { %8046 = vmatprep.subr.bf16.mxu0 %v9182_v41 }
 0x1ab   :  { %8048 = vmatpush3.bf16.msra.mxu0 %v9182_v41 }
 0x1ac   :  { %8050 = vmatprep.subr.bf16.mxu0 %v9184_v42 }
 0x1af   :  { %8052 = vmatpush3.bf16.msra.mxu0 %v9184_v42 }
 0x1b0   :  { %8102 = vmatprep.subr.bf16.mxu0 %v9170_v19 }
 0x1b2   :  { %6964 = vmatmul.mubr.f32.vlgmr.msra.gmra.mrb[20].mxu0 %v5852_v51 }
 0x1b3   :  { %8104 = vmatpush3.bf16.msra.mxu0 %v9170_v19  ;;  %6966 = vmatprep.mubr.f32.mxu0 %v5853_v52 }
 0x1b4   :  { %8106 = vmatprep.subr.bf16.mxu0 %v9172_v36 }
 0x1b6   :  { %6967 = vmatmul.mubr.f32.gmra.mrb[22].mxu0 %v5854_v53 }
 0x1b7   :  { %8108 = vmatpush3.bf16.msra.mxu0 %v9172_v36  ;;  %7067 = vmatprep.mubr.f32.mxu0 %v5875_v54  ;;  %v5863_v54 = vld [vmem:[%s10356_s2 + $0x60] sm:$0xff] }
 0x1b8   :  { %8110 = vmatprep.subr.bf16.mxu0 %v9174_v37 }
 0x1bb   :  { %8112 = vmatpush3.bf16.msra.mxu0 %v9174_v37 }
 0x1bc   :  { %8114 = vmatprep.subr.bf16.mxu0 %v9176_v38 }
 0x1bf   :  { %8116 = vmatpush3.bf16.msra.mxu0 %v9176_v38 }
 0x1c0   :  { %8118 = vmatprep.subr.bf16.mxu0 %v9178_v39 }
 0x1c3   :  { %8120 = vmatpush3.bf16.msra.mxu0 %v9178_v39 }
 0x1c4   :  { %8122 = vmatprep.subr.bf16.mxu0 %v9180_v40 }
 0x1c7   :  { %8124 = vmatpush3.bf16.msra.mxu0 %v9180_v40 }
 0x1c8   :  { %8126 = vmatprep.subr.bf16.mxu0 %v9182_v41 }
 0x1cb   :  { %8128 = vmatpush3.bf16.msra.mxu0 %v9182_v41 }
 0x1cc   :  { %8130 = vmatprep.subr.bf16.mxu0 %v9184_v42 }
 0x1cf   :  { %8132 = vmatpush3.bf16.msra.mxu0 %v9184_v42 }
 0x1d0   :  { %8182 = vmatprep.subr.bf16.mxu0 %v9170_v19 }
 0x1d2   :  { %7068 = vmatmul.mubr.f32.vlgmr.msra.gmra.mrb[24].mxu0 %v5876_v55  ;;  %v5996_v55 = vld [vmem:[%s10356_s2 + $0x1c8] sm:$0xff] }
 0x1d3   :  { %8184 = vmatpush3.bf16.msra.mxu0 %v9170_v19  ;;  %7070 = vmatprep.mubr.f32.mxu0 %v5877_v56  ;;  %v5867_v56 = vld [vmem:[%s10357_s3 + $0x60] sm:$0xff] }
 0x1d4   :  { %8186 = vmatprep.subr.bf16.mxu0 %v9172_v36 }
 0x1d6   :  { %7071 = vmatmul.mubr.f32.gmra.mrb[26].mxu0 %v5878_v57  ;;  %v5868_v57 = vld [vmem:[%s10357_s3 + $0x68] sm:$0xff] }
 0x1d7   :  { %8188 = vmatpush3.bf16.msra.mxu0 %v9172_v36  ;;  %7171 = vmatprep.mubr.f32.mxu0 %v5899_v58  ;;  %v8093_v58 = vpack.c.bf16 %v5868_v57, %v5867_v56  ;;  %v5917_v57 = vld [vmem:[%s10357_s3 + $0xf0] sm:$0xff] }
 0x1d8   :  { %8190 = vmatprep.subr.bf16.mxu0 %v9174_v37 }
 0x1db   :  { %8192 = vmatpush3.bf16.msra.mxu0 %v9174_v37 }
 0x1dc   :  { %8194 = vmatprep.subr.bf16.mxu0 %v9176_v38 }
 0x1df   :  { %8196 = vmatpush3.bf16.msra.mxu0 %v9176_v38 }
 0x1e0   :  { %8198 = vmatprep.subr.bf16.mxu0 %v9178_v39 }
 0x1e3   :  { %8200 = vmatpush3.bf16.msra.mxu0 %v9178_v39 }
 0x1e4   :  { %8202 = vmatprep.subr.bf16.mxu0 %v9180_v40 }
 0x1e7   :  { %8204 = vmatpush3.bf16.msra.mxu0 %v9180_v40 }
 0x1e8   :  { %8206 = vmatprep.subr.bf16.mxu0 %v9182_v41 }
 0x1eb   :  { %8208 = vmatpush3.bf16.msra.mxu0 %v9182_v41 }
 0x1ec   :  { %8210 = vmatprep.subr.bf16.mxu0 %v9184_v42 }
 0x1ef   :  { %8212 = vmatpush3.bf16.msra.mxu0 %v9184_v42 }
 0x1f0   :  { %8222 = vmatprep.subr.bf16.mxu0 %v9170_v19 }
 0x1f2   :  { %7172 = vmatmul.mubr.f32.vlgmr.msra.gmra.mrb[28].mxu0 %v5900_v60 }
 0x1f3   :  { %8224 = vmatpush3.bf16.msra.mxu0 %v9170_v19  ;;  %7174 = vmatprep.mubr.f32.mxu0 %v5901_v61 }
 0x1f4   :  { %8226 = vmatprep.subr.bf16.mxu0 %v9172_v36 }
 0x1f6   :  { %7175 = vmatmul.mubr.f32.gmra.mrb[30].mxu0 %v5902_v62 }
 0x1f7   :  { %8228 = vmatpush3.bf16.msra.mxu0 %v9172_v36  ;;  %7223 = vmatprep.mubr.f32.mxu0 %v5911_v63 }
 0x1f8   :  { %8230 = vmatprep.subr.bf16.mxu0 %v9174_v37 }
 0x1fb   :  { %8232 = vmatpush3.bf16.msra.mxu0 %v9174_v37 }
 0x1fc   :  { %8234 = vmatprep.subr.bf16.mxu0 %v9176_v38 }
 0x1ff   :  { %8236 = vmatpush3.bf16.msra.mxu0 %v9176_v38 }
 0x200   :  { %8238 = vmatprep.subr.bf16.mxu0 %v9178_v39 }
 0x203   :  { %8240 = vmatpush3.bf16.msra.mxu0 %v9178_v39 }
 0x204   :  { %8242 = vmatprep.subr.bf16.mxu0 %v9180_v40 }
 0x207   :  { %8244 = vmatpush3.bf16.msra.mxu0 %v9180_v40 }
 0x208   :  { %8246 = vmatprep.subr.bf16.mxu0 %v9182_v41 }
 0x20b   :  { %8248 = vmatpush3.bf16.msra.mxu0 %v9182_v41 }
 0x20c   :  { %8250 = vmatprep.subr.bf16.mxu0 %v9184_v42 }
 0x20f   :  { %8252 = vmatpush3.bf16.msra.mxu0 %v9184_v42 }
 0x210   :  { %8302 = vmatprep.subr.bf16.mxu0 %v9170_v19 }
 0x212   :  { %7224 = vmatmul.mubr.f32.vlgmr.msra.gmra.mrb[32].mxu0 %v5912_v29 }
 0x213   :  { %8304 = vmatpush3.bf16.msra.mxu0 %v9170_v19  ;;  %7226 = vmatprep.mubr.f32.mxu0 %v5913_v0 }
 0x214   :  { %8306 = vmatprep.subr.bf16.mxu0 %v9172_v36 }
 0x216   :  { %7227 = vmatmul.mubr.f32.gmra.mrb[34].mxu0 %v5914_v31  ;;  %v5881_v31 = vld [vmem:[%s10357_s3 + $0x90] sm:$0xff] }
 0x217   :  { %8308 = vmatpush3.bf16.msra.mxu0 %v9172_v36  ;;  %7327 = vmatprep.mubr.f32.mxu0 %v5935_v1  ;;  %v5882_v1 = vld [vmem:[%s10357_s3 + $0x98] sm:$0xff] }
 0x218   :  { %8310 = vmatprep.subr.bf16.mxu0 %v9174_v37 }
 0x21b   :  { %8312 = vmatpush3.bf16.msra.mxu0 %v9174_v37 }
 0x21c   :  { %8314 = vmatprep.subr.bf16.mxu0 %v9176_v38 }
 0x21f   :  { %8316 = vmatpush3.bf16.msra.mxu0 %v9176_v38 }
 0x220   :  { %8318 = vmatprep.subr.bf16.mxu0 %v9178_v39 }
 0x223   :  { %8320 = vmatpush3.bf16.msra.mxu0 %v9178_v39 }
 0x224   :  { %8322 = vmatprep.subr.bf16.mxu0 %v9180_v40 }
 0x227   :  { %8324 = vmatpush3.bf16.msra.mxu0 %v9180_v40 }
 0x228   :  { %8326 = vmatprep.subr.bf16.mxu0 %v9182_v41 }
 0x22b   :  { %8328 = vmatpush3.bf16.msra.mxu0 %v9182_v41 }
 0x22c   :  { %8330 = vmatprep.subr.bf16.mxu0 %v9184_v42 }
 0x22f   :  { %8332 = vmatpush3.bf16.msra.mxu0 %v9184_v42 }
 0x230   :  { %8342 = vmatprep.subr.bf16.mxu0 %v9170_v19 }
 0x232   :  { %7328 = vmatmul.mubr.f32.vlgmr.msra.gmra.mrb[36].mxu0 %v5936_v30 }
 0x233   :  { %8344 = vmatpush3.bf16.msra.mxu0 %v9170_v19  ;;  %7330 = vmatprep.mubr.f32.mxu0 %v5937_v2 }
 0x234   :  { %8346 = vmatprep.subr.bf16.mxu0 %v9172_v36 }
 0x236   :  { %7331 = vmatmul.mubr.f32.gmra.mrb[38].mxu0 %v5938_v28  ;;  %v8137_v28 = vpack.c.bf16 %v5882_v1, %v5881_v31 }
 0x237   :  { %8348 = vmatpush3.bf16.msra.mxu0 %v9172_v36  ;;  %7379 = vmatprep.mubr.f32.mxu0 %v5947_v3 }
 0x238   :  { %8350 = vmatprep.subr.bf16.mxu0 %v9174_v37 }
 0x23b   :  { %8352 = vmatpush3.bf16.msra.mxu0 %v9174_v37 }
 0x23c   :  { %8354 = vmatprep.subr.bf16.mxu0 %v9176_v38 }
 0x23f   :  { %8356 = vmatpush3.bf16.msra.mxu0 %v9176_v38 }
 0x240   :  { %8358 = vmatprep.subr.bf16.mxu0 %v9178_v39 }
 0x243   :  { %8360 = vmatpush3.bf16.msra.mxu0 %v9178_v39 }
 0x244   :  { %8362 = vmatprep.subr.bf16.mxu0 %v9180_v40 }
 0x247   :  { %8364 = vmatpush3.bf16.msra.mxu0 %v9180_v40 }
 0x248   :  { %8366 = vmatprep.subr.bf16.mxu0 %v9182_v41 }
 0x24b   :  { %8368 = vmatpush3.bf16.msra.mxu0 %v9182_v41 }
 0x24c   :  { %8370 = vmatprep.subr.bf16.mxu0 %v9184_v42 }
 0x24f   :  { %8372 = vmatpush3.bf16.msra.mxu0 %v9184_v42 }
 0x250   :  { %8422 = vmatprep.subr.bf16.mxu0 %v9170_v19 }
 0x252   :  { %7380 = vmatmul.mubr.f32.vlgmr.msra.gmra.mrb[40].mxu0 %v5948_v32 }
 0x253   :  { %8424 = vmatpush3.bf16.msra.mxu0 %v9170_v19  ;;  %7382 = vmatprep.mubr.f32.mxu0 %v5949_v4  ;;  %v5887_v4 = vld [vmem:[%s10356_s2 + $0xa0] sm:$0xff] }
 0x254   :  { %8426 = vmatprep.subr.bf16.mxu0 %v9172_v36 }
 0x256   :  { %7383 = vmatmul.mubr.f32.gmra.mrb[42].mxu0 %v5950_v33  ;;  %v5891_v33 = vld [vmem:[%s10357_s3 + $0xa0] sm:$0xff] }
 0x257   :  { %8428 = vmatpush3.bf16.msra.mxu0 %v9172_v36  ;;  %7483 = vmatprep.mubr.f32.mxu0 %v5971_v5  ;;  %v5892_v5 = vld [vmem:[%s10357_s3 + $0xa8] sm:$0xff] }
 0x258   :  { %8430 = vmatprep.subr.bf16.mxu0 %v9174_v37  ;;  %v8173_v34 = vpack.c.bf16 %v5892_v5, %v5891_v33 }
 0x25b   :  { %8432 = vmatpush3.bf16.msra.mxu0 %v9174_v37 }
 0x25c   :  { %8434 = vmatprep.subr.bf16.mxu0 %v9176_v38 }
 0x25f   :  { %8436 = vmatpush3.bf16.msra.mxu0 %v9176_v38 }
 0x260   :  { %8438 = vmatprep.subr.bf16.mxu0 %v9178_v39 }
 0x263   :  { %8440 = vmatpush3.bf16.msra.mxu0 %v9178_v39 }
 0x264   :  { %8442 = vmatprep.subr.bf16.mxu0 %v9180_v40 }
 0x265   :  { %v6899_v35 = vpop.f32.mrb[16].mxu0  ;;  %v6861_v7 = vpop.f32.mrb[0].mxu1 }
 0x266   :  { %v613_v8 = vpop.f32.mrb[17].mxu0  ;;  %v519_v10 = vpop.f32.mrb[1].mxu1 }
 0x267   :  { %6911 = vmatprep.mubr.msk.f32.mxu1 %vm275_vm1, %v613_v8  ;;  %8444 = vmatpush3.bf16.msra.mxu0 %v9180_v40  ;;  %v5889_v8 = vld [vmem:[%s10356_s2 + $0xb0] sm:$0xff] }
 0x268   :  { %6912 = vmatmul.mubr.msk.f32.vlgmr.msra.gmra.mrb[4].mxu1 %vm275_vm1, %v6899_v35  ;;  %8446 = vmatprep.subr.bf16.mxu0 %v9182_v41  ;;  %v5894_v35 = vld [vmem:[%s10357_s3 + $0xb8] sm:$0xff] }
 0x269   :  { %8016 = vmatpush3.bf16.msra.mxu1 %v9324_v59  ;;  %v6902_v13 = vpop.f32.mrb[18].mxu0  ;;  %v6864_v14 = vpop.f32.mrb[2].mxu1  ;;  %v8133_v59 = vpack.c.bf16 %v5880_v27, %v5879_v26  ;;  %v5930_v26 = vld [vmem:[%s10357_s3 + $0x118] sm:$0xff]  ;;  %v5924_v27 = vld [vmem:[%s10356_s2 + $0x108] sm:$0xff] }
 0x26a   :  { %v623_v15 = vpop.f32.mrb[19].mxu0  ;;  %8018 = vmatprep.subr.bf16.mxu1 %v8017_v9  ;;  %v529_v17 = vpop.f32.mrb[3].mxu1 }
 0x26b   :  { %6914 = vmatprep.mubr.msk.f32.mxu1 %vm275_vm1, %v623_v15  ;;  %8448 = vmatpush3.bf16.msra.mxu0 %v9182_v41 }
 0x26c   :  { %6915 = vmatmul.mubr.msk.f32.gmra.mrb[6].mxu1 %vm275_vm1, %v6902_v13  ;;  %8450 = vmatprep.subr.bf16.mxu0 %v9184_v42  ;;  %v8213_v13 = vpack.c.bf16 %v5904_v12, %v5903_v11  ;;  %v5959_v12 = vld [vmem:[%s10356_s2 + $0x160] sm:$0xff] }
 0x26d   :  { %8020 = vmatpush3.bf16.msra.mxu1 %v8017_v9  ;;  %6925 = vmatprep.mubr.msk.f32.mxu1 %vm275_vm1, %v519_v10  ;;  %v8177_v9 = vpack.c.bf16 %v5894_v35, %v5893_v6  ;;  %v5890_v10 = vld [vmem:[%s10356_s2 + $0xb8] sm:$0xff]  ;;  %v5952_v6 = vld [vmem:[%s10357_s3 + $0x148] sm:$0xff] }
 0x26e   :  { %8054 = vmatprep.subr.bf16.mxu1 %v8053_v16 }
 0x26f   :  { %8452 = vmatpush3.bf16.msra.mxu0 %v9184_v42 }
 0x270   :  { %6926 = vmatmul.mubr.msk.f32.vlgmr.msra.gmra.mrb[4].mxu1 %vm275_vm1, %v6861_v7  ;;  %8502 = vmatprep.subr.bf16.mxu0 %v9170_v19  ;;  %v5888_v7 = vld [vmem:[%s10356_s2 + $0xa8] sm:$0xff] }
 0x271   :  { %8056 = vmatpush3.bf16.msra.mxu1 %v8053_v16  ;;  %6928 = vmatprep.mubr.msk.f32.mxu1 %vm275_vm1, %v529_v17 }
 0x272   :  { %8058 = vmatprep.subr.bf16.mxu1 %v8057_v44  ;;  %7484 = vmatmul.mubr.f32.vlgmr.msra.gmra.mrb[44].mxu0 %v5972_v45 }
 0x273   :  { %8504 = vmatpush3.bf16.msra.mxu0 %v9170_v19  ;;  %7486 = vmatprep.mubr.f32.mxu0 %v5973_v47  ;;  %v5905_v47 = vld [vmem:[%s10357_s3 + $0xd0] sm:$0xff] }
 0x274   :  { %8506 = vmatprep.subr.bf16.mxu0 %v9172_v36  ;;  %6929 = vmatmul.mubr.msk.f32.gmra.mrb[6].mxu1 %vm275_vm1, %v6864_v14 }
 0x275   :  { %8060 = vmatpush3.bf16.msra.mxu1 %v8057_v44 }
 0x276   :  { %8062 = vmatprep.subr.bf16.mxu1 %v9170_v19  ;;  %7487 = vmatmul.mubr.f32.gmra.mrb[46].mxu0 %v5974_v48  ;;  %v5906_v48 = vld [vmem:[%s10357_s3 + $0xd8] sm:$0xff] }
 0x277   :  { %8508 = vmatpush3.bf16.msra.mxu0 %v9172_v36  ;;  %7587 = vmatprep.mubr.f32.mxu0 %v5995_v49 }
 0x278   :  { %8510 = vmatprep.subr.bf16.mxu0 %v9174_v37 }
 0x27b   :  { %8512 = vmatpush3.bf16.msra.mxu0 %v9174_v37 }
 0x27c   :  { %8514 = vmatprep.subr.bf16.mxu0 %v9176_v38 }
 0x27f   :  { %8516 = vmatpush3.bf16.msra.mxu0 %v9176_v38 }
 0x280   :  { %8518 = vmatprep.subr.bf16.mxu0 %v9178_v39 }
 0x283   :  { %8520 = vmatpush3.bf16.msra.mxu0 %v9178_v39 }
 0x284   :  { %8522 = vmatprep.subr.bf16.mxu0 %v9180_v40 }
 0x285   :  { %v6965_v50 = vpop.f32.mrb[20].mxu0 }
 0x286   :  { %v902_v51 = vpop.f32.mrb[21].mxu0 }
 0x287   :  { %6977 = vmatprep.mubr.msk.f32.mxu1 %vm275_vm1, %v902_v51  ;;  %8524 = vmatpush3.bf16.msra.mxu0 %v9180_v40  ;;  %v8217_v51 = vpack.c.bf16 %v5906_v48, %v5905_v47  ;;  %v5975_v47 = vld [vmem:[%s10357_s3 + $0x180] sm:$0xff]  ;;  %v5976_v48 = vld [vmem:[%s10357_s3 + $0x188] sm:$0xff] }
 0x288   :  { %6978 = vmatmul.mubr.msk.f32.vlgmr.msra.gmra.mrb[4].mxu1 %vm275_vm1, %v6965_v50  ;;  %8526 = vmatprep.subr.bf16.mxu0 %v9182_v41 }
 0x289   :  { %8064 = vmatpush3.bf16.msra.mxu1 %v9170_v19  ;;  %v6968_v52 = vpop.f32.mrb[22].mxu0 }
 0x28a   :  { %8066 = vmatprep.subr.bf16.mxu1 %v9172_v36  ;;  %v912_v53 = vpop.f32.mrb[23].mxu0 }
 0x28b   :  { %8528 = vmatpush3.bf16.msra.mxu0 %v9182_v41  ;;  %6980 = vmatprep.mubr.msk.f32.mxu1 %vm275_vm1, %v912_v53  ;;  %v5916_v53 = vld [vmem:[%s10357_s3 + $0xe8] sm:$0xff] }
 0x28c   :  { %8530 = vmatprep.subr.bf16.mxu0 %v9184_v42  ;;  %6981 = vmatmul.mubr.msk.f32.gmra.mrb[6].mxu1 %vm275_vm1, %v6968_v52  ;;  %v5915_v52 = vld [vmem:[%s10357_s3 + $0xe0] sm:$0xff] }
 0x28d   :  { %8068 = vmatpush3.bf16.msra.mxu1 %v9172_v36  ;;  %7015 = vmatprep.mubr.f32.mxu1 %v5863_v54  ;;  %v8253_v56 = vpack.c.bf16 %v5916_v53, %v5915_v52 }
 0x28e   :  { %8070 = vmatprep.subr.bf16.mxu1 %v9174_v37 }
 0x28f   :  { %8532 = vmatpush3.bf16.msra.mxu0 %v9184_v42 }
 0x290   :  { %8542 = vmatprep.subr.bf16.mxu0 %v9170_v19 }
 0x291   :  { %8072 = vmatpush3.bf16.msra.mxu1 %v9174_v37 }
 0x292   :  { %8074 = vmatprep.subr.bf16.mxu1 %v9176_v38  ;;  %7588 = vmatmul.mubr.f32.vlgmr.msra.gmra.mrb[48].mxu0 %v5996_v55 }
 0x293   :  { %8544 = vmatpush3.bf16.msra.mxu0 %v9170_v19 }
 0x294   :  { %8546 = vmatprep.subr.bf16.mxu0 %v9172_v36 }
 0x295   :  { %8076 = vmatpush3.bf16.msra.mxu1 %v9176_v38 }
 0x296   :  { %8078 = vmatprep.subr.bf16.mxu1 %v9178_v39 }
 0x297   :  { %8548 = vmatpush3.bf16.msra.mxu0 %v9172_v36 }
 0x298   :  { %8550 = vmatprep.subr.bf16.mxu0 %v9174_v37 }
 0x299   :  { %8080 = vmatpush3.bf16.msra.mxu1 %v9178_v39 }
 0x29a   :  { %8082 = vmatprep.subr.bf16.mxu1 %v9180_v40 }
 0x29b   :  { %8552 = vmatpush3.bf16.msra.mxu0 %v9174_v37 }
 0x29c   :  { %8554 = vmatprep.subr.bf16.mxu0 %v9176_v38 }
 0x29d   :  { %8084 = vmatpush3.bf16.msra.mxu1 %v9180_v40 }
 0x29e   :  { %8086 = vmatprep.subr.bf16.mxu1 %v9182_v41 }
 0x29f   :  { %8556 = vmatpush3.bf16.msra.mxu0 %v9176_v38 }
 0x2a0   :  { %8558 = vmatprep.subr.bf16.mxu0 %v9178_v39 }
 0x2a1   :  { %8088 = vmatpush3.bf16.msra.mxu1 %v9182_v41 }
 0x2a2   :  { %8090 = vmatprep.subr.bf16.mxu1 %v9184_v42 }
 0x2a3   :  { %8560 = vmatpush3.bf16.msra.mxu0 %v9178_v39 }
 0x2a4   :  { %8562 = vmatprep.subr.bf16.mxu0 %v9180_v40 }
 0x2a5   :  { %8092 = vmatpush3.bf16.msra.mxu1 %v9184_v42  ;;  %v7069_v60 = vpop.f32.mrb[24].mxu0 }
 0x2a6   :  { %8094 = vmatprep.subr.bf16.mxu1 %v8093_v58  ;;  %v1294_v61 = vpop.f32.mrb[25].mxu0 }
 0x2a7   :  { %8564 = vmatpush3.bf16.msra.mxu0 %v9180_v40 }
 0x2a8   :  { %7016 = vmatmul.mubr.f32.vlgmr.msra.gmra.mrb[8].mxu1 %v5864_v22  ;;  %8566 = vmatprep.subr.bf16.mxu0 %v9182_v41  ;;  %v5927_v22 = vld [vmem:[%s10357_s3 + $0x100] sm:$0xff] }
 0x2a9   :  { %7018 = vmatprep.mubr.f32.mxu1 %v5865_v23  ;;  %8096 = vmatpush3.bf16.msra.mxu1 %v8093_v58  ;;  %v7072_v62 = vpop.f32.mrb[26].mxu0  ;;  %v5918_v58 = vld [vmem:[%s10357_s3 + $0xf8] sm:$0xff]  ;;  %v5928_v23 = vld [vmem:[%s10357_s3 + $0x108] sm:$0xff] }
 0x2aa   :  { %8098 = vmatprep.subr.bf16.mxu1 %v8097_v24  ;;  %v1304_v63 = vpop.f32.mrb[27].mxu0  ;;  %v8257_v20 = vpack.c.bf16 %v5918_v58, %v5917_v57 }
 0x2ab   :  { %8568 = vmatpush3.bf16.msra.mxu0 %v9182_v41 }
 0x2ac   :  { %7019 = vmatmul.mubr.f32.gmra.mrb[10].mxu1 %v5866_v25  ;;  %8570 = vmatprep.subr.bf16.mxu0 %v9184_v42  ;;  %v5929_v25 = vld [vmem:[%s10357_s3 + $0x110] sm:$0xff] }
 0x2ad   :  { %8100 = vmatpush3.bf16.msra.mxu1 %v8097_v24  ;;  %v8293_v24 = vpack.c.bf16 %v5928_v23, %v5927_v22  ;;  %v6010_v22 = vld [vmem:[%s10356_s2 + $0x1f8] sm:$0xff]  ;;  %v5977_v23 = vld [vmem:[%s10357_s3 + $0x190] sm:$0xff] }
 0x2ae   :  { %8134 = vmatprep.subr.bf16.mxu1 %v8133_v59 }
 0x2af   :  { %8572 = vmatpush3.bf16.msra.mxu0 %v9184_v42 }
 0x2c5   :  { %v9568_v29 = vpop.f32.mrb[28].mxu0 }
 0x2c6   :  { %v9570_v0 = vpop.f32.mrb[29].mxu0 }
 0x2c9   :  { %v7176_v14 = vpop.f32.mrb[30].mxu0 }
 0x2ca   :  { %v1696_v15 = vpop.f32.mrb[31].mxu0 }
 0x2e5   :  { %v7225_v16 = vpop.f32.mrb[32].mxu0 }
 0x2e6   :  { %v1882_v17 = vpop.f32.mrb[33].mxu0 }
 0x2e9   :  { %v7228_v18 = vpop.f32.mrb[34].mxu0 }
 0x2ea   :  { %v1892_v43 = vpop.f32.mrb[35].mxu0 }
 0x305   :  { %v9632_v44 = vpop.f32.mrb[36].mxu0 }
 0x306   :  { %v9634_v45 = vpop.f32.mrb[37].mxu0 }
 0x37b   :  { %v7017_v30 = vpop.f32.mrb[8].mxu1 }
 0x37c   :  { %v1098_v2 = vpop.f32.mrb[9].mxu1 }
 0x37d   :  { %7029 = vmatprep.mubr.msk.f32.mxu1 %vm275_vm1, %v1098_v2 }
 0x37e   :  { %7030 = vmatmul.mubr.msk.f32.vlgmr.msra.gmra.mrb[4].mxu1 %vm275_vm1, %v7017_v30 }
 0x37f   :  { %8136 = vmatpush3.bf16.msra.mxu1 %v8133_v59  ;;  %v7020_v3 = vpop.f32.mrb[10].mxu1  ;;  %v5925_v59 = vld [vmem:[%s10356_s2 + $0x110] sm:$0xff] }
 0x380   :  { %v1108_v32 = vpop.f32.mrb[11].mxu1  ;;  %8138 = vmatprep.subr.bf16.mxu1 %v8137_v28 }
 0x381   :  { %7032 = vmatprep.mubr.msk.f32.mxu1 %vm275_vm1, %v1108_v32  ;;  %v5942_v32 = vld [vmem:[%s10357_s3 + $0x138] sm:$0xff] }
 0x382   :  { %7033 = vmatmul.mubr.msk.f32.gmra.mrb[6].mxu1 %vm275_vm1, %v7020_v3  ;;  %v5941_v3 = vld [vmem:[%s10357_s3 + $0x130] sm:$0xff] }
 0x383   :  { %8140 = vmatpush3.bf16.msra.mxu1 %v8137_v28  ;;  %7081 = vmatprep.mubr.msk.f32.mxu1 %vm275_vm1, %v1294_v61  ;;  %v5926_v61 = vld [vmem:[%s10356_s2 + $0x118] sm:$0xff]  ;;  %v8337_v5 = vpack.c.bf16 %v5942_v32, %v5941_v3  ;;  %v6001_v32 = vld [vmem:[%s10357_s3 + $0x1d0] sm:$0xff] }
 0x384   :  { %8142 = vmatprep.subr.bf16.mxu1 %v9170_v19 }
 0x386   :  { %7082 = vmatmul.mubr.msk.f32.vlgmr.msra.gmra.mrb[4].mxu1 %vm275_vm1, %v7069_v60  ;;  %v8297_v60 = vpack.c.bf16 %v5930_v26, %v5929_v25 }
 0x387   :  { %8144 = vmatpush3.bf16.msra.mxu1 %v9170_v19  ;;  %7084 = vmatprep.mubr.msk.f32.mxu1 %vm275_vm1, %v1304_v63  ;;  %v5940_v63 = vld [vmem:[%s10357_s3 + $0x128] sm:$0xff] }
 0x388   :  { %8146 = vmatprep.subr.bf16.mxu1 %v9172_v36 }
 0x38a   :  { %7085 = vmatmul.mubr.msk.f32.gmra.mrb[6].mxu1 %vm275_vm1, %v7072_v62  ;;  %v5939_v62 = vld [vmem:[%s10357_s3 + $0x120] sm:$0xff] }
 0x38b   :  { %8148 = vmatpush3.bf16.msra.mxu1 %v9172_v36  ;;  %7119 = vmatprep.mubr.f32.mxu1 %v5887_v4 }
 0x38c   :  { %8150 = vmatprep.subr.bf16.mxu1 %v9174_v37 }
 0x38f   :  { %8152 = vmatpush3.bf16.msra.mxu1 %v9174_v37 }
 0x390   :  { %8154 = vmatprep.subr.bf16.mxu1 %v9176_v38 }
 0x393   :  { %8156 = vmatpush3.bf16.msra.mxu1 %v9176_v38 }
 0x394   :  { %8158 = vmatprep.subr.bf16.mxu1 %v9178_v39 }
 0x397   :  { %8160 = vmatpush3.bf16.msra.mxu1 %v9178_v39 }
 0x398   :  { %8162 = vmatprep.subr.bf16.mxu1 %v9180_v40 }
 0x39b   :  { %8164 = vmatpush3.bf16.msra.mxu1 %v9180_v40 }
 0x39c   :  { %8166 = vmatprep.subr.bf16.mxu1 %v9182_v41 }
 0x39f   :  { %8168 = vmatpush3.bf16.msra.mxu1 %v9182_v41 }
 0x3a0   :  { %8170 = vmatprep.subr.bf16.mxu1 %v9184_v42 }
 0x3a3   :  { %8172 = vmatpush3.bf16.msra.mxu1 %v9184_v42 }
 0x3a4   :  { %8174 = vmatprep.subr.bf16.mxu1 %v8173_v34 }
 0x3a6   :  { %7120 = vmatmul.mubr.f32.vlgmr.msra.gmra.mrb[12].mxu1 %v5888_v7 }
 0x3a7   :  { %7122 = vmatprep.mubr.f32.mxu1 %v5889_v8  ;;  %8176 = vmatpush3.bf16.msra.mxu1 %v8173_v34  ;;  %v5951_v34 = vld [vmem:[%s10357_s3 + $0x140] sm:$0xff] }
 0x3a8   :  { %8178 = vmatprep.subr.bf16.mxu1 %v8177_v9  ;;  %v8373_v8 = vpack.c.bf16 %v5952_v6, %v5951_v34  ;;  %v6011_v6 = vld [vmem:[%s10357_s3 + $0x1e0] sm:$0xff] }
 0x3aa   :  { %7123 = vmatmul.mubr.f32.gmra.mrb[14].mxu1 %v5890_v10  ;;  %v5954_v10 = vld [vmem:[%s10357_s3 + $0x158] sm:$0xff] }
 0x3ab   :  { %8180 = vmatpush3.bf16.msra.mxu1 %v8177_v9  ;;  %v5953_v9 = vld [vmem:[%s10357_s3 + $0x150] sm:$0xff] }
 0x3ac   :  { %8214 = vmatprep.subr.bf16.mxu1 %v8213_v13  ;;  %v8377_v11 = vpack.c.bf16 %v5954_v10, %v5953_v9  ;;  %v6013_v10 = vld [vmem:[%s10357_s3 + $0x1f0] sm:$0xff] }
 0x479   :  { %v7121_v49 = vpop.f32.mrb[12].mxu1 }
 0x47a   :  { %v1490_v50 = vpop.f32.mrb[13].mxu1 }
 0x47b   :  { %7133 = vmatprep.mubr.msk.f32.mxu1 %vm275_vm1, %v1490_v50 }
 0x47c   :  { %7134 = vmatmul.mubr.msk.f32.vlgmr.msra.gmra.mrb[4].mxu1 %vm275_vm1, %v7121_v49  ;;  %v8453_v49 = vpack.c.bf16 %v5976_v48, %v5975_v47 }
 0x47d   :  { %8216 = vmatpush3.bf16.msra.mxu1 %v8213_v13  ;;  %v7124_v54 = vpop.f32.mrb[14].mxu1  ;;  %v5963_v13 = vld [vmem:[%s10357_s3 + $0x160] sm:$0xff] }
 0x47e   :  { %v1500_v55 = vpop.f32.mrb[15].mxu1  ;;  %8218 = vmatprep.subr.bf16.mxu1 %v8217_v51 }
 0x47f   :  { %7136 = vmatprep.mubr.msk.f32.mxu1 %vm275_vm1, %v1500_v55  ;;  %v5998_v55 = vld [vmem:[%s10356_s2 + $0x1d8] sm:$0xff] }
 0x480   :  { %7137 = vmatmul.mubr.msk.f32.gmra.mrb[6].mxu1 %vm275_vm1, %v7124_v54  ;;  %v5997_v54 = vld [vmem:[%s10356_s2 + $0x1d0] sm:$0xff] }
 0x481   :  { %8220 = vmatpush3.bf16.msra.mxu1 %v8217_v51  ;;  %7185 = vmatprep.mubr.msk.f32.mxu1 %vm275_vm1, %v9570_v0  ;;  %v7332_v0 = vpop.f32.mrb[38].mxu0 }
 0x482   :  { %8254 = vmatprep.subr.bf16.mxu1 %v8253_v56  ;;  %v2284_v31 = vpop.f32.mrb[39].mxu0  ;;  %7590 = vmatprep.mubr.f32.mxu0 %v5997_v54 }
 0x483   :  { %v7381_v1 = vpop.f32.mrb[40].mxu0  ;;  %7591 = vmatmul.mubr.f32.gmra.mrb[50].mxu0 %v5998_v55 }
 0x484   :  { %7186 = vmatmul.mubr.msk.f32.vlgmr.msra.gmra.mrb[4].mxu1 %vm275_vm1, %v9568_v29  ;;  %v8333_v29 = vpack.c.bf16 %v5940_v63, %v5939_v62  ;;  %v2470_v30 = vpop.f32.mrb[41].mxu0  ;;  %v5986_v63 = vld [vmem:[%s10356_s2 + $0x1b8] sm:$0xff] }
 0x485   :  { %8256 = vmatpush3.bf16.msra.mxu1 %v8253_v56  ;;  %7188 = vmatprep.mubr.msk.f32.mxu1 %vm275_vm1, %v1696_v15  ;;  %v7384_v2 = vpop.f32.mrb[42].mxu0  ;;  %v6007_v56 = vld [vmem:[%s10356_s2 + $0x1e0] sm:$0xff] }
 0x486   :  { %8258 = vmatprep.subr.bf16.mxu1 %v8257_v20  ;;  %v2480_v28 = vpop.f32.mrb[43].mxu0  ;;  %7639 = vmatprep.mubr.f32.mxu0 %v6007_v56 }
 0x487   :  { %v7485_v50 = vpop.f32.mrb[44].mxu0 }
 0x488   :  { %7189 = vmatmul.mubr.msk.f32.gmra.mrb[6].mxu1 %vm275_vm1, %v7176_v14  ;;  %v5964_v14 = vld [vmem:[%s10357_s3 + $0x168] sm:$0xff]  ;;  %v2862_v51 = vpop.f32.mrb[45].mxu0 }
 0x489   :  { %8260 = vmatpush3.bf16.msra.mxu1 %v8257_v20  ;;  %7237 = vmatprep.mubr.msk.f32.mxu1 %vm275_vm1, %v1882_v17  ;;  %v8413_v15 = vpack.c.bf16 %v5964_v14, %v5963_v13  ;;  %v5966_v17 = vld [vmem:[%s10357_s3 + $0x178] sm:$0xff]  ;;  %v7488_v52 = vpop.f32.mrb[46].mxu0  ;;  %v6008_v20 = vld [vmem:[%s10356_s2 + $0x1e8] sm:$0xff]  ;;  %v3640_v13 = vld [vmem:[%s10358_s4] sm:$0xff] }
 0x48a   :  { %8262 = vmatprep.subr.bf16.mxu1 %v9170_v19  ;;  %v2872_v53 = vpop.f32.mrb[47].mxu0  ;;  %7640 = vmatmul.mubr.f32.vlgmr.msra.gmra.mrb[52].mxu0 %v6008_v20 }
 0x48b   :  { %v9801_v57 = vpop.f32.mrb[48].mxu0 }
 0x48c   :  { %7238 = vmatmul.mubr.msk.f32.vlgmr.msra.gmra.mrb[4].mxu1 %vm275_vm1, %v7225_v16  ;;  %v5965_v16 = vld [vmem:[%s10357_s3 + $0x170] sm:$0xff]  ;;  %v9803_v58 = vpop.f32.mrb[49].mxu0 }
 0x48d   :  { %8264 = vmatpush3.bf16.msra.mxu1 %v9170_v19  ;;  %7240 = vmatprep.mubr.msk.f32.mxu1 %vm275_vm1, %v1892_v43  ;;  %v5961_v43 = vld [vmem:[%s10356_s2 + $0x170] sm:$0xff] }
 0x48e   :  { %8266 = vmatprep.subr.bf16.mxu1 %v9172_v36 }
 0x490   :  { %7241 = vmatmul.mubr.msk.f32.gmra.mrb[6].mxu1 %vm275_vm1, %v7228_v18  ;;  %v5960_v18 = vld [vmem:[%s10356_s2 + $0x168] sm:$0xff] }
 0x491   :  { %8268 = vmatpush3.bf16.msra.mxu1 %v9172_v36  ;;  %7275 = vmatprep.mubr.f32.mxu1 %v5923_v21  ;;  %v6009_v21 = vld [vmem:[%s10356_s2 + $0x1f0] sm:$0xff] }
 0x492   :  { %8270 = vmatprep.subr.bf16.mxu1 %v9174_v37  ;;  %7642 = vmatprep.mubr.f32.mxu0 %v6009_v21 }
 0x493   :  { %7643 = vmatmul.mubr.f32.gmra.mrb[54].mxu0 %v6010_v22 }
 0x495   :  { %8272 = vmatpush3.bf16.msra.mxu1 %v9174_v37 }
 0x496   :  { %8274 = vmatprep.subr.bf16.mxu1 %v9176_v38 }
 0x499   :  { %8276 = vmatpush3.bf16.msra.mxu1 %v9176_v38 }
 0x49a   :  { %8278 = vmatprep.subr.bf16.mxu1 %v9178_v39 }
 0x49d   :  { %8280 = vmatpush3.bf16.msra.mxu1 %v9178_v39 }
 0x49e   :  { %8282 = vmatprep.subr.bf16.mxu1 %v9180_v40 }
 0x4a1   :  { %8284 = vmatpush3.bf16.msra.mxu1 %v9180_v40 }
 0x4a2   :  { %8286 = vmatprep.subr.bf16.mxu1 %v9182_v41 }
 0x4a5   :  { %8288 = vmatpush3.bf16.msra.mxu1 %v9182_v41 }
 0x4a6   :  { %8290 = vmatprep.subr.bf16.mxu1 %v9184_v42 }
 0x4a9   :  { %8292 = vmatpush3.bf16.msra.mxu1 %v9184_v42 }
 0x4aa   :  { %8294 = vmatprep.subr.bf16.mxu1 %v8293_v24 }
 0x4ac   :  { %7276 = vmatmul.mubr.f32.vlgmr.msra.gmra.mrb[16].mxu1 %v5924_v27 }
 0x4ad   :  { %7278 = vmatprep.mubr.f32.mxu1 %v5925_v59  ;;  %8296 = vmatpush3.bf16.msra.mxu1 %v8293_v24  ;;  %v5978_v24 = vld [vmem:[%s10357_s3 + $0x198] sm:$0xff] }
 0x4ae   :  { %8298 = vmatprep.subr.bf16.mxu1 %v8297_v60  ;;  %v8457_v27 = vpack.c.bf16 %v5978_v24, %v5977_v23 }
 0x4b0   :  { %7279 = vmatmul.mubr.f32.gmra.mrb[18].mxu1 %v5926_v61  ;;  %v5983_v61 = vld [vmem:[%s10356_s2 + $0x1a0] sm:$0xff] }
 0x4b1   :  { %8300 = vmatpush3.bf16.msra.mxu1 %v8297_v60 }
 0x4b2   :  { %8334 = vmatprep.subr.bf16.mxu1 %v8333_v29 }
 0x57f   :  { %v7277_v4 = vpop.f32.mrb[16].mxu1 }
 0x580   :  { %v2078_v33 = vpop.f32.mrb[17].mxu1 }
 0x581   :  { %7289 = vmatprep.mubr.msk.f32.mxu1 %vm275_vm1, %v2078_v33 }
 0x582   :  { %7290 = vmatmul.mubr.msk.f32.vlgmr.msra.gmra.mrb[4].mxu1 %vm275_vm1, %v7277_v4  ;;  %v6002_v4 = vld [vmem:[%s10357_s3 + $0x1d8] sm:$0xff] }
 0x583   :  { %8336 = vmatpush3.bf16.msra.mxu1 %v8333_v29  ;;  %v7280_v35 = vpop.f32.mrb[18].mxu1  ;;  %v6000_v29 = vld [vmem:[%s10357_s3 + $0x1c8] sm:$0xff]  ;;  %v8537_v34 = vpack.c.bf16 %v6002_v4, %v6001_v32 }
 0x584   :  { %v2088_v7 = vpop.f32.mrb[19].mxu1  ;;  %8338 = vmatprep.subr.bf16.mxu1 %v8337_v5 }
 0x585   :  { %7292 = vmatprep.mubr.msk.f32.mxu1 %vm275_vm1, %v2088_v7 }
 0x586   :  { %7293 = vmatmul.mubr.msk.f32.gmra.mrb[6].mxu1 %vm275_vm1, %v7280_v35  ;;  %v6012_v35 = vld [vmem:[%s10357_s3 + $0x1e8] sm:$0xff] }
 0x587   :  { %8340 = vmatpush3.bf16.msra.mxu1 %v8337_v5  ;;  %7341 = vmatprep.mubr.msk.f32.mxu1 %vm275_vm1, %v9634_v45  ;;  %v5962_v45 = vld [vmem:[%s10356_s2 + $0x178] sm:$0xff]  ;;  %v8573_v9 = vpack.c.bf16 %v6012_v35, %v6011_v6 }
 0x588   :  { %8374 = vmatprep.subr.bf16.mxu1 %v8373_v8 }
 0x58a   :  { %7342 = vmatmul.mubr.msk.f32.vlgmr.msra.gmra.mrb[4].mxu1 %vm275_vm1, %v9632_v44  ;;  %v8417_v44 = vpack.c.bf16 %v5966_v17, %v5965_v16 }
 0x58b   :  { %8376 = vmatpush3.bf16.msra.mxu1 %v8373_v8  ;;  %7344 = vmatprep.mubr.msk.f32.mxu1 %vm275_vm1, %v2284_v31  ;;  %v7592_v31 = vpop.f32.mrb[50].mxu0 }
 0x58c   :  { %8378 = vmatprep.subr.bf16.mxu1 %v8377_v11 }
 0x58e   :  { %7345 = vmatmul.mubr.msk.f32.gmra.mrb[6].mxu1 %vm275_vm1, %v7332_v0 }
 0x58f   :  { %8380 = vmatpush3.bf16.msra.mxu1 %v8377_v11  ;;  %7393 = vmatprep.mubr.msk.f32.mxu1 %vm275_vm1, %v2470_v30  ;;  %v6014_v11 = vld [vmem:[%s10357_s3 + $0x1f8] sm:$0xff] }
 0x590   :  { %8382 = vmatprep.subr.bf16.mxu1 %v9170_v19 }
 0x592   :  { %7394 = vmatmul.mubr.msk.f32.vlgmr.msra.gmra.mrb[4].mxu1 %vm275_vm1, %v7381_v1  ;;  %v3264_v1 = vpop.f32.mrb[51].mxu0 }
 0x593   :  { %8384 = vmatpush3.bf16.msra.mxu1 %v9170_v19  ;;  %7396 = vmatprep.mubr.msk.f32.mxu1 %vm275_vm1, %v2480_v28  ;;  %v7641_v30 = vpop.f32.mrb[52].mxu0 }
 0x594   :  { %8386 = vmatprep.subr.bf16.mxu1 %v9172_v36 }
 0x596   :  { %7397 = vmatmul.mubr.msk.f32.gmra.mrb[6].mxu1 %vm275_vm1, %v7384_v2  ;;  %v3450_v2 = vpop.f32.mrb[53].mxu0 }
 0x597   :  { %8388 = vmatpush3.bf16.msra.mxu1 %v9172_v36  ;;  %7431 = vmatprep.mubr.f32.mxu1 %v5959_v12  ;;  %v7644_v28 = vpop.f32.mrb[54].mxu0  ;;  %v8577_v12 = vpack.c.bf16 %v6014_v11, %v6013_v10  ;;  %v3641_v11 = vld [vmem:[%s10358_s4 + $0x8] sm:$0xff] }
 0x598   :  { %8390 = vmatprep.subr.bf16.mxu1 %v9174_v37  ;;  %v3460_v3 = vpop.f32.mrb[55].mxu0 }
 0x59b   :  { %8392 = vmatpush3.bf16.msra.mxu1 %v9174_v37 }
 0x59c   :  { %8394 = vmatprep.subr.bf16.mxu1 %v9176_v38 }
 0x59f   :  { %8396 = vmatpush3.bf16.msra.mxu1 %v9176_v38 }
 0x5a0   :  { %8398 = vmatprep.subr.bf16.mxu1 %v9178_v39 }
 0x5a3   :  { %8400 = vmatpush3.bf16.msra.mxu1 %v9178_v39 }
 0x5a4   :  { %8402 = vmatprep.subr.bf16.mxu1 %v9180_v40 }
 0x5a7   :  { %8404 = vmatpush3.bf16.msra.mxu1 %v9180_v40 }
 0x5a8   :  { %8406 = vmatprep.subr.bf16.mxu1 %v9182_v41 }
 0x5ab   :  { %8408 = vmatpush3.bf16.msra.mxu1 %v9182_v41 }
 0x5ac   :  { %8410 = vmatprep.subr.bf16.mxu1 %v9184_v42 }
 0x5af   :  { %8412 = vmatpush3.bf16.msra.mxu1 %v9184_v42 }
 0x5b0   :  { %8414 = vmatprep.subr.bf16.mxu1 %v8413_v15 }
 0x5b2   :  { %7432 = vmatmul.mubr.f32.vlgmr.msra.gmra.mrb[20].mxu1 %v5960_v18 }
 0x5b3   :  { %7434 = vmatprep.mubr.f32.mxu1 %v5961_v43  ;;  %8416 = vmatpush3.bf16.msra.mxu1 %v8413_v15 }
 0x5b4   :  { %8418 = vmatprep.subr.bf16.mxu1 %v8417_v44 }
 0x5b6   :  { %7435 = vmatmul.mubr.f32.gmra.mrb[22].mxu1 %v5962_v45 }
 0x5b7   :  { %8420 = vmatpush3.bf16.msra.mxu1 %v8417_v44 }
 0x5b8   :  { %8454 = vmatprep.subr.bf16.mxu1 %v8453_v49 }
 0x685   :  { %v7433_v25 = vpop.f32.mrb[20].mxu1 }
 0x686   :  { %v2666_v26 = vpop.f32.mrb[21].mxu1 }
 0x687   :  { %7445 = vmatprep.mubr.msk.f32.mxu1 %vm275_vm1, %v2666_v26 }
 0x688   :  { %7446 = vmatmul.mubr.msk.f32.vlgmr.msra.gmra.mrb[4].mxu1 %vm275_vm1, %v7433_v25 }
 0x689   :  { %8456 = vmatpush3.bf16.msra.mxu1 %v8453_v49  ;;  %v7436_v59 = vpop.f32.mrb[22].mxu1 }
 0x68a   :  { %v2676_v60 = vpop.f32.mrb[23].mxu1  ;;  %8458 = vmatprep.subr.bf16.mxu1 %v8457_v27 }
 0x68b   :  { %7448 = vmatprep.mubr.msk.f32.mxu1 %vm275_vm1, %v2676_v60 }
 0x68c   :  { %7449 = vmatmul.mubr.msk.f32.gmra.mrb[6].mxu1 %vm275_vm1, %v7436_v59 }
 0x68d   :  { %8460 = vmatpush3.bf16.msra.mxu1 %v8457_v27  ;;  %7497 = vmatprep.mubr.msk.f32.mxu1 %vm275_vm1, %v2862_v51 }
 0x68e   :  { %8462 = vmatprep.subr.bf16.mxu1 %v9170_v19 }
 0x690   :  { %7498 = vmatmul.mubr.msk.f32.vlgmr.msra.gmra.mrb[4].mxu1 %vm275_vm1, %v7485_v50 }
 0x691   :  { %8464 = vmatpush3.bf16.msra.mxu1 %v9170_v19  ;;  %7500 = vmatprep.mubr.msk.f32.mxu1 %vm275_vm1, %v2872_v53  ;;  %v5987_v19 = vld [vmem:[%s10357_s3 + $0x1a0] sm:$0xff] }
 0x692   :  { %8466 = vmatprep.subr.bf16.mxu1 %v9172_v36 }
 0x694   :  { %7501 = vmatmul.mubr.msk.f32.gmra.mrb[6].mxu1 %vm275_vm1, %v7488_v52 }
 0x695   :  { %8468 = vmatpush3.bf16.msra.mxu1 %v9172_v36  ;;  %7535 = vmatprep.mubr.f32.mxu1 %v5983_v61  ;;  %v5988_v36 = vld [vmem:[%s10357_s3 + $0x1a8] sm:$0xff] }
 0x696   :  { %8470 = vmatprep.subr.bf16.mxu1 %v9174_v37 }
 0x699   :  { %8472 = vmatpush3.bf16.msra.mxu1 %v9174_v37  ;;  %v8493_v37 = vpack.c.bf16 %v5988_v36, %v5987_v19 }
 0x69a   :  { %8474 = vmatprep.subr.bf16.mxu1 %v9176_v38 }
 0x69d   :  { %8476 = vmatpush3.bf16.msra.mxu1 %v9176_v38  ;;  %v5989_v38 = vld [vmem:[%s10357_s3 + $0x1b0] sm:$0xff] }
 0x69e   :  { %8478 = vmatprep.subr.bf16.mxu1 %v9178_v39 }
 0x6a1   :  { %8480 = vmatpush3.bf16.msra.mxu1 %v9178_v39  ;;  %v5990_v39 = vld [vmem:[%s10357_s3 + $0x1b8] sm:$0xff] }
 0x6a2   :  { %8482 = vmatprep.subr.bf16.mxu1 %v9180_v40  ;;  %v8497_v62 = vpack.c.bf16 %v5990_v39, %v5989_v38 }
 0x6a5   :  { %8484 = vmatpush3.bf16.msra.mxu1 %v9180_v40  ;;  %v5984_v40 = vld [vmem:[%s10356_s2 + $0x1a8] sm:$0xff] }
 0x6a6   :  { %8486 = vmatprep.subr.bf16.mxu1 %v9182_v41 }
 0x6a9   :  { %8488 = vmatpush3.bf16.msra.mxu1 %v9182_v41  ;;  %v5985_v41 = vld [vmem:[%s10356_s2 + $0x1b0] sm:$0xff]  ;;  %s8862_s2 = smov [#allocation2]  }
 0x6aa   :  { %8490 = vmatprep.subr.bf16.mxu1 %v9184_v42  ;;  %s5807_s23 = sshll.u32 %s8862_s2, 4  ;;  %s5808_s23 = int_to_ptr.vmem [resolvable:$true] %s5807_s23 }
 0x6ab   :  { %p8843_p1 = scmp.lt.s32.totalorder %s5808_s23, %s5808_s23 }
 0x6ad   :  { %8492 = vmatpush3.bf16.msra.mxu1 %v9184_v42  ;;  %v5999_v42 = vld [vmem:[%s10357_s3 + $0x1c0] sm:$0xff] }
 0x6ae   :  { %8494 = vmatprep.subr.bf16.mxu1 %v8493_v37  ;;  %v8533_v0 = vpack.c.bf16 %v6000_v29, %v5999_v42  ;;  %v3611_v29 = vld [vmem:[%s10363_s9] sm:$0x1] }
 0x6b0   :  { %7536 = vmatmul.mubr.f32.vlgmr.msra.gmra.mrb[24].mxu1 %v5984_v40 }
 0x6b1   :  { %7538 = vmatprep.mubr.f32.mxu1 %v5985_v41  ;;  %8496 = vmatpush3.bf16.msra.mxu1 %v8493_v37 }
 0x6b2   :  { %8498 = vmatprep.subr.bf16.mxu1 %v8497_v62 }
 0x6b4   :  { %7539 = vmatmul.mubr.f32.gmra.mrb[26].mxu1 %v5986_v63 }
 0x6b5   :  { %8500 = vmatpush3.bf16.msra.mxu1 %v8497_v62 }
 0x6b6   :  { %8534 = vmatprep.subr.bf16.mxu1 %v8533_v0 }
 0x783   :  { %v7537_v33 = vpop.f32.mrb[24].mxu1 }
 0x784   :  { %v3058_v5 = vpop.f32.mrb[25].mxu1 }
 0x785   :  { %7549 = vmatprep.mubr.msk.f32.mxu1 %vm275_vm1, %v3058_v5 }
 0x786   :  { %7550 = vmatmul.mubr.msk.f32.vlgmr.msra.gmra.mrb[4].mxu1 %vm275_vm1, %v7537_v33 }
 0x787   :  { %v7540_v7 = vpop.f32.mrb[26].mxu1  ;;  %8536 = vmatpush3.bf16.msra.mxu1 %v8533_v0 }
 0x788   :  { %v3068_v8 = vpop.f32.mrb[27].mxu1  ;;  %8538 = vmatprep.subr.bf16.mxu1 %v8537_v34 }
 0x789   :  { %7552 = vmatprep.mubr.msk.f32.mxu1 %vm275_vm1, %v3068_v8 }
 0x78a   :  { %7553 = vmatmul.mubr.msk.f32.gmra.mrb[6].mxu1 %vm275_vm1, %v7540_v7 }
 0x78b   :  { %8540 = vmatpush3.bf16.msra.mxu1 %v8537_v34  ;;  %7601 = vmatprep.mubr.msk.f32.mxu1 %vm275_vm1, %v9803_v58 }
 0x78c   :  { %8574 = vmatprep.subr.bf16.mxu1 %v8573_v9 }
 0x78e   :  { %7602 = vmatmul.mubr.msk.f32.vlgmr.msra.gmra.mrb[4].mxu1 %vm275_vm1, %v9801_v57 }
 0x78f   :  { %8576 = vmatpush3.bf16.msra.mxu1 %v8573_v9  ;;  %7604 = vmatprep.mubr.msk.f32.mxu1 %vm275_vm1, %v3264_v1 }
 0x790   :  { %8578 = vmatprep.subr.bf16.mxu1 %v8577_v12 }
 0x792   :  { %7605 = vmatmul.mubr.msk.f32.gmra.mrb[6].mxu1 %vm275_vm1, %v7592_v31 }
 0x793   :  { %8580 = vmatpush3.bf16.msra.mxu1 %v8577_v12  ;;  %7653 = vmatprep.mubr.msk.f32.mxu1 %vm275_vm1, %v3450_v2  ;;  %v3642_v12 = vld [vmem:[%s10358_s4 + $0x10] sm:$0xff] }
 0x796   :  { %7654 = vmatmul.mubr.msk.f32.vlgmr.msra.gmra.mrb[4].mxu1 %vm275_vm1, %v7641_v30  ;;  %v6019_v30 = vld [vmem:[%s10364_s10] ss:$0 sm:$0xff] }
 0x797   :  { %7656 = vmatprep.mubr.msk.f32.mxu1 %vm275_vm1, %v3460_v3 }
 0x79a   :  { %7657 = vmatmul.mubr.msk.f32.gmra.mrb[6].mxu1 %vm275_vm1, %v7644_v28 }
 0x79b   :  { %7667 = vmatprep.mubr.msk.f32.mxu1 %vm275_vm1, %v3640_v13  ;;  %v3643_v13 = vld [vmem:[%s10358_s4 + $0x18] sm:$0xff] }
 0x869   :  { %v7655_v14 = vpop.f32.mrb[4].mxu1 }
 0x86a   :  { %v3576_v15 = vsel %vm275_vm1, %v7655_v14, 0.0  ;;  %v3552_v16 = vpop.f32.mrb[5].mxu1 }
 0x86b   :  { %v3575_v17 = vsel %vm275_vm1, %v3552_v16, 0.0 }
 0x86c   :  { %v3577_v18 = vadd.f32 %v3576_v15, %v3575_v17  ;;  %v6025_v15 = vld [vmem:[%s10358_s4 + $0x28] sm:$0xff]  ;;  %v6027_v17 = vld [vmem:[%s10358_s4 + $0x38] sm:$0xff] }
 0x86d   :  { %v7658_v43 = vpop.f32.mrb[6].mxu1 }
 0x86e   :  { %v3562_v44 = vpop.f32.mrb[7].mxu1  ;;  %v3580_v48 = vsel %vm275_vm1, %v7658_v43, 0.0 }
 0x86f   :  { %v3578_v45 = vsel %vm275_vm1, %v3562_v44, 0.0 }
 0x870   :  { %v3579_v47 = vadd.f32 %v3578_v45, %v3577_v18  ;;  %v6044_v18 = vld [vmem:[%s10358_s4 + $0x40] sm:$0xff]  ;;  %v6047_v45 = vld [vmem:[%s10358_s4 + $0x58] sm:$0xff] }
 0x872   :  { %v3581_v49 = vadd.f32 %v3580_v48, %v3579_v47  ;;  %v6060_v47 = vld [vmem:[%s10358_s4 + $0x60] sm:$0xff]  ;;  %v6061_v48 = vld [vmem:[%s10358_s4 + $0x68] sm:$0xff] }
 0x874   :  { %v3582_v50 = vrot.slane %v3581_v49, 4 }
 0x876   :  { %v3583_v51 = vadd.f32 %v3582_v50, %v3581_v49  ;;  %v6062_v49 = vld [vmem:[%s10358_s4 + $0x70] sm:$0xff]  ;;  %v6063_v50 = vld [vmem:[%s10358_s4 + $0x78] sm:$0xff] }
 0x878   :  { %v3584_v52 = vrot.slane %v3583_v51, 2 }
 0x87a   :  { %v3585_v53 = vadd.f32 %v3584_v52, %v3583_v51  ;;  %v6076_v51 = vld [vmem:[%s10358_s4 + $0x80] sm:$0xff]  ;;  %v6077_v52 = vld [vmem:[%s10358_s4 + $0x88] sm:$0xff] }
 0x87c   :  { %v3586_v54 = vrot.slane %v3585_v53, 1 }
 0x87e   :  { %v3587_v55 = vadd.f32 %v3586_v54, %v3585_v53  ;;  %v6078_v53 = vld [vmem:[%s10358_s4 + $0x90] sm:$0xff]  ;;  %v6079_v54 = vld [vmem:[%s10358_s4 + $0x98] sm:$0xff] }
 0x880   :  { %v3588_v56 = vmul.f32 0.03125, %v3587_v55  ;;  %v6092_v55 = vld [vmem:[%s10358_s4 + $0xa0] sm:$0xff] }
 0x882   :  { %v3589_v57 = vsub.f32 %v3552_v16, %v3588_v56  ;;  %v3590_v58 = vsub.f32 %v7655_v14, %v3588_v56  ;;  %v3591_v20 = vsub.f32 %v3562_v44, %v3588_v56  ;;  %v3592_v21 = vsub.f32 %v7658_v43, %v3588_v56  ;;  %v6024_v14 = vld [vmem:[%s10358_s4 + $0x20] sm:$0xff]  ;;  %v6026_v16 = vld [vmem:[%s10358_s4 + $0x30] sm:$0xff]  ;;  %v6045_v43 = vld [vmem:[%s10358_s4 + $0x48] sm:$0xff] }
 0x883   :  { %v6046_v44 = vld [vmem:[%s10358_s4 + $0x50] sm:$0xff]  ;;  %v6093_v56 = vld [vmem:[%s10358_s4 + $0xa8] sm:$0xff] }
 0x884   :  { %v3593_v22 = vmul.f32 %v3589_v57, %v3589_v57  ;;  %v3594_v23 = vmul.f32 %v3590_v58, %v3590_v58  ;;  %v3595_v24 = vmul.f32 %v3591_v20, %v3591_v20  ;;  %v3596_v25 = vmul.f32 %v3592_v21, %v3592_v21 }
 0x886   :  { %v3597_v26 = vsel %vm275_vm1, %v3593_v22, 0.0  ;;  %v3598_v27 = vsel %vm275_vm1, %v3594_v23, 0.0  ;;  %v3600_v60 = vsel %vm275_vm1, %v3595_v24, 0.0  ;;  %v3602_v19 = vsel %vm275_vm1, %v3596_v25, 0.0  ;;  %v6110_v22 = vld [vmem:[%s10358_s4 + $0xd0] sm:$0xff]  ;;  %v6111_v23 = vld [vmem:[%s10358_s4 + $0xd8] sm:$0xff] }
 0x887   :  { %v3599_v59 = vadd.f32 %v3598_v27, %v3597_v26  ;;  %v6124_v24 = vld [vmem:[%s10358_s4 + $0xe0] sm:$0xff]  ;;  %v6125_v25 = vld [vmem:[%s10358_s4 + $0xe8] sm:$0xff]  ;;  %v6126_v26 = vld [vmem:[%s10358_s4 + $0xf0] sm:$0xff] }
 0x888   :  { %v6127_v27 = vld [vmem:[%s10358_s4 + $0xf8] sm:$0xff] }
 0x889   :  { %v3601_v61 = vadd.f32 %v3600_v60, %v3599_v59  ;;  %v6140_v59 = vld [vmem:[%s10358_s4 + $0x100] sm:$0xff]  ;;  %v6141_v60 = vld [vmem:[%s10358_s4 + $0x108] sm:$0xff] }
 0x88b   :  { %v3603_v36 = vadd.f32 %v3602_v19, %v3601_v61  ;;  %v6142_v61 = vld [vmem:[%s10358_s4 + $0x110] sm:$0xff]  ;;  %v6143_v19 = vld [vmem:[%s10358_s4 + $0x118] sm:$0xff] }
 0x88d   :  { %v3604_v37 = vrot.slane %v3603_v36, 4 }
 0x88f   :  { %v3605_v38 = vadd.f32 %v3604_v37, %v3603_v36  ;;  %v6032_v36 = vld [vmem:[%s10359_s5 + $0x20] sm:$0xff]  ;;  %v6033_v37 = vld [vmem:[%s10359_s5 + $0x28] sm:$0xff] }
 0x891   :  { %v3606_v39 = vrot.slane %v3605_v38, 2 }
 0x893   :  { %v3607_v40 = vadd.f32 %v3606_v39, %v3605_v38  ;;  %v8597_v38 = vpack.c.bf16 %v6033_v37, %v6032_v36  ;;  %v6034_v39 = vld [vmem:[%s10359_s5 + $0x30] sm:$0xff] }
 0x895   :  { %v3608_v41 = vrot.slane %v3607_v40, 1  ;;  %8598 = vmatprep.subr.bf16.mxu0 %v8597_v38 }
 0x896   :  { %8600 = vmatpush3.bf16.msra.mxu0 %v8597_v38 }
 0x897   :  { %v3609_v62 = vadd.f32 %v3608_v41, %v3607_v40  ;;  %v6035_v40 = vld [vmem:[%s10359_s5 + $0x38] sm:$0xff] }
 0x898   :  { %v8601_v41 = vpack.c.bf16 %v6035_v40, %v6034_v39  ;;  %v6116_v39 = vld [vmem:[%s10359_s5 + $0xc0] sm:$0xff]  ;;  %v6117_v40 = vld [vmem:[%s10359_s5 + $0xc8] sm:$0xff] }
 0x899   :  { %v3610_v63 = vmul.f32 0.03125, %v3609_v62  ;;  %v3741_v62 = vld [vmem:[%s10359_s5] sm:$0xff] }
 0x89a   :  { %8602 = vmatprep.subr.bf16.mxu0 %v8601_v41 }
 0x89b   :  { %v3612_v42 = vadd.f32 1e-05, %v3610_v63  ;;  %8604 = vmatpush3.bf16.msra.mxu0 %v8601_v41  ;;  %v3742_v63 = vld [vmem:[%s10359_s5 + $0x8] sm:$0xff] }
 0x89d   :  { %8830 = vrsqrt.f32 %v3612_v42  ;;  %v8605_v42 = vpack.c.bf16 %v3742_v63, %v3741_v62  ;;  %v8685_v62 = vpack.c.bf16 %v6117_v40, %v6116_v39 }
 0x89f   :  { %8606 = vmatprep.subr.bf16.mxu0 %v8605_v42 }
 0x8a7   :  { %v8831_v0 = vpop.eup %8830 }
 0x8a8   :  { %v3614_v31 = vmul.f32 %v8831_v0, %v3611_v29 }
 0x8aa   :  { %v3619_v1 = vrot.slane %v3614_v31, %v9148_v46 }
 0x8ac   :  { %v3621_v2 = vmul.f32 %v3619_v1, %v3589_v57  ;;  %v3622_v28 = vmul.f32 %v3619_v1, %v3590_v58  ;;  %v3623_v3 = vmul.f32 %v3619_v1, %v3591_v20  ;;  %v3624_v32 = vmul.f32 %v3619_v1, %v3592_v21  ;;  %v6094_v57 = vld [vmem:[%s10358_s4 + $0xb0] sm:$0xff]  ;;  %v6095_v58 = vld [vmem:[%s10358_s4 + $0xb8] sm:$0xff]  ;;  %v6108_v20 = vld [vmem:[%s10358_s4 + $0xc0] sm:$0xff] }
 0x8ad   :  { %v6109_v21 = vld [vmem:[%s10358_s4 + $0xc8] sm:$0xff] }
 0x8ae   :  { %v9925_v4 = vadd.f32 %v6019_v30, %v3621_v2  ;;  %v9927_v33 = vadd.f32 %v6019_v30, %v3622_v28  ;;  %v9929_v5 = vadd.f32 %v6019_v30, %v3623_v3  ;;  %v9931_v34 = vadd.f32 %v6019_v30, %v3624_v32  ;;  %v3743_v30 = vld [vmem:[%s10359_s5 + $0x10] sm:$0xff]  ;;  %v3744_v2 = vld [vmem:[%s10359_s5 + $0x18] sm:$0xff] }
 0x8af   :  { %v8609_v32 = vpack.c.bf16 %v3744_v2, %v3743_v30  ;;  %v6132_v30 = vld [vmem:[%s10359_s5 + $0xe0] sm:$0xff]  ;;  %v6133_v2 = vld [vmem:[%s10359_s5 + $0xe8] sm:$0xff] }
 0x8b0   :  { %v3636_v6 = vmax.f32 %v9925_v4, 0.0  ;;  %v3637_v35 = vmax.f32 %v9927_v33, 0.0  ;;  %v3638_v7 = vmax.f32 %v9929_v5, 0.0  ;;  %v3639_v8 = vmax.f32 %v9931_v34, 0.0 }
 0x8b2   :  { %v9941_v9 = vpack.c.bf16 %v3637_v35, %v3636_v6  ;;  %v9947_v10 = vpack.c.bf16 %v3639_v8, %v3638_v7 }
 0x8b4   :  { %8582 = vmatprep.subr.bf16.mxu1 %v9941_v9 }
 0x8b5   :  { %8584 = vmatpush3.bf16.msra.mxu1 %v9941_v9 }
 0x8b6   :  { %8586 = vmatprep.subr.bf16.mxu1 %v9947_v10 }
 0x8b9   :  { %8588 = vmatpush3.bf16.msra.mxu1 %v9947_v10 }
 0x8ba   :  { %8590 = vmatprep.subr.bf16.mxu1 %v9941_v9 }
 0x8bc   :  { %7668 = vmatmul.mubr.msk.f32.vlgmr.msra.gmra.mrb[28].mxu1 %vm275_vm1, %v3641_v11 }
 0x8bd   :  { %8592 = vmatpush3.bf16.msra.mxu1 %v9941_v9  ;;  %7670 = vmatprep.mubr.msk.f32.mxu1 %vm275_vm1, %v3642_v12 }
 0x8be   :  { %8594 = vmatprep.subr.bf16.mxu1 %v9947_v10 }
 0x8c0   :  { %7671 = vmatmul.mubr.msk.f32.gmra.mrb[30].mxu1 %vm275_vm1, %v3643_v13 }
 0x8c1   :  { %8596 = vmatpush3.bf16.msra.mxu1 %v9947_v10  ;;  %7681 = vmatprep.mubr.msk.f32.mxu1 %vm275_vm1, %v6024_v14  ;;  %v6054_v14 = vld [vmem:[%s10359_s5 + $0x50] sm:$0xff] }
 0x8c2   :  { %8614 = vmatprep.subr.bf16.mxu1 %v9941_v9 }
 0x8c4   :  { %7682 = vmatmul.mubr.msk.f32.vlgmr.msra.gmra.mrb[32].mxu1 %vm275_vm1, %v6025_v15  ;;  %v6055_v15 = vld [vmem:[%s10359_s5 + $0x58] sm:$0xff] }
 0x8c5   :  { %8616 = vmatpush3.bf16.msra.mxu1 %v9941_v9  ;;  %7684 = vmatprep.mubr.msk.f32.mxu1 %vm275_vm1, %v6026_v16 }
 0x8c6   :  { %8618 = vmatprep.subr.bf16.mxu1 %v9947_v10 }
 0x8c8   :  { %7685 = vmatmul.mubr.msk.f32.gmra.mrb[34].mxu1 %vm275_vm1, %v6027_v17  ;;  %v8625_v17 = vpack.c.bf16 %v6055_v15, %v6054_v14  ;;  %v6148_v14 = vld [vmem:[%s10359_s5 + $0x100] sm:$0xff]  ;;  %v6149_v15 = vld [vmem:[%s10359_s5 + $0x108] sm:$0xff] }
 0x8c9   :  { %8620 = vmatpush3.bf16.msra.mxu1 %v9947_v10  ;;  %7723 = vmatprep.mubr.msk.f32.mxu1 %vm275_vm1, %v6044_v18 }
 0x8ca   :  { %8630 = vmatprep.subr.bf16.mxu1 %v9941_v9 }
 0x8cc   :  { %7724 = vmatmul.mubr.msk.f32.vlgmr.msra.gmra.mrb[36].mxu1 %vm275_vm1, %v6045_v43  ;;  %v6068_v43 = vld [vmem:[%s10359_s5 + $0x60] sm:$0xff] }
 0x8cd   :  { %8632 = vmatpush3.bf16.msra.mxu1 %v9941_v9  ;;  %7726 = vmatprep.mubr.msk.f32.mxu1 %vm275_vm1, %v6046_v44  ;;  %v6069_v44 = vld [vmem:[%s10359_s5 + $0x68] sm:$0xff] }
 0x8ce   :  { %8634 = vmatprep.subr.bf16.mxu1 %v9947_v10 }
 0x8d0   :  { %7727 = vmatmul.mubr.msk.f32.gmra.mrb[38].mxu1 %vm275_vm1, %v6047_v45 }
 0x8d1   :  { %8636 = vmatpush3.bf16.msra.mxu1 %v9947_v10  ;;  %7751 = vmatprep.mubr.msk.f32.mxu1 %vm275_vm1, %v6060_v47  ;;  %v8637_v47 = vpack.c.bf16 %v6069_v44, %v6068_v43  ;;  %v6150_v43 = vld [vmem:[%s10359_s5 + $0x110] sm:$0xff]  ;;  %v6151_v44 = vld [vmem:[%s10359_s5 + $0x118] sm:$0xff] }
 0x8d2   :  { %8646 = vmatprep.subr.bf16.mxu1 %v9941_v9 }
 0x8d4   :  { %7752 = vmatmul.mubr.msk.f32.vlgmr.msra.gmra.mrb[40].mxu1 %vm275_vm1, %v6061_v48 }
 0x8d5   :  { %8648 = vmatpush3.bf16.msra.mxu1 %v9941_v9  ;;  %7754 = vmatprep.mubr.msk.f32.mxu1 %vm275_vm1, %v6062_v49  ;;  %v6070_v49 = vld [vmem:[%s10359_s5 + $0x70] sm:$0xff] }
 0x8d6   :  { %8650 = vmatprep.subr.bf16.mxu1 %v9947_v10 }
 0x8d8   :  { %7755 = vmatmul.mubr.msk.f32.gmra.mrb[42].mxu1 %vm275_vm1, %v6063_v50  ;;  %v6071_v50 = vld [vmem:[%s10359_s5 + $0x78] sm:$0xff] }
 0x8d9   :  { %8652 = vmatpush3.bf16.msra.mxu1 %v9947_v10  ;;  %7779 = vmatprep.mubr.msk.f32.mxu1 %vm275_vm1, %v6076_v51 }
 0x8da   :  { %8662 = vmatprep.subr.bf16.mxu1 %v9941_v9 }
 0x8dc   :  { %7780 = vmatmul.mubr.msk.f32.vlgmr.msra.gmra.mrb[44].mxu1 %vm275_vm1, %v6077_v52  ;;  %v8641_v52 = vpack.c.bf16 %v6071_v50, %v6070_v49 }
 0x8dd   :  { %8664 = vmatpush3.bf16.msra.mxu1 %v9941_v9  ;;  %7782 = vmatprep.mubr.msk.f32.mxu1 %vm275_vm1, %v6078_v53 }
 0x8de   :  { %8666 = vmatprep.subr.bf16.mxu1 %v9947_v10 }
 0x8e0   :  { %7783 = vmatmul.mubr.msk.f32.gmra.mrb[46].mxu1 %vm275_vm1, %v6079_v54  ;;  %v6084_v54 = vld [vmem:[%s10359_s5 + $0x80] sm:$0xff] }
 0x8e1   :  { %8668 = vmatpush3.bf16.msra.mxu1 %v9947_v10  ;;  %7807 = vmatprep.mubr.msk.f32.mxu1 %vm275_vm1, %v6092_v55  ;;  %v6085_v55 = vld [vmem:[%s10359_s5 + $0x88] sm:$0xff] }
 0x8e2   :  { %8678 = vmatprep.subr.bf16.mxu1 %v9941_v9 }
 0x8e4   :  { %7808 = vmatmul.mubr.msk.f32.vlgmr.msra.gmra.mrb[48].mxu1 %vm275_vm1, %v6093_v56 }
 0x8e5   :  { %8680 = vmatpush3.bf16.msra.mxu1 %v9941_v9  ;;  %7810 = vmatprep.mubr.msk.f32.mxu1 %vm275_vm1, %v6094_v57  ;;  %v8653_v57 = vpack.c.bf16 %v6085_v55, %v6084_v54  ;;  %v5569_v54 = vld [vmem:[%s10360_s6 + $0x10] sm:$0xff]  ;;  %v5570_v55 = vld [vmem:[%s10360_s6 + $0x18] sm:$0xff] }
 0x8e6   :  { %8682 = vmatprep.subr.bf16.mxu1 %v9947_v10 }
 0x8e8   :  { %7811 = vmatmul.mubr.msk.f32.gmra.mrb[50].mxu1 %vm275_vm1, %v6095_v58 }
 0x8e9   :  { %8684 = vmatpush3.bf16.msra.mxu1 %v9947_v10  ;;  %7835 = vmatprep.mubr.msk.f32.mxu1 %vm275_vm1, %v6108_v20  ;;  %v6086_v20 = vld [vmem:[%s10359_s5 + $0x90] sm:$0xff] }
 0x8ea   :  { %8694 = vmatprep.subr.bf16.mxu1 %v9941_v9 }
 0x8ec   :  { %7836 = vmatmul.mubr.msk.f32.vlgmr.msra.gmra.mrb[52].mxu1 %vm275_vm1, %v6109_v21  ;;  %v6087_v21 = vld [vmem:[%s10359_s5 + $0x98] sm:$0xff] }
 0x8ed   :  { %8696 = vmatpush3.bf16.msra.mxu1 %v9941_v9  ;;  %7838 = vmatprep.mubr.msk.f32.mxu1 %vm275_vm1, %v6110_v22 }
 0x8ee   :  { %8698 = vmatprep.subr.bf16.mxu1 %v9947_v10 }
 0x8f0   :  { %7839 = vmatmul.mubr.msk.f32.gmra.mrb[54].mxu1 %vm275_vm1, %v6111_v23  ;;  %v8657_v23 = vpack.c.bf16 %v6087_v21, %v6086_v20 }
 0x8f1   :  { %8700 = vmatpush3.bf16.msra.mxu1 %v9947_v10  ;;  %7863 = vmatprep.mubr.msk.f32.mxu1 %vm275_vm1, %v6124_v24 }
 0x8f2   :  { %8710 = vmatprep.subr.bf16.mxu1 %v9941_v9 }
 0x8f4   :  { %7864 = vmatmul.mubr.msk.f32.vlgmr.msra.gmra.mrb[56].mxu1 %vm275_vm1, %v6125_v25  ;;  %v6100_v25 = vld [vmem:[%s10359_s5 + $0xa0] sm:$0xff] }
 0x8f5   :  { %8712 = vmatpush3.bf16.msra.mxu1 %v9941_v9  ;;  %7866 = vmatprep.mubr.msk.f32.mxu1 %vm275_vm1, %v6126_v26  ;;  %v6052_v9 = vld [vmem:[%s10359_s5 + $0x40] sm:$0xff]  ;;  %v6101_v26 = vld [vmem:[%s10359_s5 + $0xa8] sm:$0xff] }
 0x8f6   :  { %8714 = vmatprep.subr.bf16.mxu1 %v9947_v10 }
 0x8f8   :  { %7867 = vmatmul.mubr.msk.f32.gmra.mrb[58].mxu1 %vm275_vm1, %v6127_v27 }
 0x8f9   :  { %8716 = vmatpush3.bf16.msra.mxu1 %v9947_v10  ;;  %7891 = vmatprep.mubr.msk.f32.mxu1 %vm275_vm1, %v6140_v59  ;;  %v6053_v10 = vld [vmem:[%s10359_s5 + $0x48] sm:$0xff]  ;;  %v8669_v59 = vpack.c.bf16 %v6101_v26, %v6100_v25 }
 0x8fa   :  { %v8621_v13 = vpack.c.bf16 %v6053_v10, %v6052_v9  ;;  %v6134_v9 = vld [vmem:[%s10359_s5 + $0xf0] sm:$0xff]  ;;  %v6135_v10 = vld [vmem:[%s10359_s5 + $0xf8] sm:$0xff] }
 0x8fc   :  { %7892 = vmatmul.mubr.msk.f32.vlgmr.msra.gmra.mrb[60].mxu1 %vm275_vm1, %v6141_v60 }
 0x8fd   :  { %7894 = vmatprep.mubr.msk.f32.mxu1 %vm275_vm1, %v6142_v61  ;;  %v6102_v61 = vld [vmem:[%s10359_s5 + $0xb0] sm:$0xff] }
 0x900   :  { %7895 = vmatmul.mubr.msk.f32.gmra.mrb[62].mxu1 %vm275_vm1, %v6143_v19  ;;  %v6103_v19 = vld [vmem:[%s10359_s5 + $0xb8] sm:$0xff] }
 0x901   :  { %v8673_v37 = vpack.c.bf16 %v6103_v19, %v6102_v61 }
 0x98f   :  { %v7669_v29 = vpop.f32.mrb[28].mxu1 }
 0x990   :  { %v3722_v0 = vpop.f32.mrb[29].mxu1 }
 0x993   :  { %v7672_v31 = vpop.f32.mrb[30].mxu1 }
 0x994   :  { %v3732_v1 = vpop.f32.mrb[31].mxu1 }
 0x997   :  { %v7683_v28 = vpop.f32.mrb[32].mxu1 }
 0x998   :  { %v3828_v3 = vpop.f32.mrb[33].mxu1 }
 0x999   :  { %7695 = vmatprep.mubr.msk.f32.mxu0 %vm275_vm1, %v3828_v3  ;;  %v8701_v3 = vpack.c.bf16 %v6133_v2, %v6132_v30 }
 0x99a   :  { %7696 = vmatmul.mubr.msk.f32.vlgmr.msra.gmra.mrb[56].mxu0 %vm275_vm1, %v7683_v28 }
 0x99b   :  { %v7686_v11 = vpop.f32.mrb[34].mxu1  ;;  %8608 = vmatpush3.bf16.msra.mxu0 %v8605_v42  ;;  %v6118_v42 = vld [vmem:[%s10359_s5 + $0xd0] sm:$0xff] }
 0x99c   :  { %v3838_v12 = vpop.f32.mrb[35].mxu1  ;;  %8610 = vmatprep.subr.bf16.mxu0 %v8609_v32 }
 0x99d   :  { %7698 = vmatprep.mubr.msk.f32.mxu0 %vm275_vm1, %v3838_v12  ;;  %v8705_v12 = vpack.c.bf16 %v6135_v10, %v6134_v9 }
 0x99e   :  { %7699 = vmatmul.mubr.msk.f32.gmra.mrb[58].mxu0 %vm275_vm1, %v7686_v11 }
 0x99f   :  { %8612 = vmatpush3.bf16.msra.mxu0 %v8609_v32  ;;  %7709 = vmatprep.mubr.msk.f32.mxu0 %vm275_vm1, %v3722_v0  ;;  %v7725_v16 = vpop.f32.mrb[36].mxu1 }
 0x9a0   :  { %8622 = vmatprep.subr.bf16.mxu0 %v8621_v13  ;;  %v4129_v18 = vpop.f32.mrb[37].mxu1 }
 0x9a2   :  { %7710 = vmatmul.mubr.msk.f32.vlgmr.msra.gmra.mrb[56].mxu0 %vm275_vm1, %v7669_v29  ;;  %v6119_v29 = vld [vmem:[%s10359_s5 + $0xd8] sm:$0xff] }
 0x9a3   :  { %7712 = vmatprep.mubr.msk.f32.mxu0 %vm275_vm1, %v3732_v1  ;;  %8624 = vmatpush3.bf16.msra.mxu0 %v8621_v13  ;;  %v7728_v45 = vpop.f32.mrb[38].mxu1 }
 0x9a4   :  { %8626 = vmatprep.subr.bf16.mxu0 %v8625_v17  ;;  %v4139_v48 = vpop.f32.mrb[39].mxu1 }
 0x9a6   :  { %7713 = vmatmul.mubr.msk.f32.gmra.mrb[58].mxu0 %vm275_vm1, %v7672_v31  ;;  %v8689_v31 = vpack.c.bf16 %v6119_v29, %v6118_v42 }
 0x9a7   :  { %8628 = vmatpush3.bf16.msra.mxu0 %v8625_v17  ;;  %7737 = vmatprep.mubr.msk.f32.mxu0 %vm275_vm1, %v4129_v18  ;;  %v7753_v51 = vpop.f32.mrb[40].mxu1  ;;  %v8717_v17 = vpack.c.bf16 %v6149_v15, %v6148_v14 }
 0x9a8   :  { %8638 = vmatprep.subr.bf16.mxu0 %v8637_v47  ;;  %v4337_v53 = vpop.f32.mrb[41].mxu1 }
 0x9aa   :  { %7738 = vmatmul.mubr.msk.f32.vlgmr.msra.gmra.mrb[56].mxu0 %vm275_vm1, %v7725_v16 }
 0x9ab   :  { %8640 = vmatpush3.bf16.msra.mxu0 %v8637_v47  ;;  %7740 = vmatprep.mubr.msk.f32.mxu0 %vm275_vm1, %v4139_v48  ;;  %v7756_v56 = vpop.f32.mrb[42].mxu1  ;;  %v8721_v47 = vpack.c.bf16 %v6151_v44, %v6150_v43 }
 0x9ac   :  { %8642 = vmatprep.subr.bf16.mxu0 %v8641_v52  ;;  %v4347_v58 = vpop.f32.mrb[43].mxu1 }
 0x9ae   :  { %7741 = vmatmul.mubr.msk.f32.gmra.mrb[58].mxu0 %vm275_vm1, %v7728_v45 }
 0x9af   :  { %8644 = vmatpush3.bf16.msra.mxu0 %v8641_v52  ;;  %7765 = vmatprep.mubr.msk.f32.mxu0 %vm275_vm1, %v4337_v53  ;;  %v7781_v22 = vpop.f32.mrb[44].mxu1  ;;  %v5568_v52 = vld [vmem:[%s10360_s6 + $0x8] sm:$0xff] }
 0x9b0   :  { %8654 = vmatprep.subr.bf16.mxu0 %v8653_v57  ;;  %v4545_v24 = vpop.f32.mrb[45].mxu1 }
 0x9b2   :  { %7766 = vmatmul.mubr.msk.f32.vlgmr.msra.gmra.mrb[56].mxu0 %vm275_vm1, %v7753_v51  ;;  %v5567_v51 = vld [vmem:[%s10360_s6] sm:$0xff] }
 0x9b3   :  { %8656 = vmatpush3.bf16.msra.mxu0 %v8653_v57  ;;  %7768 = vmatprep.mubr.msk.f32.mxu0 %vm275_vm1, %v4347_v58  ;;  %v7784_v27 = vpop.f32.mrb[46].mxu1  ;;  %v8725_v53 = vpack.c.bf16 %v5568_v52, %v5567_v51 }
 0x9b4   :  { %8658 = vmatprep.subr.bf16.mxu0 %v8657_v23  ;;  %v4555_v60 = vpop.f32.mrb[47].mxu1 }
 0x9b5   :  { %8726 = vmatprep.subr.bf16.mxu1 %v8725_v53 }
 0x9b6   :  { %7769 = vmatmul.mubr.msk.f32.gmra.mrb[58].mxu0 %vm275_vm1, %v7756_v56  ;;  %8728 = vmatpush3.bf16.msra.mxu1 %v8725_v53  ;;  %v8729_v56 = vpack.c.bf16 %v5570_v55, %v5569_v54 }
 0x9b7   :  { %8660 = vmatpush3.bf16.msra.mxu0 %v8657_v23  ;;  %7793 = vmatprep.mubr.msk.f32.mxu0 %vm275_vm1, %v4545_v24  ;;  %v7809_v36 = vpop.f32.mrb[48].mxu1 }
 0x9b8   :  { %8670 = vmatprep.subr.bf16.mxu0 %v8669_v59  ;;  %v4753_v38 = vpop.f32.mrb[49].mxu1  ;;  %8730 = vmatprep.subr.bf16.mxu1 %v8729_v56 }
 0x9ba   :  { %7794 = vmatmul.mubr.msk.f32.vlgmr.msra.gmra.mrb[56].mxu0 %vm275_vm1, %v7781_v22  ;;  %8732 = vmatpush3.bf16.msra.mxu1 %v8729_v56 }
 0x9bb   :  { %8672 = vmatpush3.bf16.msra.mxu0 %v8669_v59  ;;  %7796 = vmatprep.mubr.msk.f32.mxu0 %vm275_vm1, %v4555_v60  ;;  %v7812_v41 = vpop.f32.mrb[50].mxu1 }
 0x9bc   :  { %8674 = vmatprep.subr.bf16.mxu0 %v8673_v37  ;;  %v4763_v63 = vpop.f32.mrb[51].mxu1 }
 0x9be   :  { %7797 = vmatmul.mubr.msk.f32.gmra.mrb[58].mxu0 %vm275_vm1, %v7784_v27 }
 0x9bf   :  { %8676 = vmatpush3.bf16.msra.mxu0 %v8673_v37  ;;  %7821 = vmatprep.mubr.msk.f32.mxu0 %vm275_vm1, %v4753_v38  ;;  %v7837_v0 = vpop.f32.mrb[52].mxu1 }
 0x9c0   :  { %8686 = vmatprep.subr.bf16.mxu0 %v8685_v62  ;;  %v4961_v1 = vpop.f32.mrb[53].mxu1 }
 0x9c2   :  { %7822 = vmatmul.mubr.msk.f32.vlgmr.msra.gmra.mrb[56].mxu0 %vm275_vm1, %v7809_v36 }
 0x9c3   :  { %8688 = vmatpush3.bf16.msra.mxu0 %v8685_v62  ;;  %7824 = vmatprep.mubr.msk.f32.mxu0 %vm275_vm1, %v4763_v63  ;;  %v7840_v28 = vpop.f32.mrb[54].mxu1 }
 0x9c4   :  { %8690 = vmatprep.subr.bf16.mxu0 %v8689_v31  ;;  %v4971_v32 = vpop.f32.mrb[55].mxu1 }
 0x9c6   :  { %7825 = vmatmul.mubr.msk.f32.gmra.mrb[58].mxu0 %vm275_vm1, %v7812_v41 }
 0x9c7   :  { %8692 = vmatpush3.bf16.msra.mxu0 %v8689_v31  ;;  %7849 = vmatprep.mubr.msk.f32.mxu0 %vm275_vm1, %v4961_v1  ;;  %v7865_v11 = vpop.f32.mrb[56].mxu1 }
 0x9c8   :  { %8702 = vmatprep.subr.bf16.mxu0 %v8701_v3  ;;  %v5169_v13 = vpop.f32.mrb[57].mxu1 }
 0x9ca   :  { %7850 = vmatmul.mubr.msk.f32.vlgmr.msra.gmra.mrb[56].mxu0 %vm275_vm1, %v7837_v0 }
 0x9cb   :  { %8704 = vmatpush3.bf16.msra.mxu0 %v8701_v3  ;;  %7852 = vmatprep.mubr.msk.f32.mxu0 %vm275_vm1, %v4971_v32  ;;  %v7868_v16 = vpop.f32.mrb[58].mxu1 }
 0x9cc   :  { %8706 = vmatprep.subr.bf16.mxu0 %v8705_v12  ;;  %v5179_v18 = vpop.f32.mrb[59].mxu1 }
 0x9ce   :  { %7853 = vmatmul.mubr.msk.f32.gmra.mrb[58].mxu0 %vm275_vm1, %v7840_v28 }
 0x9cf   :  { %8708 = vmatpush3.bf16.msra.mxu0 %v8705_v12  ;;  %7877 = vmatprep.mubr.msk.f32.mxu0 %vm275_vm1, %v5169_v13  ;;  %v7893_v45 = vpop.f32.mrb[60].mxu1 }
 0x9d0   :  { %8718 = vmatprep.subr.bf16.mxu0 %v8717_v17  ;;  %v5377_v48 = vpop.f32.mrb[61].mxu1 }
 0x9d2   :  { %7878 = vmatmul.mubr.msk.f32.vlgmr.msra.gmra.mrb[56].mxu0 %vm275_vm1, %v7865_v11 }
 0x9d3   :  { %8720 = vmatpush3.bf16.msra.mxu0 %v8717_v17  ;;  %7880 = vmatprep.mubr.msk.f32.mxu0 %vm275_vm1, %v5179_v18  ;;  %v7896_v49 = vpop.f32.mrb[62].mxu1  ;;  %v5538_v18 = vld [vmem:[%s10365_s11] sm:$0x1] }
 0x9d4   :  { %8722 = vmatprep.subr.bf16.mxu0 %v8721_v47  ;;  %v5387_v50 = vpop.f32.mrb[63].mxu1 }
 0x9d6   :  { %7881 = vmatmul.mubr.msk.f32.gmra.mrb[58].mxu0 %vm275_vm1, %v7868_v16 }
 0x9d7   :  { %8724 = vmatpush3.bf16.msra.mxu0 %v8721_v47  ;;  %7905 = vmatprep.mubr.msk.f32.mxu0 %vm275_vm1, %v5377_v48  ;;  %v6156_v47 = vld [vmem:[%s10366_s12] ss:$0 sm:$0xff] }
 0x9da   :  { %7906 = vmatmul.mubr.msk.f32.vlgmr.msra.gmra.mrb[56].mxu0 %vm275_vm1, %v7893_v45 }
 0x9db   :  { %7908 = vmatprep.mubr.msk.f32.mxu0 %vm275_vm1, %v5387_v50 }
 0x9de   :  { %7909 = vmatmul.mubr.msk.f32.gmra.mrb[58].mxu0 %vm275_vm1, %v7896_v49 }
 0xaad   :  { %v7907_v57 = vpop.f32.mrb[56].mxu0 }
 0xaae   :  { %v5503_v58 = vsel %vm275_vm1, %v7907_v57, 0.0  ;;  %v5479_v20 = vpop.f32.mrb[57].mxu0 }
 0xaaf   :  { %v5502_v21 = vsel %vm275_vm1, %v5479_v20, 0.0 }
 0xab0   :  { %v5504_v22 = vadd.f32 %v5503_v58, %v5502_v21 }
 0xab1   :  { %v7910_v23 = vpop.f32.mrb[58].mxu0 }
 0xab2   :  { %v5489_v24 = vpop.f32.mrb[59].mxu0  ;;  %v5507_v27 = vsel %vm275_vm1, %v7910_v23, 0.0 }
 0xab3   :  { %v5505_v25 = vsel %vm275_vm1, %v5489_v24, 0.0 }
 0xab4   :  { %v5506_v26 = vadd.f32 %v5505_v25, %v5504_v22 }
 0xab6   :  { %v5508_v59 = vadd.f32 %v5507_v27, %v5506_v26 }
 0xab8   :  { %v5509_v60 = vrot.slane %v5508_v59, 4 }
 0xaba   :  { %v5510_v61 = vadd.f32 %v5509_v60, %v5508_v59 }
 0xabc   :  { %v5511_v19 = vrot.slane %v5510_v61, 2 }
 0xabe   :  { %v5512_v36 = vadd.f32 %v5511_v19, %v5510_v61 }
 0xac0   :  { %v5513_v37 = vrot.slane %v5512_v36, 1 }
 0xac2   :  { %v5514_v38 = vadd.f32 %v5513_v37, %v5512_v36 }
 0xac4   :  { %v5515_v39 = vmul.f32 0.03125, %v5514_v38 }
 0xac6   :  { %v5516_v40 = vsub.f32 %v5479_v20, %v5515_v39  ;;  %v5517_v41 = vsub.f32 %v7907_v57, %v5515_v39  ;;  %v5518_v62 = vsub.f32 %v5489_v24, %v5515_v39  ;;  %v5519_v63 = vsub.f32 %v7910_v23, %v5515_v39 }
 0xac8   :  { %v5520_v42 = vmul.f32 %v5516_v40, %v5516_v40  ;;  %v5521_v29 = vmul.f32 %v5517_v41, %v5517_v41  ;;  %v5522_v0 = vmul.f32 %v5518_v62, %v5518_v62  ;;  %v5523_v31 = vmul.f32 %v5519_v63, %v5519_v63 }
 0xaca   :  { %v5524_v1 = vsel %vm275_vm1, %v5520_v42, 0.0  ;;  %v5525_v30 = vsel %vm275_vm1, %v5521_v29, 0.0  ;;  %v5527_v28 = vsel %vm275_vm1, %v5522_v0, 0.0  ;;  %v5529_v32 = vsel %vm275_vm1, %v5523_v31, 0.0 }
 0xacb   :  { %v5526_v2 = vadd.f32 %v5525_v30, %v5524_v1 }
 0xacd   :  { %v5528_v3 = vadd.f32 %v5527_v28, %v5526_v2 }
 0xacf   :  { %v5530_v9 = vadd.f32 %v5529_v32, %v5528_v3 }
 0xad1   :  { %v5531_v10 = vrot.slane %v5530_v9, 4 }
 0xad3   :  { %v5532_v11 = vadd.f32 %v5531_v10, %v5530_v9 }
 0xad5   :  { %v5533_v12 = vrot.slane %v5532_v11, 2 }
 0xad7   :  { %v5534_v13 = vadd.f32 %v5533_v12, %v5532_v11 }
 0xad9   :  { %v5535_v14 = vrot.slane %v5534_v13, 1 }
 0xadb   :  { %v5536_v15 = vadd.f32 %v5535_v14, %v5534_v13 }
 0xadd   :  { %v5537_v16 = vmul.f32 0.03125, %v5536_v15 }
 0xadf   :  { %v5539_v17 = vadd.f32 1e-05, %v5537_v16 }
 0xae1   :  { %8832 = vrsqrt.f32 %v5539_v17 }
 0xaeb   :  { %v8833_v43 = vpop.eup %8832 }
 0xaec   :  { %v5541_v44 = vmul.f32 %v8833_v43, %v5538_v18 }
 0xaee   :  { %v5546_v45 = vrot.slane %v5541_v44, %v9148_v46 }
 0xaf0   :  { %v5549_v48 = vmul.f32 %v5546_v45, %v5517_v41  ;;  %v5550_v49 = vmul.f32 %v5546_v45, %v5518_v62  ;;  %v5548_v50 = vmul.f32 %v5546_v45, %v5516_v40  ;;  %v5551_v51 = vmul.f32 %v5546_v45, %v5519_v63  ;;  %v5704_v45 = vld [vmem:[%s10367_s13] sm:$0x1] }
 0xaf2   :  { %v5560_v52 = vadd.f32 %v6156_v47, %v5549_v48  ;;  %v5561_v53 = vadd.f32 %v6156_v47, %v5550_v49  ;;  %v5559_v54 = vadd.f32 %v6156_v47, %v5548_v50  ;;  %v5562_v57 = vadd.f32 %v6156_v47, %v5551_v51  ;;  %v6161_v50 = vld [vmem:[%s10368_s14] ss:$0 sm:$0xff] }
 0xaf4   :  { %v5564_v55 = vmax.f32 %v5560_v52, 0.0  ;;  %v5563_v56 = vmax.f32 %v5559_v54, 0.0  ;;  %v5565_v58 = vmax.f32 %v5561_v53, 0.0  ;;  %v5566_v20 = vmax.f32 %v5562_v57, 0.0 }
 0xaf6   :  { %7919 = vmatprep.mubr.msk.f32.mxu1 %vm275_vm1, %v5563_v56 }
 0xaf7   :  { %7920 = vmatmul.mubr.msk.f32.vlgmr.msra.gmra.mrb[64].mxu1 %vm275_vm1, %v5564_v55 }
 0xaf8   :  { %7922 = vmatprep.mubr.msk.f32.mxu1 %vm275_vm1, %v5565_v58 }
 0xafb   :  { %7923 = vmatmul.mubr.msk.f32.gmra.mrb[66].mxu1 %vm275_vm1, %v5566_v20 }
 0xbca   :  { %v7921_v21 = vpop.f32.mrb[64].mxu1 }
 0xbcb   :  { %v5669_v22 = vsel %vm275_vm1, %v7921_v21, 0.0  ;;  %v5649_v23 = vpop.f32.mrb[65].mxu1 }
 0xbcc   :  { %v5668_v24 = vsel %vm275_vm1, %v5649_v23, 0.0 }
 0xbcd   :  { %v5670_v25 = vadd.f32 %v5669_v22, %v5668_v24 }
 0xbce   :  { %v7924_v26 = vpop.f32.mrb[66].mxu1 }
 0xbcf   :  { %v5659_v27 = vpop.f32.mrb[67].mxu1  ;;  %v5673_v61 = vsel %vm275_vm1, %v7924_v26, 0.0 }
 0xbd0   :  { %v5671_v59 = vsel %vm275_vm1, %v5659_v27, 0.0 }
 0xbd1   :  { %v5672_v60 = vadd.f32 %v5671_v59, %v5670_v25 }
 0xbd3   :  { %v5674_v19 = vadd.f32 %v5673_v61, %v5672_v60 }
 0xbd5   :  { %v5675_v36 = vrot.slane %v5674_v19, 4 }
 0xbd7   :  { %v5676_v37 = vadd.f32 %v5675_v36, %v5674_v19 }
 0xbd9   :  { %v5677_v38 = vrot.slane %v5676_v37, 2 }
 0xbdb   :  { %v5678_v39 = vadd.f32 %v5677_v38, %v5676_v37 }
 0xbdd   :  { %v5679_v40 = vrot.slane %v5678_v39, 1 }
 0xbdf   :  { %v5680_v41 = vadd.f32 %v5679_v40, %v5678_v39 }
 0xbe1   :  { %v5681_v62 = vmul.f32 0.03125, %v5680_v41 }
 0xbe3   :  { %v5682_v63 = vsub.f32 %v5649_v23, %v5681_v62  ;;  %v5683_v42 = vsub.f32 %v7921_v21, %v5681_v62  ;;  %v5684_v29 = vsub.f32 %v5659_v27, %v5681_v62  ;;  %v5685_v0 = vsub.f32 %v7924_v26, %v5681_v62 }
 0xbe5   :  { %v5686_v31 = vmul.f32 %v5682_v63, %v5682_v63  ;;  %v5687_v1 = vmul.f32 %v5683_v42, %v5683_v42  ;;  %v5688_v30 = vmul.f32 %v5684_v29, %v5684_v29  ;;  %v5689_v2 = vmul.f32 %v5685_v0, %v5685_v0 }
 0xbe7   :  { %v5690_v28 = vsel %vm275_vm1, %v5686_v31, 0.0  ;;  %v5691_v3 = vsel %vm275_vm1, %v5687_v1, 0.0  ;;  %v5693_v9 = vsel %vm275_vm1, %v5688_v30, 0.0  ;;  %v5695_v11 = vsel %vm275_vm1, %v5689_v2, 0.0 }
 0xbe8   :  { %v5692_v32 = vadd.f32 %v5691_v3, %v5690_v28 }
 0xbea   :  { %v5694_v10 = vadd.f32 %v5693_v9, %v5692_v32 }
 0xbec   :  { %v5696_v12 = vadd.f32 %v5695_v11, %v5694_v10 }
 0xbee   :  { %v5697_v13 = vrot.slane %v5696_v12, 4 }
 0xbf0   :  { %v5698_v14 = vadd.f32 %v5697_v13, %v5696_v12 }
 0xbf2   :  { %v5699_v15 = vrot.slane %v5698_v14, 2 }
 0xbf4   :  { %v5700_v16 = vadd.f32 %v5699_v15, %v5698_v14 }
 0xbf6   :  { %v5701_v17 = vrot.slane %v5700_v16, 1 }
 0xbf8   :  { %v5702_v18 = vadd.f32 %v5701_v17, %v5700_v16  ;;  %v5773_v16 = vld [vmem:[%s10369_s15] sm:$0x1]  ;;  %s8838_s15 = scalar_lea.vmem %s5808_s23, 512 }
 0xbf9   :  { %p8839_p0 = scmp.ne.s32.totalorder %s5808_s23, %s8838_s15  ;;  %p8844_p2 = scmp.lt.s32.totalorder %s8838_s15, %s8838_s15 }
 0xbfa   :  { %v5703_v43 = vmul.f32 0.03125, %v5702_v18 }
 0xbfb   :  { %p8845_p3 = por %p8844_p2, %p8843_p1 }
 0xbfc   :  { %v5705_v44 = vadd.f32 1e-05, %v5703_v43 }
 0xbfd   :  { %p8846_p4 = pnand %p8845_p3, %p8839_p0 }
 0xbfe   :  { %8834 = vrsqrt.f32 %v5705_v44  ;;  %v6162_v44 = vld [vmem:[%s10370_s16] ss:$0 sm:$0xff] }
 0xc08   :  { %v8835_v47 = vpop.eup %8834 }
 0xc09   :  { %v5707_v48 = vmul.f32 %v8835_v47, %v5704_v45 }
 0xc0b   :  { %v5712_v49 = vrot.slane %v5707_v48, %v9148_v46 }
 0xc0d   :  { %v5714_v51 = vmul.f32 %v5712_v49, %v5682_v63  ;;  %v5715_v52 = vmul.f32 %v5712_v49, %v5683_v42  ;;  %v5716_v53 = vmul.f32 %v5712_v49, %v5684_v29  ;;  %v5717_v54 = vmul.f32 %v5712_v49, %v5685_v0 }
 0xc0f   :  { %v5725_v55 = vadd.f32 %v6161_v50, %v5714_v51  ;;  %v5726_v56 = vadd.f32 %v6161_v50, %v5715_v52  ;;  %v5727_v57 = vadd.f32 %v6161_v50, %v5716_v53  ;;  %v5728_v58 = vadd.f32 %v6161_v50, %v5717_v54 }
 0xc11   :  { %v5729_v20 = vmax.f32 %v5725_v55, 0.0  ;;  %v5730_v21 = vmax.f32 %v5726_v56, 0.0  ;;  %v5731_v22 = vmax.f32 %v5727_v57, 0.0  ;;  %v5732_v23 = vmax.f32 %v5728_v58, 0.0 }
 0xc13   :  { %v5733_v24 = vadd.f32 %v5729_v20, %v3636_v6  ;;  %v5734_v25 = vadd.f32 %v5730_v21, %v3637_v35  ;;  %v5735_v26 = vadd.f32 %v5731_v22, %v3638_v7  ;;  %v5736_v27 = vadd.f32 %v5732_v23, %v3639_v8 }
 0xc15   :  { %v5737_v59 = vsel %vm275_vm1, %v5733_v24, 0.0  ;;  %v5738_v60 = vsel %vm275_vm1, %v5734_v25, 0.0  ;;  %v5740_v19 = vsel %vm275_vm1, %v5735_v26, 0.0  ;;  %v5742_v4 = vsel %vm275_vm1, %v5736_v27, 0.0 }
 0xc16   :  { %v5739_v61 = vadd.f32 %v5738_v60, %v5737_v59 }
 0xc18   :  { %v5741_v36 = vadd.f32 %v5740_v19, %v5739_v61 }
 0xc1a   :  { %v5743_v6 = vadd.f32 %v5742_v4, %v5741_v36 }
 0xc1c   :  { %v5744_v37 = vrot.slane %v5743_v6, 4 }
 0xc1e   :  { %v5745_v33 = vadd.f32 %v5744_v37, %v5743_v6 }
 0xc20   :  { %v5746_v35 = vrot.slane %v5745_v33, 2 }
 0xc22   :  { %v5747_v38 = vadd.f32 %v5746_v35, %v5745_v33 }
 0xc24   :  { %v5748_v5 = vrot.slane %v5747_v38, 1 }
 0xc26   :  { %v5749_v7 = vadd.f32 %v5748_v5, %v5747_v38 }
 0xc28   :  { %v5750_v39 = vmul.f32 0.03125, %v5749_v7 }
 0xc2a   :  { %v5751_v34 = vsub.f32 %v5733_v24, %v5750_v39  ;;  %v5752_v8 = vsub.f32 %v5734_v25, %v5750_v39  ;;  %v5753_v40 = vsub.f32 %v5735_v26, %v5750_v39  ;;  %v5754_v41 = vsub.f32 %v5736_v27, %v5750_v39 }
 0xc2c   :  { %v5755_v62 = vmul.f32 %v5751_v34, %v5751_v34  ;;  %v5756_v63 = vmul.f32 %v5752_v8, %v5752_v8  ;;  %v5757_v42 = vmul.f32 %v5753_v40, %v5753_v40  ;;  %v5758_v29 = vmul.f32 %v5754_v41, %v5754_v41 }
 0xc2e   :  { %v5759_v0 = vsel %vm275_vm1, %v5755_v62, 0.0  ;;  %v5760_v31 = vsel %vm275_vm1, %v5756_v63, 0.0  ;;  %v5762_v30 = vsel %vm275_vm1, %v5757_v42, 0.0  ;;  %v5764_v28 = vsel %vm275_vm1, %v5758_v29, 0.0 }
 0xc2f   :  { %v5761_v1 = vadd.f32 %v5760_v31, %v5759_v0 }
 0xc31   :  { %v5763_v2 = vadd.f32 %v5762_v30, %v5761_v1 }
 0xc33   :  { %v5765_v3 = vadd.f32 %v5764_v28, %v5763_v2 }
 0xc35   :  { %v5766_v32 = vrot.slane %v5765_v3, 4 }
 0xc37   :  { %v5767_v9 = vadd.f32 %v5766_v32, %v5765_v3 }
 0xc39   :  { %v5768_v10 = vrot.slane %v5767_v9, 2 }
 0xc3b   :  { %v5769_v11 = vadd.f32 %v5768_v10, %v5767_v9 }
 0xc3d   :  { %v5770_v12 = vrot.slane %v5769_v11, 1 }
 0xc3f   :  { %v5771_v13 = vadd.f32 %v5770_v12, %v5769_v11 }
 0xc41   :  { %v5772_v14 = vmul.f32 0.03125, %v5771_v13 }
 0xc43   :  { %v5774_v15 = vadd.f32 1e-05, %v5772_v14 }
 0xc45   :  { %8836 = vrsqrt.f32 %v5774_v15 }
 0xc4f   :  { %v8837_v17 = vpop.eup %8836 }
 0xc50   :  { %v5776_v18 = vmul.f32 %v8837_v17, %v5773_v16 }
 0xc52   :  { %v5781_v43 = vrot.slane %v5776_v18, %v9148_v46 }
 0xc54   :  { %v5783_v45 = vmul.f32 %v5781_v43, %v5751_v34  ;;  %v5784_v47 = vmul.f32 %v5781_v43, %v5752_v8  ;;  %v5785_v48 = vmul.f32 %v5781_v43, %v5753_v40  ;;  %v5786_v49 = vmul.f32 %v5781_v43, %v5754_v41 }
 0xc56   :  { %v5796_v50 = vadd.f32 %v6162_v44, %v5785_v48  ;;  %v5794_v51 = vadd.f32 %v6162_v44, %v5783_v45  ;;  %v5795_v52 = vadd.f32 %v6162_v44, %v5784_v47  ;;  %v5797_v53 = vadd.f32 %v6162_v44, %v5786_v49 }
 0xc58   :  { %5800 = vst.msk [vmem:[#allocation2 + $0x10] sm:$0xff] %vm275_vm1, %v5796_v50  ;;  %5798 = vst.msk [vmem:[#allocation2] sm:$0xff] %vm275_vm1, %v5794_v51 }
 0xc59   :  { %5799 = vst.msk [vmem:[#allocation2 + $0x8] sm:$0xff] %vm275_vm1, %v5795_v52  ;;  %5801 = vst.msk [vmem:[#allocation2 + $0x18] sm:$0xff] %vm275_vm1, %v5797_v53 }
 0xc5a   :  { %8849 = shalt.err (!%p8846_p4)
}
 0xc5b   :  { %s8850_s29 = scalar_lea.hbm %s10371_s17, 512 }
 0xc5c   :  { %p8851_p5 = scmp.ne.s32.totalorder %s10371_s17, %s8850_s29  ;;  %p8854_p6 = scmp.lt.u32.totalorder %s8850_s29, %s10371_s17 }
 0xc5e   :  { %p8856_p7 = pnand %p8854_p6, %p8851_p5 }
 0xc60   :  { %8859 = shalt.err (!%p8856_p7)
}
 0xc61   :  { %s8863_s5 = smov 128   ;;  %s8864_s19 = smov 8  }
 0xc62   :  { %5813 = dma.vmem_to_hbm [thread:$0]  %s5808_s23, 512, %s10371_s17, [#allocation3], %s8863_s5, %s8863_s5, %s8864_s19  }
 0xc63   :  { %8860 = dma.done.wait [#allocation3], 512  }
 0xc64   :  { %8861 = vsyncadd [#allocation3], 4294966784 }
 0xc65   :  { %5817 = vsyncpa [#allocation3], 1 }

</bundles_post_ra>
